<compile_context>
chip_gen: v7x
topology: tpu7x:2x2x1
jax: 0.10.0
libtpu: 0.0.40
codegen_flags: <defaults>
</compile_context>

<pallas_src>
import functools
import math

import jax
import jax.numpy as jnp
from jax import lax
from jax.experimental import pallas as pl
from jax.experimental.pallas import tpu as pltpu

D = 16                 # max_delay: embed dim == seq len == conv spatial side
B = 2                  # batch
C_HID = 16             # conv1 hidden channels
S2 = B * D * D         # 512: both batches' flattened 16x16 maps on the lane axis
EPS = 1e-5             # BatchNorm eps

# 3x3 taps, tap index t = ki*3 + kj, spatial offset (di, dj) = (ki-1, kj-1)
_TAPS = [(ki - 1, kj - 1) for ki in range(3) for kj in range(3)]


def _silu(x):
    # x * sigmoid(x); approx reciprocal rides the (otherwise idle) EUP slot.
    return x * pl.reciprocal(1.0 + jnp.exp(-x), approx=True)


def fused_kernel(x_ref, wqkv_ref, bqkv_ref, wo_ref, bo_ref, wf1_ref, bf1_ref,
                 w1_ref, b1_ref, w2_ref, b2_ref,
                 wfc2_ref, bfc2_ref, wfc3_ref, bfc3_ref,
                 o_ref,
                 av_ref, y_ref, flat_ref, p1_ref, p2_ref, head_ref):
    # ---------------- stage 1: attention + fc1 + SiLU + residual ----------------
    x = x_ref[...]                                               # (B*D, D) = (32, 16)
    # fused q|k|v projection for the whole batch (1/sqrt(D) folded into q part)
    qkv = jnp.dot(x, wqkv_ref[...], preferred_element_type=jnp.float32) + bqkv_ref[...]

    for b in range(B):                                           # B = 2, fully unrolled
        r0, r1 = b * D, (b + 1) * D
        q = qkv[r0:r1, 0:D]
        k = qkv[r0:r1, D:2 * D]
        v = qkv[r0:r1, 2 * D:3 * D]
        scores = lax.dot_general(q, k, (((1,), (1,)), ((), ())),
                                 preferred_element_type=jnp.float32)      # (16, 16)
        m = jnp.max(scores, axis=-1, keepdims=True)
        e = jnp.exp(scores - m)
        p = e * pl.reciprocal(jnp.sum(e, axis=-1, keepdims=True), approx=True)
        av_ref[r0:r1, :] = jnp.dot(p, v, preferred_element_type=jnp.float32)

    attn_out = jnp.dot(av_ref[...], wo_ref[...],
                       preferred_element_type=jnp.float32) + bo_ref[...]
    # TODO(synk): drop1 (p=0.15) / drop2 (p=0.1) are identity (eval-mode semantics).
    h = _silu(jnp.dot(attn_out, wf1_ref[...],
                      preferred_element_type=jnp.float32) + bf1_ref[...])
    y_ref[...] = h + x                                           # residual, (32, 16)

    # -------- relayout to lane-dense flat spatial: (B*D, D) -> (1, B*D*D) -------
    for r in range(B * D):
        flat_ref[0:1, r * D:(r + 1) * D] = y_ref[r:r + 1, :]
    flat = flat_ref[...]                                         # (1, 512)

    # masks / roll amounts for the 9 zero-padded 3x3 shifts on the flat lane axis
    lane = lax.broadcasted_iota(jnp.int32, (1, S2), 1)
    ii = (lane >> 4) & (D - 1)                                   # image row
    jj = lane & (D - 1)                                          # image col
    masks, shifts = [], []
    for di, dj in _TAPS:
        masks.append((ii + di >= 0) & (ii + di < D) & (jj + dj >= 0) & (jj + dj < D))
        shifts.append((-(di * D + dj)) % S2)

    def shifted(a, t):
        r = a if shifts[t] == 0 else pltpu.roll(a, shifts[t], axis=1)
        return jnp.where(masks[t], r, 0.0)

    # ---------- conv1 (1->16, 3x3, pad 1) + BN1 + SiLU : one MXU matmul ----------
    p1_ref[...] = jnp.zeros_like(p1_ref)                         # rows 9..15 stay 0
    for t in range(9):
        p1_ref[t:t + 1, :] = shifted(flat, t)
    h1 = jnp.dot(w1_ref[...], p1_ref[...],
                 preferred_element_type=jnp.float32) + b1_ref[...]
    h1 = _silu(h1)                                               # (16, 512)

    # ---------- conv2 (16->1, 3x3, pad 1) + BN2 + SiLU : one MXU matmul ----------
    for t in range(9):
        p2_ref[t * C_HID:(t + 1) * C_HID, :] = shifted(h1, t)
    c2 = jnp.dot(w2_ref[...], p2_ref[...],
                 preferred_element_type=jnp.float32)             # (8, 512); row 0 is real
    c2 = _silu(c2[0:1, :] + b2_ref[...])                         # (1, 512)

    # ------------------- head: fc2 + SiLU, fc3 + SiLU, softmax ------------------
    head_ref[...] = jnp.zeros_like(head_ref)
    for b in range(B):
        head_ref[b:b + 1, :] = c2[0:1, b * D * D:(b + 1) * D * D]
    z = _silu(jnp.dot(head_ref[...], wfc2_ref[...],
                      preferred_element_type=jnp.float32) + bfc2_ref[...])   # (8, 32)
    o = _silu(jnp.dot(z, wfc3_ref[...],
                      preferred_element_type=jnp.float32) + bfc3_ref[...])   # (8, 16)
    m = jnp.max(o, axis=-1, keepdims=True)
    e = jnp.exp(o - m)
    sm = e / jnp.sum(e, axis=-1, keepdims=True)                  # exact divide here
    o_ref[...] = sm[0:B, :]


def proportion_matrix_net(x, params):
    p = params
    vmem = pl.BlockSpec(memory_space=pltpu.MemorySpace.VMEM)
    return pl.pallas_call(
        fused_kernel,
        out_shape=jax.ShapeDtypeStruct((B, D), jnp.float32),
        in_specs=[vmem] * 15,
        out_specs=vmem,
        scratch_shapes=[
            pltpu.VMEM((B * D, D), jnp.float32),        # av  : attention @ V (both batches)
            pltpu.VMEM((B * D, D), jnp.float32),        # y   : stage-1 output (with residual)
            pltpu.VMEM((1, S2), jnp.float32),           # flat: lane-dense flattened spatial
            pltpu.VMEM((16, S2), jnp.float32),          # conv1 im2col (9 taps padded to 16)
            pltpu.VMEM((9 * C_HID, S2), jnp.float32),   # conv2 im2col (144 rows)
            pltpu.VMEM((8, D * D), jnp.float32),        # head input, padded to 8 rows
        ],
    )(x.reshape(-1, D),
      p["wqkv_t"], p["bqkv"], p["wo_t"], p["bo"], p["wf1_t"], p["bf1"],
      p["w1pad"], p["b1col"], p["w2pad"], p["b2"],
      p["wfc2_t"], p["bfc2"], p["wfc3_t"], p["bfc3"])


# ---------------------------------------------------------------------------
# Parameter construction (deterministic; shapes per nn.Module.__init__),
# with all kernel-side layout prep (transposes, QKV fusion, scale/BN folding,
# MXU-friendly zero padding) done once on the host.
# ---------------------------------------------------------------------------
def init_params(key):
    ks = jax.random.split(key, 18)

    def u(k, shape, fan_in):
        bound = 1.0 / math.sqrt(fan_in)
        return jax.random.uniform(k, shape, jnp.float32, -bound, bound)

    # MultiheadAttention (embed_dim=D, 1 head): in_proj split q/k/v, out_proj (D,D)
    wq = u(ks[0], (D, D), D); wk = u(ks[1], (D, D), D); wv = u(ks[2], (D, D), D)
    bq = u(ks[3], (D,), D);   bk = u(ks[4], (D,), D);   bv = u(ks[5], (D,), D)
    wo = u(ks[6], (D, D), D); bo = u(ks[7], (D,), D)
    # fc1 (D -> D), fc2 (D^2 -> 2D), fc3 (2D -> D)
    wf1 = u(ks[8], (D, D), D);                    bf1 = u(ks[9], (D,), D)
    wf2 = u(ks[10], (2 * D, D * D), D * D);       bf2 = u(ks[11], (2 * D,), D * D)
    wf3 = u(ks[12], (D, 2 * D), 2 * D);           bf3 = u(ks[13], (D,), 2 * D)
    # conv1 (1 -> 16, 3x3), conv2 (16 -> 1, 3x3)
    cw1 = u(ks[14], (C_HID, 1, 3, 3), 9);         cb1 = u(ks[15], (C_HID,), 9)
    cw2 = u(ks[16], (1, C_HID, 3, 3), 9 * C_HID); cb2 = u(ks[17], (1,), 9 * C_HID)

    # BatchNorm eval-mode (default running stats), folded into conv weights/biases.
    g1 = jnp.ones((C_HID,)); be1 = jnp.zeros((C_HID,))
    rm1 = jnp.zeros((C_HID,)); rv1 = jnp.ones((C_HID,))
    g2 = jnp.ones((1,)); be2 = jnp.zeros((1,))
    rm2 = jnp.zeros((1,)); rv2 = jnp.ones((1,))
    s1 = g1 / jnp.sqrt(rv1 + EPS)
    w1_fold = cw1[:, 0] * s1[:, None, None]                  # (16, 3, 3)
    b1_fold = s1 * (cb1 - rm1) + be1                         # (16,)
    s2 = g2 / jnp.sqrt(rv2 + EPS)
    w2_fold = cw2[0] * s2[0]                                 # (16, 3, 3)
    b2_fold = s2 * (cb2 - rm2) + be2                         # (1,)

    # fused QKV projection with the 1/sqrt(head_dim) scale folded into q
    scale = 1.0 / math.sqrt(D)
    wqkv_t = jnp.concatenate([wq.T * scale, wk.T, wv.T], axis=1)      # (16, 48)
    bqkv = jnp.concatenate([bq * scale, bk, bv]).reshape(1, 3 * D)    # (1, 48)

    # conv1 weights as (16 out-channels, 16) with columns 0..8 = taps, 9..15 = 0
    w1pad = jnp.zeros((C_HID, 16), jnp.float32).at[:, :9].set(w1_fold.reshape(C_HID, 9))
    # conv2 weights as (8, 144): row 0 real, layout column index = tap*16 + channel
    w2row = w2_fold.reshape(C_HID, 9).T.reshape(1, 9 * C_HID)
    w2pad = jnp.zeros((8, 9 * C_HID), jnp.float32).at[0:1, :].set(w2row)

    return dict(
        wqkv_t=wqkv_t, bqkv=bqkv,
        wo_t=wo.T, bo=bo.reshape(1, D),
        wf1_t=wf1.T, bf1=bf1.reshape(1, D),
        w1pad=w1pad, b1col=b1_fold.reshape(C_HID, 1),
        w2pad=w2pad, b2=b2_fold.reshape(1, 1),
        wfc2_t=wf2.T, bfc2=bf2.reshape(1, 2 * D),
        wfc3_t=wf3.T, bfc3=bf3.reshape(1, D),
    )


if __name__ == "__main__":
    key = jax.random.PRNGKey(0)
    pkey, xkey = jax.random.split(key)
    params = init_params(pkey)
    x = jax.random.normal(xkey, (B, D, D), jnp.float32)   # (batch, seq=max_delay, embed=max_delay)

    fwd = jax.jit(functools.partial(proportion_matrix_net, params=params))
    out = jax.block_until_ready(fwd(x))

    assert out.shape == (B, D), out.shape
    assert bool(jnp.all(jnp.isfinite(out)))
    assert bool(jnp.allclose(jnp.sum(out, axis=-1), 1.0, atol=1e-5))
    print("KERNEL_OK")
</pallas_src>

<mosaic_0001>
module attributes {stable_mosaic.version = 11 : i64} {
  func.func @fused_kernel(%arg0: memref<32x16xf32, #tpu.memory_space<vmem>>, %arg1: memref<16x48xf32, #tpu.memory_space<vmem>>, %arg2: memref<1x48xf32, #tpu.memory_space<vmem>>, %arg3: memref<16x16xf32, #tpu.memory_space<vmem>>, %arg4: memref<1x16xf32, #tpu.memory_space<vmem>>, %arg5: memref<16x16xf32, #tpu.memory_space<vmem>>, %arg6: memref<1x16xf32, #tpu.memory_space<vmem>>, %arg7: memref<16x16xf32, #tpu.memory_space<vmem>>, %arg8: memref<16x1xf32, #tpu.memory_space<vmem>>, %arg9: memref<8x144xf32, #tpu.memory_space<vmem>>, %arg10: memref<1x1xf32, #tpu.memory_space<vmem>>, %arg11: memref<256x32xf32, #tpu.memory_space<vmem>>, %arg12: memref<1x32xf32, #tpu.memory_space<vmem>>, %arg13: memref<32x16xf32, #tpu.memory_space<vmem>>, %arg14: memref<1x16xf32, #tpu.memory_space<vmem>>, %arg15: memref<2x16xf32, #tpu.memory_space<vmem>>, %arg16: memref<32x16xf32, #tpu.memory_space<vmem>>, %arg17: memref<32x16xf32, #tpu.memory_space<vmem>>, %arg18: memref<1x512xf32, #tpu.memory_space<vmem>>, %arg19: memref<16x512xf32, #tpu.memory_space<vmem>>, %arg20: memref<144x512xf32, #tpu.memory_space<vmem>>, %arg21: memref<8x256xf32, #tpu.memory_space<vmem>>) attributes {dimension_semantics = [], scalar_prefetch = 0 : i64, scratch_operands = 6 : i64, tpu.core_type = #tpu.core_type<tc>} {
    %c0 = arith.constant 0 : index
    %c0_0 = arith.constant 0 : index
    %0 = vector.load %arg0[%c0, %c0_0] : memref<32x16xf32, #tpu.memory_space<vmem>>, vector<32x16xf32>
    %c0_1 = arith.constant 0 : index
    %c0_2 = arith.constant 0 : index
    %1 = vector.load %arg1[%c0_1, %c0_2] : memref<16x48xf32, #tpu.memory_space<vmem>>, vector<16x48xf32>
    %cst = arith.constant dense<0.000000e+00> : vector<32x48xf32>
    %2 = tpu.matmul %0, %1, %cst {dimension_numbers = #tpu.dot_dimension_numbers<[1], [0], [0], [1], [0, 0, 1, 1], [], []>} : vector<32x16xf32>, vector<16x48xf32>, vector<32x48xf32> -> vector<32x48xf32>
    %c0_3 = arith.constant 0 : index
    %c0_4 = arith.constant 0 : index
    %3 = vector.load %arg2[%c0_3, %c0_4] : memref<1x48xf32, #tpu.memory_space<vmem>>, vector<1x48xf32>
    %4 = vector.broadcast %3 : vector<1x48xf32> to vector<32x48xf32>
    %5 = arith.addf %2, %4 : vector<32x48xf32>
    %6 = vector.extract_strided_slice %5 {offsets = [0, 0], sizes = [16, 16], strides = [1, 1]} : vector<32x48xf32> to vector<16x16xf32>
    %7 = vector.extract_strided_slice %5 {offsets = [0, 16], sizes = [16, 16], strides = [1, 1]} : vector<32x48xf32> to vector<16x16xf32>
    %8 = vector.extract_strided_slice %5 {offsets = [0, 32], sizes = [16, 16], strides = [1, 1]} : vector<32x48xf32> to vector<16x16xf32>
    %cst_5 = arith.constant dense<0.000000e+00> : vector<16x16xf32>
    %9 = tpu.matmul %6, %7, %cst_5 {dimension_numbers = #tpu.dot_dimension_numbers<[1], [1], [0], [0], [0, 0, 1, 0], [], []>} : vector<16x16xf32>, vector<16x16xf32>, vector<16x16xf32> -> vector<16x16xf32>
    %cst_6 = arith.constant dense<0xFF800000> : vector<16xf32>
    %10 = vector.multi_reduction <maximumf>, %9, %cst_6 [1] : vector<16x16xf32> to vector<16xf32>
    %11 = vector.shape_cast %10 : vector<16xf32> to vector<16x1xf32>
    %12 = vector.broadcast %11 : vector<16x1xf32> to vector<16x16xf32>
    %13 = arith.subf %9, %12 : vector<16x16xf32>
    %14 = math.exp %13 : vector<16x16xf32>
    %cst_7 = arith.constant dense<0.000000e+00> : vector<16xf32>
    %15 = vector.multi_reduction <add>, %14, %cst_7 [1] : vector<16x16xf32> to vector<16xf32>
    %16 = vector.shape_cast %15 : vector<16xf32> to vector<16x1xf32>
    %17 = tpu.reciprocal %16 {approx = true} : vector<16x1xf32> -> vector<16x1xf32>
    %18 = vector.broadcast %17 : vector<16x1xf32> to vector<16x16xf32>
    %19 = arith.mulf %14, %18 : vector<16x16xf32>
    %cst_8 = arith.constant dense<0.000000e+00> : vector<16x16xf32>
    %20 = tpu.matmul %19, %8, %cst_8 {dimension_numbers = #tpu.dot_dimension_numbers<[1], [0], [0], [1], [0, 0, 1, 1], [], []>} : vector<16x16xf32>, vector<16x16xf32>, vector<16x16xf32> -> vector<16x16xf32>
    %c0_9 = arith.constant 0 : index
    %c0_10 = arith.constant 0 : index
    %21 = vector.load %arg16[%c0_9, %c0_10] : memref<32x16xf32, #tpu.memory_space<vmem>>, vector<16x16xf32>
    tpu.vector_store %arg16[%c0_9, %c0_10], %20 {strides = array<i32>} : memref<32x16xf32, #tpu.memory_space<vmem>>, vector<16x16xf32>,
    %22 = vector.extract_strided_slice %5 {offsets = [16, 0], sizes = [16, 16], strides = [1, 1]} : vector<32x48xf32> to vector<16x16xf32>
    %23 = vector.extract_strided_slice %5 {offsets = [16, 16], sizes = [16, 16], strides = [1, 1]} : vector<32x48xf32> to vector<16x16xf32>
    %24 = vector.extract_strided_slice %5 {offsets = [16, 32], sizes = [16, 16], strides = [1, 1]} : vector<32x48xf32> to vector<16x16xf32>
    %cst_11 = arith.constant dense<0.000000e+00> : vector<16x16xf32>
    %25 = tpu.matmul %22, %23, %cst_11 {dimension_numbers = #tpu.dot_dimension_numbers<[1], [1], [0], [0], [0, 0, 1, 0], [], []>} : vector<16x16xf32>, vector<16x16xf32>, vector<16x16xf32> -> vector<16x16xf32>
    %cst_12 = arith.constant dense<0xFF800000> : vector<16xf32>
    %26 = vector.multi_reduction <maximumf>, %25, %cst_12 [1] : vector<16x16xf32> to vector<16xf32>
    %27 = vector.shape_cast %26 : vector<16xf32> to vector<16x1xf32>
    %28 = vector.broadcast %27 : vector<16x1xf32> to vector<16x16xf32>
    %29 = arith.subf %25, %28 : vector<16x16xf32>
    %30 = math.exp %29 : vector<16x16xf32>
    %cst_13 = arith.constant dense<0.000000e+00> : vector<16xf32>
    %31 = vector.multi_reduction <add>, %30, %cst_13 [1] : vector<16x16xf32> to vector<16xf32>
    %32 = vector.shape_cast %31 : vector<16xf32> to vector<16x1xf32>
    %33 = tpu.reciprocal %32 {approx = true} : vector<16x1xf32> -> vector<16x1xf32>
    %34 = vector.broadcast %33 : vector<16x1xf32> to vector<16x16xf32>
    %35 = arith.mulf %30, %34 : vector<16x16xf32>
    %cst_14 = arith.constant dense<0.000000e+00> : vector<16x16xf32>
    %36 = tpu.matmul %35, %24, %cst_14 {dimension_numbers = #tpu.dot_dimension_numbers<[1], [0], [0], [1], [0, 0, 1, 1], [], []>} : vector<16x16xf32>, vector<16x16xf32>, vector<16x16xf32> -> vector<16x16xf32>
    %c16 = arith.constant 16 : index
    %c0_15 = arith.constant 0 : index
    %37 = vector.load %arg16[%c16, %c0_15] : memref<32x16xf32, #tpu.memory_space<vmem>>, vector<16x16xf32>
    tpu.vector_store %arg16[%c16, %c0_15], %36 {strides = array<i32>} : memref<32x16xf32, #tpu.memory_space<vmem>>, vector<16x16xf32>,
    %c0_16 = arith.constant 0 : index
    %c0_17 = arith.constant 0 : index
    %38 = vector.load %arg16[%c0_16, %c0_17] : memref<32x16xf32, #tpu.memory_space<vmem>>, vector<32x16xf32>
    %c0_18 = arith.constant 0 : index
    %c0_19 = arith.constant 0 : index
    %39 = vector.load %arg3[%c0_18, %c0_19] : memref<16x16xf32, #tpu.memory_space<vmem>>, vector<16x16xf32>
    %cst_20 = arith.constant dense<0.000000e+00> : vector<32x16xf32>
    %40 = tpu.matmul %38, %39, %cst_20 {dimension_numbers = #tpu.dot_dimension_numbers<[1], [0], [0], [1], [0, 0, 1, 1], [], []>} : vector<32x16xf32>, vector<16x16xf32>, vector<32x16xf32> -> vector<32x16xf32>
    %c0_21 = arith.constant 0 : index
    %c0_22 = arith.constant 0 : index
    %41 = vector.load %arg4[%c0_21, %c0_22] : memref<1x16xf32, #tpu.memory_space<vmem>>, vector<1x16xf32>
    %42 = vector.broadcast %41 : vector<1x16xf32> to vector<32x16xf32>
    %43 = arith.addf %40, %42 : vector<32x16xf32>
    %c0_23 = arith.constant 0 : index
    %c0_24 = arith.constant 0 : index
    %44 = vector.load %arg5[%c0_23, %c0_24] : memref<16x16xf32, #tpu.memory_space<vmem>>, vector<16x16xf32>
    %cst_25 = arith.constant dense<0.000000e+00> : vector<32x16xf32>
    %45 = tpu.matmul %43, %44, %cst_25 {dimension_numbers = #tpu.dot_dimension_numbers<[1], [0], [0], [1], [0, 0, 1, 1], [], []>} : vector<32x16xf32>, vector<16x16xf32>, vector<32x16xf32> -> vector<32x16xf32>
    %c0_26 = arith.constant 0 : index
    %c0_27 = arith.constant 0 : index
    %46 = vector.load %arg6[%c0_26, %c0_27] : memref<1x16xf32, #tpu.memory_space<vmem>>, vector<1x16xf32>
    %47 = vector.broadcast %46 : vector<1x16xf32> to vector<32x16xf32>
    %48 = arith.addf %45, %47 : vector<32x16xf32>
    %cst_28 = arith.constant 0.000000e+00 : f32
    %49 = vector.broadcast %cst_28 : f32 to vector<32x16xf32>
    %50 = arith.subf %49, %48 : vector<32x16xf32>
    %51 = math.exp %50 : vector<32x16xf32>
    %cst_29 = arith.constant 1.000000e+00 : f32
    %52 = vector.broadcast %cst_29 : f32 to vector<32x16xf32>
    %53 = arith.addf %52, %51 : vector<32x16xf32>
    %54 = tpu.reciprocal %53 {approx = true} : vector<32x16xf32> -> vector<32x16xf32>
    %55 = arith.mulf %48, %54 : vector<32x16xf32>
    %56 = arith.addf %55, %0 : vector<32x16xf32>
    %c0_30 = arith.constant 0 : index
    %c0_31 = arith.constant 0 : index
    %57 = vector.load %arg17[%c0_30, %c0_31] : memref<32x16xf32, #tpu.memory_space<vmem>>, vector<32x16xf32>
    tpu.vector_store %arg17[%c0_30, %c0_31], %56 {strides = array<i32>} : memref<32x16xf32, #tpu.memory_space<vmem>>, vector<32x16xf32>,
    %c0_32 = arith.constant 0 : index
    %c0_33 = arith.constant 0 : index
    %58 = vector.load %arg17[%c0_32, %c0_33] : memref<32x16xf32, #tpu.memory_space<vmem>>, vector<1x16xf32>
    %c0_34 = arith.constant 0 : index
    %c0_35 = arith.constant 0 : index
    %59 = vector.load %arg18[%c0_34, %c0_35] : memref<1x512xf32, #tpu.memory_space<vmem>>, vector<1x16xf32>
    tpu.vector_store %arg18[%c0_34, %c0_35], %58 {strides = array<i32>} : memref<1x512xf32, #tpu.memory_space<vmem>>, vector<1x16xf32>,
    %c1 = arith.constant 1 : index
    %c0_36 = arith.constant 0 : index
    %60 = vector.load %arg17[%c1, %c0_36] : memref<32x16xf32, #tpu.memory_space<vmem>>, vector<1x16xf32>
    %c0_37 = arith.constant 0 : index
    %c16_38 = arith.constant 16 : index
    %61 = vector.load %arg18[%c0_37, %c16_38] : memref<1x512xf32, #tpu.memory_space<vmem>>, vector<1x16xf32>
    tpu.vector_store %arg18[%c0_37, %c16_38], %60 {strides = array<i32>} : memref<1x512xf32, #tpu.memory_space<vmem>>, vector<1x16xf32>,
    %c2 = arith.constant 2 : index
    %c0_39 = arith.constant 0 : index
    %62 = vector.load %arg17[%c2, %c0_39] : memref<32x16xf32, #tpu.memory_space<vmem>>, vector<1x16xf32>
    %c0_40 = arith.constant 0 : index
    %c32 = arith.constant 32 : index
    %63 = vector.load %arg18[%c0_40, %c32] : memref<1x512xf32, #tpu.memory_space<vmem>>, vector<1x16xf32>
    tpu.vector_store %arg18[%c0_40, %c32], %62 {strides = array<i32>} : memref<1x512xf32, #tpu.memory_space<vmem>>, vector<1x16xf32>,
    %c3 = arith.constant 3 : index
    %c0_41 = arith.constant 0 : index
    %64 = vector.load %arg17[%c3, %c0_41] : memref<32x16xf32, #tpu.memory_space<vmem>>, vector<1x16xf32>
    %c0_42 = arith.constant 0 : index
    %c48 = arith.constant 48 : index
    %65 = vector.load %arg18[%c0_42, %c48] : memref<1x512xf32, #tpu.memory_space<vmem>>, vector<1x16xf32>
    tpu.vector_store %arg18[%c0_42, %c48], %64 {strides = array<i32>} : memref<1x512xf32, #tpu.memory_space<vmem>>, vector<1x16xf32>,
    %c4 = arith.constant 4 : index
    %c0_43 = arith.constant 0 : index
    %66 = vector.load %arg17[%c4, %c0_43] : memref<32x16xf32, #tpu.memory_space<vmem>>, vector<1x16xf32>
    %c0_44 = arith.constant 0 : index
    %c64 = arith.constant 64 : index
    %67 = vector.load %arg18[%c0_44, %c64] : memref<1x512xf32, #tpu.memory_space<vmem>>, vector<1x16xf32>
    tpu.vector_store %arg18[%c0_44, %c64], %66 {strides = array<i32>} : memref<1x512xf32, #tpu.memory_space<vmem>>, vector<1x16xf32>,
    %c5 = arith.constant 5 : index
    %c0_45 = arith.constant 0 : index
    %68 = vector.load %arg17[%c5, %c0_45] : memref<32x16xf32, #tpu.memory_space<vmem>>, vector<1x16xf32>
    %c0_46 = arith.constant 0 : index
    %c80 = arith.constant 80 : index
    %69 = vector.load %arg18[%c0_46, %c80] : memref<1x512xf32, #tpu.memory_space<vmem>>, vector<1x16xf32>
    tpu.vector_store %arg18[%c0_46, %c80], %68 {strides = array<i32>} : memref<1x512xf32, #tpu.memory_space<vmem>>, vector<1x16xf32>,
    %c6 = arith.constant 6 : index
    %c0_47 = arith.constant 0 : index
    %70 = vector.load %arg17[%c6, %c0_47] : memref<32x16xf32, #tpu.memory_space<vmem>>, vector<1x16xf32>
    %c0_48 = arith.constant 0 : index
    %c96 = arith.constant 96 : index
    %71 = vector.load %arg18[%c0_48, %c96] : memref<1x512xf32, #tpu.memory_space<vmem>>, vector<1x16xf32>
    tpu.vector_store %arg18[%c0_48, %c96], %70 {strides = array<i32>} : memref<1x512xf32, #tpu.memory_space<vmem>>, vector<1x16xf32>,
    %c7 = arith.constant 7 : index
    %c0_49 = arith.constant 0 : index
    %72 = vector.load %arg17[%c7, %c0_49] : memref<32x16xf32, #tpu.memory_space<vmem>>, vector<1x16xf32>
    %c0_50 = arith.constant 0 : index
    %c112 = arith.constant 112 : index
    %73 = vector.load %arg18[%c0_50, %c112] : memref<1x512xf32, #tpu.memory_space<vmem>>, vector<1x16xf32>
    tpu.vector_store %arg18[%c0_50, %c112], %72 {strides = array<i32>} : memref<1x512xf32, #tpu.memory_space<vmem>>, vector<1x16xf32>,
    %c8 = arith.constant 8 : index
    %c0_51 = arith.constant 0 : index
    %74 = vector.load %arg17[%c8, %c0_51] : memref<32x16xf32, #tpu.memory_space<vmem>>, vector<1x16xf32>
    %c0_52 = arith.constant 0 : index
    %c128 = arith.constant 128 : index
    %75 = vector.load %arg18[%c0_52, %c128] : memref<1x512xf32, #tpu.memory_space<vmem>>, vector<1x16xf32>
    tpu.vector_store %arg18[%c0_52, %c128], %74 {strides = array<i32>} : memref<1x512xf32, #tpu.memory_space<vmem>>, vector<1x16xf32>,
    %c9 = arith.constant 9 : index
    %c0_53 = arith.constant 0 : index
    %76 = vector.load %arg17[%c9, %c0_53] : memref<32x16xf32, #tpu.memory_space<vmem>>, vector<1x16xf32>
    %c0_54 = arith.constant 0 : index
    %c144 = arith.constant 144 : index
    %77 = vector.load %arg18[%c0_54, %c144] : memref<1x512xf32, #tpu.memory_space<vmem>>, vector<1x16xf32>
    tpu.vector_store %arg18[%c0_54, %c144], %76 {strides = array<i32>} : memref<1x512xf32, #tpu.memory_space<vmem>>, vector<1x16xf32>,
    %c10 = arith.constant 10 : index
    %c0_55 = arith.constant 0 : index
    %78 = vector.load %arg17[%c10, %c0_55] : memref<32x16xf32, #tpu.memory_space<vmem>>, vector<1x16xf32>
    %c0_56 = arith.constant 0 : index
    %c160 = arith.constant 160 : index
    %79 = vector.load %arg18[%c0_56, %c160] : memref<1x512xf32, #tpu.memory_space<vmem>>, vector<1x16xf32>
    tpu.vector_store %arg18[%c0_56, %c160], %78 {strides = array<i32>} : memref<1x512xf32, #tpu.memory_space<vmem>>, vector<1x16xf32>,
    %c11 = arith.constant 11 : index
    %c0_57 = arith.constant 0 : index
    %80 = vector.load %arg17[%c11, %c0_57] : memref<32x16xf32, #tpu.memory_space<vmem>>, vector<1x16xf32>
    %c0_58 = arith.constant 0 : index
    %c176 = arith.constant 176 : index
    %81 = vector.load %arg18[%c0_58, %c176] : memref<1x512xf32, #tpu.memory_space<vmem>>, vector<1x16xf32>
    tpu.vector_store %arg18[%c0_58, %c176], %80 {strides = array<i32>} : memref<1x512xf32, #tpu.memory_space<vmem>>, vector<1x16xf32>,
    %c12 = arith.constant 12 : index
    %c0_59 = arith.constant 0 : index
    %82 = vector.load %arg17[%c12, %c0_59] : memref<32x16xf32, #tpu.memory_space<vmem>>, vector<1x16xf32>
    %c0_60 = arith.constant 0 : index
    %c192 = arith.constant 192 : index
    %83 = vector.load %arg18[%c0_60, %c192] : memref<1x512xf32, #tpu.memory_space<vmem>>, vector<1x16xf32>
    tpu.vector_store %arg18[%c0_60, %c192], %82 {strides = array<i32>} : memref<1x512xf32, #tpu.memory_space<vmem>>, vector<1x16xf32>,
    %c13 = arith.constant 13 : index
    %c0_61 = arith.constant 0 : index
    %84 = vector.load %arg17[%c13, %c0_61] : memref<32x16xf32, #tpu.memory_space<vmem>>, vector<1x16xf32>
    %c0_62 = arith.constant 0 : index
    %c208 = arith.constant 208 : index
    %85 = vector.load %arg18[%c0_62, %c208] : memref<1x512xf32, #tpu.memory_space<vmem>>, vector<1x16xf32>
    tpu.vector_store %arg18[%c0_62, %c208], %84 {strides = array<i32>} : memref<1x512xf32, #tpu.memory_space<vmem>>, vector<1x16xf32>,
    %c14 = arith.constant 14 : index
    %c0_63 = arith.constant 0 : index
    %86 = vector.load %arg17[%c14, %c0_63] : memref<32x16xf32, #tpu.memory_space<vmem>>, vector<1x16xf32>
    %c0_64 = arith.constant 0 : index
    %c224 = arith.constant 224 : index
    %87 = vector.load %arg18[%c0_64, %c224] : memref<1x512xf32, #tpu.memory_space<vmem>>, vector<1x16xf32>
    tpu.vector_store %arg18[%c0_64, %c224], %86 {strides = array<i32>} : memref<1x512xf32, #tpu.memory_space<vmem>>, vector<1x16xf32>,
    %c15 = arith.constant 15 : index
    %c0_65 = arith.constant 0 : index
    %88 = vector.load %arg17[%c15, %c0_65] : memref<32x16xf32, #tpu.memory_space<vmem>>, vector<1x16xf32>
    %c0_66 = arith.constant 0 : index
    %c240 = arith.constant 240 : index
    %89 = vector.load %arg18[%c0_66, %c240] : memref<1x512xf32, #tpu.memory_space<vmem>>, vector<1x16xf32>
    tpu.vector_store %arg18[%c0_66, %c240], %88 {strides = array<i32>} : memref<1x512xf32, #tpu.memory_space<vmem>>, vector<1x16xf32>,
    %c16_67 = arith.constant 16 : index
    %c0_68 = arith.constant 0 : index
    %90 = vector.load %arg17[%c16_67, %c0_68] : memref<32x16xf32, #tpu.memory_space<vmem>>, vector<1x16xf32>
    %c0_69 = arith.constant 0 : index
    %c256 = arith.constant 256 : index
    %91 = vector.load %arg18[%c0_69, %c256] : memref<1x512xf32, #tpu.memory_space<vmem>>, vector<1x16xf32>
    tpu.vector_store %arg18[%c0_69, %c256], %90 {strides = array<i32>} : memref<1x512xf32, #tpu.memory_space<vmem>>, vector<1x16xf32>,
    %c17 = arith.constant 17 : index
    %c0_70 = arith.constant 0 : index
    %92 = vector.load %arg17[%c17, %c0_70] : memref<32x16xf32, #tpu.memory_space<vmem>>, vector<1x16xf32>
    %c0_71 = arith.constant 0 : index
    %c272 = arith.constant 272 : index
    %93 = vector.load %arg18[%c0_71, %c272] : memref<1x512xf32, #tpu.memory_space<vmem>>, vector<1x16xf32>
    tpu.vector_store %arg18[%c0_71, %c272], %92 {strides = array<i32>} : memref<1x512xf32, #tpu.memory_space<vmem>>, vector<1x16xf32>,
    %c18 = arith.constant 18 : index
    %c0_72 = arith.constant 0 : index
    %94 = vector.load %arg17[%c18, %c0_72] : memref<32x16xf32, #tpu.memory_space<vmem>>, vector<1x16xf32>
    %c0_73 = arith.constant 0 : index
    %c288 = arith.constant 288 : index
    %95 = vector.load %arg18[%c0_73, %c288] : memref<1x512xf32, #tpu.memory_space<vmem>>, vector<1x16xf32>
    tpu.vector_store %arg18[%c0_73, %c288], %94 {strides = array<i32>} : memref<1x512xf32, #tpu.memory_space<vmem>>, vector<1x16xf32>,
    %c19 = arith.constant 19 : index
    %c0_74 = arith.constant 0 : index
    %96 = vector.load %arg17[%c19, %c0_74] : memref<32x16xf32, #tpu.memory_space<vmem>>, vector<1x16xf32>
    %c0_75 = arith.constant 0 : index
    %c304 = arith.constant 304 : index
    %97 = vector.load %arg18[%c0_75, %c304] : memref<1x512xf32, #tpu.memory_space<vmem>>, vector<1x16xf32>
    tpu.vector_store %arg18[%c0_75, %c304], %96 {strides = array<i32>} : memref<1x512xf32, #tpu.memory_space<vmem>>, vector<1x16xf32>,
    %c20 = arith.constant 20 : index
    %c0_76 = arith.constant 0 : index
    %98 = vector.load %arg17[%c20, %c0_76] : memref<32x16xf32, #tpu.memory_space<vmem>>, vector<1x16xf32>
    %c0_77 = arith.constant 0 : index
    %c320 = arith.constant 320 : index
    %99 = vector.load %arg18[%c0_77, %c320] : memref<1x512xf32, #tpu.memory_space<vmem>>, vector<1x16xf32>
    tpu.vector_store %arg18[%c0_77, %c320], %98 {strides = array<i32>} : memref<1x512xf32, #tpu.memory_space<vmem>>, vector<1x16xf32>,
    %c21 = arith.constant 21 : index
    %c0_78 = arith.constant 0 : index
    %100 = vector.load %arg17[%c21, %c0_78] : memref<32x16xf32, #tpu.memory_space<vmem>>, vector<1x16xf32>
    %c0_79 = arith.constant 0 : index
    %c336 = arith.constant 336 : index
    %101 = vector.load %arg18[%c0_79, %c336] : memref<1x512xf32, #tpu.memory_space<vmem>>, vector<1x16xf32>
    tpu.vector_store %arg18[%c0_79, %c336], %100 {strides = array<i32>} : memref<1x512xf32, #tpu.memory_space<vmem>>, vector<1x16xf32>,
    %c22 = arith.constant 22 : index
    %c0_80 = arith.constant 0 : index
    %102 = vector.load %arg17[%c22, %c0_80] : memref<32x16xf32, #tpu.memory_space<vmem>>, vector<1x16xf32>
    %c0_81 = arith.constant 0 : index
    %c352 = arith.constant 352 : index
    %103 = vector.load %arg18[%c0_81, %c352] : memref<1x512xf32, #tpu.memory_space<vmem>>, vector<1x16xf32>
    tpu.vector_store %arg18[%c0_81, %c352], %102 {strides = array<i32>} : memref<1x512xf32, #tpu.memory_space<vmem>>, vector<1x16xf32>,
    %c23 = arith.constant 23 : index
    %c0_82 = arith.constant 0 : index
    %104 = vector.load %arg17[%c23, %c0_82] : memref<32x16xf32, #tpu.memory_space<vmem>>, vector<1x16xf32>
    %c0_83 = arith.constant 0 : index
    %c368 = arith.constant 368 : index
    %105 = vector.load %arg18[%c0_83, %c368] : memref<1x512xf32, #tpu.memory_space<vmem>>, vector<1x16xf32>
    tpu.vector_store %arg18[%c0_83, %c368], %104 {strides = array<i32>} : memref<1x512xf32, #tpu.memory_space<vmem>>, vector<1x16xf32>,
    %c24 = arith.constant 24 : index
    %c0_84 = arith.constant 0 : index
    %106 = vector.load %arg17[%c24, %c0_84] : memref<32x16xf32, #tpu.memory_space<vmem>>, vector<1x16xf32>
    %c0_85 = arith.constant 0 : index
    %c384 = arith.constant 384 : index
    %107 = vector.load %arg18[%c0_85, %c384] : memref<1x512xf32, #tpu.memory_space<vmem>>, vector<1x16xf32>
    tpu.vector_store %arg18[%c0_85, %c384], %106 {strides = array<i32>} : memref<1x512xf32, #tpu.memory_space<vmem>>, vector<1x16xf32>,
    %c25 = arith.constant 25 : index
    %c0_86 = arith.constant 0 : index
    %108 = vector.load %arg17[%c25, %c0_86] : memref<32x16xf32, #tpu.memory_space<vmem>>, vector<1x16xf32>
    %c0_87 = arith.constant 0 : index
    %c400 = arith.constant 400 : index
    %109 = vector.load %arg18[%c0_87, %c400] : memref<1x512xf32, #tpu.memory_space<vmem>>, vector<1x16xf32>
    tpu.vector_store %arg18[%c0_87, %c400], %108 {strides = array<i32>} : memref<1x512xf32, #tpu.memory_space<vmem>>, vector<1x16xf32>,
    %c26 = arith.constant 26 : index
    %c0_88 = arith.constant 0 : index
    %110 = vector.load %arg17[%c26, %c0_88] : memref<32x16xf32, #tpu.memory_space<vmem>>, vector<1x16xf32>
    %c0_89 = arith.constant 0 : index
    %c416 = arith.constant 416 : index
    %111 = vector.load %arg18[%c0_89, %c416] : memref<1x512xf32, #tpu.memory_space<vmem>>, vector<1x16xf32>
    tpu.vector_store %arg18[%c0_89, %c416], %110 {strides = array<i32>} : memref<1x512xf32, #tpu.memory_space<vmem>>, vector<1x16xf32>,
    %c27 = arith.constant 27 : index
    %c0_90 = arith.constant 0 : index
    %112 = vector.load %arg17[%c27, %c0_90] : memref<32x16xf32, #tpu.memory_space<vmem>>, vector<1x16xf32>
    %c0_91 = arith.constant 0 : index
    %c432 = arith.constant 432 : index
    %113 = vector.load %arg18[%c0_91, %c432] : memref<1x512xf32, #tpu.memory_space<vmem>>, vector<1x16xf32>
    tpu.vector_store %arg18[%c0_91, %c432], %112 {strides = array<i32>} : memref<1x512xf32, #tpu.memory_space<vmem>>, vector<1x16xf32>,
    %c28 = arith.constant 28 : index
    %c0_92 = arith.constant 0 : index
    %114 = vector.load %arg17[%c28, %c0_92] : memref<32x16xf32, #tpu.memory_space<vmem>>, vector<1x16xf32>
    %c0_93 = arith.constant 0 : index
    %c448 = arith.constant 448 : index
    %115 = vector.load %arg18[%c0_93, %c448] : memref<1x512xf32, #tpu.memory_space<vmem>>, vector<1x16xf32>
    tpu.vector_store %arg18[%c0_93, %c448], %114 {strides = array<i32>} : memref<1x512xf32, #tpu.memory_space<vmem>>, vector<1x16xf32>,
    %c29 = arith.constant 29 : index
    %c0_94 = arith.constant 0 : index
    %116 = vector.load %arg17[%c29, %c0_94] : memref<32x16xf32, #tpu.memory_space<vmem>>, vector<1x16xf32>
    %c0_95 = arith.constant 0 : index
    %c464 = arith.constant 464 : index
    %117 = vector.load %arg18[%c0_95, %c464] : memref<1x512xf32, #tpu.memory_space<vmem>>, vector<1x16xf32>
    tpu.vector_store %arg18[%c0_95, %c464], %116 {strides = array<i32>} : memref<1x512xf32, #tpu.memory_space<vmem>>, vector<1x16xf32>,
    %c30 = arith.constant 30 : index
    %c0_96 = arith.constant 0 : index
    %118 = vector.load %arg17[%c30, %c0_96] : memref<32x16xf32, #tpu.memory_space<vmem>>, vector<1x16xf32>
    %c0_97 = arith.constant 0 : index
    %c480 = arith.constant 480 : index
    %119 = vector.load %arg18[%c0_97, %c480] : memref<1x512xf32, #tpu.memory_space<vmem>>, vector<1x16xf32>
    tpu.vector_store %arg18[%c0_97, %c480], %118 {strides = array<i32>} : memref<1x512xf32, #tpu.memory_space<vmem>>, vector<1x16xf32>,
    %c31 = arith.constant 31 : index
    %c0_98 = arith.constant 0 : index
    %120 = vector.load %arg17[%c31, %c0_98] : memref<32x16xf32, #tpu.memory_space<vmem>>, vector<1x16xf32>
    %c0_99 = arith.constant 0 : index
    %c496 = arith.constant 496 : index
    %121 = vector.load %arg18[%c0_99, %c496] : memref<1x512xf32, #tpu.memory_space<vmem>>, vector<1x16xf32>
    tpu.vector_store %arg18[%c0_99, %c496], %120 {strides = array<i32>} : memref<1x512xf32, #tpu.memory_space<vmem>>, vector<1x16xf32>,
    %c0_100 = arith.constant 0 : index
    %c0_101 = arith.constant 0 : index
    %122 = vector.load %arg18[%c0_100, %c0_101] : memref<1x512xf32, #tpu.memory_space<vmem>>, vector<1x512xf32>
    %123 = tpu.iota {dimensions = array<i32: 1>} : vector<1x512xi32>
    %c4_i32 = arith.constant 4 : i32
    %124 = vector.broadcast %c4_i32 : i32 to vector<1x512xi32>
    %125 = arith.shrsi %123, %124 : vector<1x512xi32>
    %c15_i32 = arith.constant 15 : i32
    %126 = vector.broadcast %c15_i32 : i32 to vector<1x512xi32>
    %127 = arith.andi %125, %126 : vector<1x512xi32>
    %c15_i32_102 = arith.constant 15 : i32
    %128 = vector.broadcast %c15_i32_102 : i32 to vector<1x512xi32>
    %129 = arith.andi %123, %128 : vector<1x512xi32>
    %c-1_i32 = arith.constant -1 : i32
    %130 = vector.broadcast %c-1_i32 : i32 to vector<1x512xi32>
    %131 = arith.addi %127, %130 : vector<1x512xi32>
    %c0_i32 = arith.constant 0 : i32
    %132 = vector.broadcast %c0_i32 : i32 to vector<1x512xi32>
    %133 = arith.cmpi sge, %131, %132 : vector<1x512xi32>
    %c-1_i32_103 = arith.constant -1 : i32
    %134 = vector.broadcast %c-1_i32_103 : i32 to vector<1x512xi32>
    %135 = arith.addi %127, %134 : vector<1x512xi32>
    %c16_i32 = arith.constant 16 : i32
    %136 = vector.broadcast %c16_i32 : i32 to vector<1x512xi32>
    %137 = arith.cmpi slt, %135, %136 : vector<1x512xi32>
    %138 = arith.andi %133, %137 : vector<1x512xi1>
    %c-1_i32_104 = arith.constant -1 : i32
    %139 = vector.broadcast %c-1_i32_104 : i32 to vector<1x512xi32>
    %140 = arith.addi %129, %139 : vector<1x512xi32>
    %c0_i32_105 = arith.constant 0 : i32
    %141 = vector.broadcast %c0_i32_105 : i32 to vector<1x512xi32>
    %142 = arith.cmpi sge, %140, %141 : vector<1x512xi32>
    %143 = arith.andi %138, %142 : vector<1x512xi1>
    %c-1_i32_106 = arith.constant -1 : i32
    %144 = vector.broadcast %c-1_i32_106 : i32 to vector<1x512xi32>
    %145 = arith.addi %129, %144 : vector<1x512xi32>
    %c16_i32_107 = arith.constant 16 : i32
    %146 = vector.broadcast %c16_i32_107 : i32 to vector<1x512xi32>
    %147 = arith.cmpi slt, %145, %146 : vector<1x512xi32>
    %148 = arith.andi %143, %147 : vector<1x512xi1>
    %c-1_i32_108 = arith.constant -1 : i32
    %149 = vector.broadcast %c-1_i32_108 : i32 to vector<1x512xi32>
    %150 = arith.addi %127, %149 : vector<1x512xi32>
    %c0_i32_109 = arith.constant 0 : i32
    %151 = vector.broadcast %c0_i32_109 : i32 to vector<1x512xi32>
    %152 = arith.cmpi sge, %150, %151 : vector<1x512xi32>
    %c-1_i32_110 = arith.constant -1 : i32
    %153 = vector.broadcast %c-1_i32_110 : i32 to vector<1x512xi32>
    %154 = arith.addi %127, %153 : vector<1x512xi32>
    %c16_i32_111 = arith.constant 16 : i32
    %155 = vector.broadcast %c16_i32_111 : i32 to vector<1x512xi32>
    %156 = arith.cmpi slt, %154, %155 : vector<1x512xi32>
    %157 = arith.andi %152, %156 : vector<1x512xi1>
    %c0_i32_112 = arith.constant 0 : i32
    %158 = vector.broadcast %c0_i32_112 : i32 to vector<1x512xi32>
    %159 = arith.addi %129, %158 : vector<1x512xi32>
    %c0_i32_113 = arith.constant 0 : i32
    %160 = vector.broadcast %c0_i32_113 : i32 to vector<1x512xi32>
    %161 = arith.cmpi sge, %159, %160 : vector<1x512xi32>
    %162 = arith.andi %157, %161 : vector<1x512xi1>
    %c0_i32_114 = arith.constant 0 : i32
    %163 = vector.broadcast %c0_i32_114 : i32 to vector<1x512xi32>
    %164 = arith.addi %129, %163 : vector<1x512xi32>
    %c16_i32_115 = arith.constant 16 : i32
    %165 = vector.broadcast %c16_i32_115 : i32 to vector<1x512xi32>
    %166 = arith.cmpi slt, %164, %165 : vector<1x512xi32>
    %167 = arith.andi %162, %166 : vector<1x512xi1>
    %c-1_i32_116 = arith.constant -1 : i32
    %168 = vector.broadcast %c-1_i32_116 : i32 to vector<1x512xi32>
    %169 = arith.addi %127, %168 : vector<1x512xi32>
    %c0_i32_117 = arith.constant 0 : i32
    %170 = vector.broadcast %c0_i32_117 : i32 to vector<1x512xi32>
    %171 = arith.cmpi sge, %169, %170 : vector<1x512xi32>
    %c-1_i32_118 = arith.constant -1 : i32
    %172 = vector.broadcast %c-1_i32_118 : i32 to vector<1x512xi32>
    %173 = arith.addi %127, %172 : vector<1x512xi32>
    %c16_i32_119 = arith.constant 16 : i32
    %174 = vector.broadcast %c16_i32_119 : i32 to vector<1x512xi32>
    %175 = arith.cmpi slt, %173, %174 : vector<1x512xi32>
    %176 = arith.andi %171, %175 : vector<1x512xi1>
    %c1_i32 = arith.constant 1 : i32
    %177 = vector.broadcast %c1_i32 : i32 to vector<1x512xi32>
    %178 = arith.addi %129, %177 : vector<1x512xi32>
    %c0_i32_120 = arith.constant 0 : i32
    %179 = vector.broadcast %c0_i32_120 : i32 to vector<1x512xi32>
    %180 = arith.cmpi sge, %178, %179 : vector<1x512xi32>
    %181 = arith.andi %176, %180 : vector<1x512xi1>
    %c1_i32_121 = arith.constant 1 : i32
    %182 = vector.broadcast %c1_i32_121 : i32 to vector<1x512xi32>
    %183 = arith.addi %129, %182 : vector<1x512xi32>
    %c16_i32_122 = arith.constant 16 : i32
    %184 = vector.broadcast %c16_i32_122 : i32 to vector<1x512xi32>
    %185 = arith.cmpi slt, %183, %184 : vector<1x512xi32>
    %186 = arith.andi %181, %185 : vector<1x512xi1>
    %c0_i32_123 = arith.constant 0 : i32
    %187 = vector.broadcast %c0_i32_123 : i32 to vector<1x512xi32>
    %188 = arith.addi %127, %187 : vector<1x512xi32>
    %c0_i32_124 = arith.constant 0 : i32
    %189 = vector.broadcast %c0_i32_124 : i32 to vector<1x512xi32>
    %190 = arith.cmpi sge, %188, %189 : vector<1x512xi32>
    %c0_i32_125 = arith.constant 0 : i32
    %191 = vector.broadcast %c0_i32_125 : i32 to vector<1x512xi32>
    %192 = arith.addi %127, %191 : vector<1x512xi32>
    %c16_i32_126 = arith.constant 16 : i32
    %193 = vector.broadcast %c16_i32_126 : i32 to vector<1x512xi32>
    %194 = arith.cmpi slt, %192, %193 : vector<1x512xi32>
    %195 = arith.andi %190, %194 : vector<1x512xi1>
    %c-1_i32_127 = arith.constant -1 : i32
    %196 = vector.broadcast %c-1_i32_127 : i32 to vector<1x512xi32>
    %197 = arith.addi %129, %196 : vector<1x512xi32>
    %c0_i32_128 = arith.constant 0 : i32
    %198 = vector.broadcast %c0_i32_128 : i32 to vector<1x512xi32>
    %199 = arith.cmpi sge, %197, %198 : vector<1x512xi32>
    %200 = arith.andi %195, %199 : vector<1x512xi1>
    %c-1_i32_129 = arith.constant -1 : i32
    %201 = vector.broadcast %c-1_i32_129 : i32 to vector<1x512xi32>
    %202 = arith.addi %129, %201 : vector<1x512xi32>
    %c16_i32_130 = arith.constant 16 : i32
    %203 = vector.broadcast %c16_i32_130 : i32 to vector<1x512xi32>
    %204 = arith.cmpi slt, %202, %203 : vector<1x512xi32>
    %205 = arith.andi %200, %204 : vector<1x512xi1>
    %c0_i32_131 = arith.constant 0 : i32
    %206 = vector.broadcast %c0_i32_131 : i32 to vector<1x512xi32>
    %207 = arith.addi %127, %206 : vector<1x512xi32>
    %c0_i32_132 = arith.constant 0 : i32
    %208 = vector.broadcast %c0_i32_132 : i32 to vector<1x512xi32>
    %209 = arith.cmpi sge, %207, %208 : vector<1x512xi32>
    %c0_i32_133 = arith.constant 0 : i32
    %210 = vector.broadcast %c0_i32_133 : i32 to vector<1x512xi32>
    %211 = arith.addi %127, %210 : vector<1x512xi32>
    %c16_i32_134 = arith.constant 16 : i32
    %212 = vector.broadcast %c16_i32_134 : i32 to vector<1x512xi32>
    %213 = arith.cmpi slt, %211, %212 : vector<1x512xi32>
    %214 = arith.andi %209, %213 : vector<1x512xi1>
    %c0_i32_135 = arith.constant 0 : i32
    %215 = vector.broadcast %c0_i32_135 : i32 to vector<1x512xi32>
    %216 = arith.addi %129, %215 : vector<1x512xi32>
    %c0_i32_136 = arith.constant 0 : i32
    %217 = vector.broadcast %c0_i32_136 : i32 to vector<1x512xi32>
    %218 = arith.cmpi sge, %216, %217 : vector<1x512xi32>
    %219 = arith.andi %214, %218 : vector<1x512xi1>
    %c0_i32_137 = arith.constant 0 : i32
    %220 = vector.broadcast %c0_i32_137 : i32 to vector<1x512xi32>
    %221 = arith.addi %129, %220 : vector<1x512xi32>
    %c16_i32_138 = arith.constant 16 : i32
    %222 = vector.broadcast %c16_i32_138 : i32 to vector<1x512xi32>
    %223 = arith.cmpi slt, %221, %222 : vector<1x512xi32>
    %224 = arith.andi %219, %223 : vector<1x512xi1>
    %c0_i32_139 = arith.constant 0 : i32
    %225 = vector.broadcast %c0_i32_139 : i32 to vector<1x512xi32>
    %226 = arith.addi %127, %225 : vector<1x512xi32>
    %c0_i32_140 = arith.constant 0 : i32
    %227 = vector.broadcast %c0_i32_140 : i32 to vector<1x512xi32>
    %228 = arith.cmpi sge, %226, %227 : vector<1x512xi32>
    %c0_i32_141 = arith.constant 0 : i32
    %229 = vector.broadcast %c0_i32_141 : i32 to vector<1x512xi32>
    %230 = arith.addi %127, %229 : vector<1x512xi32>
    %c16_i32_142 = arith.constant 16 : i32
    %231 = vector.broadcast %c16_i32_142 : i32 to vector<1x512xi32>
    %232 = arith.cmpi slt, %230, %231 : vector<1x512xi32>
    %233 = arith.andi %228, %232 : vector<1x512xi1>
    %c1_i32_143 = arith.constant 1 : i32
    %234 = vector.broadcast %c1_i32_143 : i32 to vector<1x512xi32>
    %235 = arith.addi %129, %234 : vector<1x512xi32>
    %c0_i32_144 = arith.constant 0 : i32
    %236 = vector.broadcast %c0_i32_144 : i32 to vector<1x512xi32>
    %237 = arith.cmpi sge, %235, %236 : vector<1x512xi32>
    %238 = arith.andi %233, %237 : vector<1x512xi1>
    %c1_i32_145 = arith.constant 1 : i32
    %239 = vector.broadcast %c1_i32_145 : i32 to vector<1x512xi32>
    %240 = arith.addi %129, %239 : vector<1x512xi32>
    %c16_i32_146 = arith.constant 16 : i32
    %241 = vector.broadcast %c16_i32_146 : i32 to vector<1x512xi32>
    %242 = arith.cmpi slt, %240, %241 : vector<1x512xi32>
    %243 = arith.andi %238, %242 : vector<1x512xi1>
    %c1_i32_147 = arith.constant 1 : i32
    %244 = vector.broadcast %c1_i32_147 : i32 to vector<1x512xi32>
    %245 = arith.addi %127, %244 : vector<1x512xi32>
    %c0_i32_148 = arith.constant 0 : i32
    %246 = vector.broadcast %c0_i32_148 : i32 to vector<1x512xi32>
    %247 = arith.cmpi sge, %245, %246 : vector<1x512xi32>
    %c1_i32_149 = arith.constant 1 : i32
    %248 = vector.broadcast %c1_i32_149 : i32 to vector<1x512xi32>
    %249 = arith.addi %127, %248 : vector<1x512xi32>
    %c16_i32_150 = arith.constant 16 : i32
    %250 = vector.broadcast %c16_i32_150 : i32 to vector<1x512xi32>
    %251 = arith.cmpi slt, %249, %250 : vector<1x512xi32>
    %252 = arith.andi %247, %251 : vector<1x512xi1>
    %c-1_i32_151 = arith.constant -1 : i32
    %253 = vector.broadcast %c-1_i32_151 : i32 to vector<1x512xi32>
    %254 = arith.addi %129, %253 : vector<1x512xi32>
    %c0_i32_152 = arith.constant 0 : i32
    %255 = vector.broadcast %c0_i32_152 : i32 to vector<1x512xi32>
    %256 = arith.cmpi sge, %254, %255 : vector<1x512xi32>
    %257 = arith.andi %252, %256 : vector<1x512xi1>
    %c-1_i32_153 = arith.constant -1 : i32
    %258 = vector.broadcast %c-1_i32_153 : i32 to vector<1x512xi32>
    %259 = arith.addi %129, %258 : vector<1x512xi32>
    %c16_i32_154 = arith.constant 16 : i32
    %260 = vector.broadcast %c16_i32_154 : i32 to vector<1x512xi32>
    %261 = arith.cmpi slt, %259, %260 : vector<1x512xi32>
    %262 = arith.andi %257, %261 : vector<1x512xi1>
    %c1_i32_155 = arith.constant 1 : i32
    %263 = vector.broadcast %c1_i32_155 : i32 to vector<1x512xi32>
    %264 = arith.addi %127, %263 : vector<1x512xi32>
    %c0_i32_156 = arith.constant 0 : i32
    %265 = vector.broadcast %c0_i32_156 : i32 to vector<1x512xi32>
    %266 = arith.cmpi sge, %264, %265 : vector<1x512xi32>
    %c1_i32_157 = arith.constant 1 : i32
    %267 = vector.broadcast %c1_i32_157 : i32 to vector<1x512xi32>
    %268 = arith.addi %127, %267 : vector<1x512xi32>
    %c16_i32_158 = arith.constant 16 : i32
    %269 = vector.broadcast %c16_i32_158 : i32 to vector<1x512xi32>
    %270 = arith.cmpi slt, %268, %269 : vector<1x512xi32>
    %271 = arith.andi %266, %270 : vector<1x512xi1>
    %c0_i32_159 = arith.constant 0 : i32
    %272 = vector.broadcast %c0_i32_159 : i32 to vector<1x512xi32>
    %273 = arith.addi %129, %272 : vector<1x512xi32>
    %c0_i32_160 = arith.constant 0 : i32
    %274 = vector.broadcast %c0_i32_160 : i32 to vector<1x512xi32>
    %275 = arith.cmpi sge, %273, %274 : vector<1x512xi32>
    %276 = arith.andi %271, %275 : vector<1x512xi1>
    %c0_i32_161 = arith.constant 0 : i32
    %277 = vector.broadcast %c0_i32_161 : i32 to vector<1x512xi32>
    %278 = arith.addi %129, %277 : vector<1x512xi32>
    %c16_i32_162 = arith.constant 16 : i32
    %279 = vector.broadcast %c16_i32_162 : i32 to vector<1x512xi32>
    %280 = arith.cmpi slt, %278, %279 : vector<1x512xi32>
    %281 = arith.andi %276, %280 : vector<1x512xi1>
    %c1_i32_163 = arith.constant 1 : i32
    %282 = vector.broadcast %c1_i32_163 : i32 to vector<1x512xi32>
    %283 = arith.addi %127, %282 : vector<1x512xi32>
    %c0_i32_164 = arith.constant 0 : i32
    %284 = vector.broadcast %c0_i32_164 : i32 to vector<1x512xi32>
    %285 = arith.cmpi sge, %283, %284 : vector<1x512xi32>
    %c1_i32_165 = arith.constant 1 : i32
    %286 = vector.broadcast %c1_i32_165 : i32 to vector<1x512xi32>
    %287 = arith.addi %127, %286 : vector<1x512xi32>
    %c16_i32_166 = arith.constant 16 : i32
    %288 = vector.broadcast %c16_i32_166 : i32 to vector<1x512xi32>
    %289 = arith.cmpi slt, %287, %288 : vector<1x512xi32>
    %290 = arith.andi %285, %289 : vector<1x512xi1>
    %c1_i32_167 = arith.constant 1 : i32
    %291 = vector.broadcast %c1_i32_167 : i32 to vector<1x512xi32>
    %292 = arith.addi %129, %291 : vector<1x512xi32>
    %c0_i32_168 = arith.constant 0 : i32
    %293 = vector.broadcast %c0_i32_168 : i32 to vector<1x512xi32>
    %294 = arith.cmpi sge, %292, %293 : vector<1x512xi32>
    %295 = arith.andi %290, %294 : vector<1x512xi1>
    %c1_i32_169 = arith.constant 1 : i32
    %296 = vector.broadcast %c1_i32_169 : i32 to vector<1x512xi32>
    %297 = arith.addi %129, %296 : vector<1x512xi32>
    %c16_i32_170 = arith.constant 16 : i32
    %298 = vector.broadcast %c16_i32_170 : i32 to vector<1x512xi32>
    %299 = arith.cmpi slt, %297, %298 : vector<1x512xi32>
    %300 = arith.andi %295, %299 : vector<1x512xi1>
    %cst_171 = arith.constant 0.000000e+00 : f32
    %301 = vector.broadcast %cst_171 : f32 to vector<16x512xf32>
    %c0_172 = arith.constant 0 : index
    %c0_173 = arith.constant 0 : index
    %302 = vector.load %arg19[%c0_172, %c0_173] : memref<16x512xf32, #tpu.memory_space<vmem>>, vector<16x512xf32>
    tpu.vector_store %arg19[%c0_172, %c0_173], %301 {strides = array<i32>} : memref<16x512xf32, #tpu.memory_space<vmem>>, vector<16x512xf32>,
    %c17_i32 = arith.constant 17 : i32
    %303 = tpu.dynamic_rotate %122 by %c17_i32 dim 1 : vector<1x512xf32>, i32 -> vector<1x512xf32>
    %cst_174 = arith.constant 0.000000e+00 : f32
    %304 = vector.broadcast %cst_174 : f32 to vector<1x512xf32>
    %305 = arith.select %148, %303, %304 : vector<1x512xi1>, vector<1x512xf32>
    %c0_175 = arith.constant 0 : index
    %c0_176 = arith.constant 0 : index
    %306 = vector.load %arg19[%c0_175, %c0_176] : memref<16x512xf32, #tpu.memory_space<vmem>>, vector<1x512xf32>
    tpu.vector_store %arg19[%c0_175, %c0_176], %305 {strides = array<i32>} : memref<16x512xf32, #tpu.memory_space<vmem>>, vector<1x512xf32>,
    %c16_i32_177 = arith.constant 16 : i32
    %307 = tpu.dynamic_rotate %122 by %c16_i32_177 dim 1 : vector<1x512xf32>, i32 -> vector<1x512xf32>
    %cst_178 = arith.constant 0.000000e+00 : f32
    %308 = vector.broadcast %cst_178 : f32 to vector<1x512xf32>
    %309 = arith.select %167, %307, %308 : vector<1x512xi1>, vector<1x512xf32>
    %c1_179 = arith.constant 1 : index
    %c0_180 = arith.constant 0 : index
    %310 = vector.load %arg19[%c1_179, %c0_180] : memref<16x512xf32, #tpu.memory_space<vmem>>, vector<1x512xf32>
    tpu.vector_store %arg19[%c1_179, %c0_180], %309 {strides = array<i32>} : memref<16x512xf32, #tpu.memory_space<vmem>>, vector<1x512xf32>,
    %c15_i32_181 = arith.constant 15 : i32
    %311 = tpu.dynamic_rotate %122 by %c15_i32_181 dim 1 : vector<1x512xf32>, i32 -> vector<1x512xf32>
    %cst_182 = arith.constant 0.000000e+00 : f32
    %312 = vector.broadcast %cst_182 : f32 to vector<1x512xf32>
    %313 = arith.select %186, %311, %312 : vector<1x512xi1>, vector<1x512xf32>
    %c2_183 = arith.constant 2 : index
    %c0_184 = arith.constant 0 : index
    %314 = vector.load %arg19[%c2_183, %c0_184] : memref<16x512xf32, #tpu.memory_space<vmem>>, vector<1x512xf32>
    tpu.vector_store %arg19[%c2_183, %c0_184], %313 {strides = array<i32>} : memref<16x512xf32, #tpu.memory_space<vmem>>, vector<1x512xf32>,
    %c1_i32_185 = arith.constant 1 : i32
    %315 = tpu.dynamic_rotate %122 by %c1_i32_185 dim 1 : vector<1x512xf32>, i32 -> vector<1x512xf32>
    %cst_186 = arith.constant 0.000000e+00 : f32
    %316 = vector.broadcast %cst_186 : f32 to vector<1x512xf32>
    %317 = arith.select %205, %315, %316 : vector<1x512xi1>, vector<1x512xf32>
    %c3_187 = arith.constant 3 : index
    %c0_188 = arith.constant 0 : index
    %318 = vector.load %arg19[%c3_187, %c0_188] : memref<16x512xf32, #tpu.memory_space<vmem>>, vector<1x512xf32>
    tpu.vector_store %arg19[%c3_187, %c0_188], %317 {strides = array<i32>} : memref<16x512xf32, #tpu.memory_space<vmem>>, vector<1x512xf32>,
    %cst_189 = arith.constant 0.000000e+00 : f32
    %319 = vector.broadcast %cst_189 : f32 to vector<1x512xf32>
    %320 = arith.select %224, %122, %319 : vector<1x512xi1>, vector<1x512xf32>
    %c4_190 = arith.constant 4 : index
    %c0_191 = arith.constant 0 : index
    %321 = vector.load %arg19[%c4_190, %c0_191] : memref<16x512xf32, #tpu.memory_space<vmem>>, vector<1x512xf32>
    tpu.vector_store %arg19[%c4_190, %c0_191], %320 {strides = array<i32>} : memref<16x512xf32, #tpu.memory_space<vmem>>, vector<1x512xf32>,
    %c511_i32 = arith.constant 511 : i32
    %322 = tpu.dynamic_rotate %122 by %c511_i32 dim 1 : vector<1x512xf32>, i32 -> vector<1x512xf32>
    %cst_192 = arith.constant 0.000000e+00 : f32
    %323 = vector.broadcast %cst_192 : f32 to vector<1x512xf32>
    %324 = arith.select %243, %322, %323 : vector<1x512xi1>, vector<1x512xf32>
    %c5_193 = arith.constant 5 : index
    %c0_194 = arith.constant 0 : index
    %325 = vector.load %arg19[%c5_193, %c0_194] : memref<16x512xf32, #tpu.memory_space<vmem>>, vector<1x512xf32>
    tpu.vector_store %arg19[%c5_193, %c0_194], %324 {strides = array<i32>} : memref<16x512xf32, #tpu.memory_space<vmem>>, vector<1x512xf32>,
    %c497_i32 = arith.constant 497 : i32
    %326 = tpu.dynamic_rotate %122 by %c497_i32 dim 1 : vector<1x512xf32>, i32 -> vector<1x512xf32>
    %cst_195 = arith.constant 0.000000e+00 : f32
    %327 = vector.broadcast %cst_195 : f32 to vector<1x512xf32>
    %328 = arith.select %262, %326, %327 : vector<1x512xi1>, vector<1x512xf32>
    %c6_196 = arith.constant 6 : index
    %c0_197 = arith.constant 0 : index
    %329 = vector.load %arg19[%c6_196, %c0_197] : memref<16x512xf32, #tpu.memory_space<vmem>>, vector<1x512xf32>
    tpu.vector_store %arg19[%c6_196, %c0_197], %328 {strides = array<i32>} : memref<16x512xf32, #tpu.memory_space<vmem>>, vector<1x512xf32>,
    %c496_i32 = arith.constant 496 : i32
    %330 = tpu.dynamic_rotate %122 by %c496_i32 dim 1 : vector<1x512xf32>, i32 -> vector<1x512xf32>
    %cst_198 = arith.constant 0.000000e+00 : f32
    %331 = vector.broadcast %cst_198 : f32 to vector<1x512xf32>
    %332 = arith.select %281, %330, %331 : vector<1x512xi1>, vector<1x512xf32>
    %c7_199 = arith.constant 7 : index
    %c0_200 = arith.constant 0 : index
    %333 = vector.load %arg19[%c7_199, %c0_200] : memref<16x512xf32, #tpu.memory_space<vmem>>, vector<1x512xf32>
    tpu.vector_store %arg19[%c7_199, %c0_200], %332 {strides = array<i32>} : memref<16x512xf32, #tpu.memory_space<vmem>>, vector<1x512xf32>,
    %c495_i32 = arith.constant 495 : i32
    %334 = tpu.dynamic_rotate %122 by %c495_i32 dim 1 : vector<1x512xf32>, i32 -> vector<1x512xf32>
    %cst_201 = arith.constant 0.000000e+00 : f32
    %335 = vector.broadcast %cst_201 : f32 to vector<1x512xf32>
    %336 = arith.select %300, %334, %335 : vector<1x512xi1>, vector<1x512xf32>
    %c8_202 = arith.constant 8 : index
    %c0_203 = arith.constant 0 : index
    %337 = vector.load %arg19[%c8_202, %c0_203] : memref<16x512xf32, #tpu.memory_space<vmem>>, vector<1x512xf32>
    tpu.vector_store %arg19[%c8_202, %c0_203], %336 {strides = array<i32>} : memref<16x512xf32, #tpu.memory_space<vmem>>, vector<1x512xf32>,
    %c0_204 = arith.constant 0 : index
    %c0_205 = arith.constant 0 : index
    %338 = vector.load %arg7[%c0_204, %c0_205] : memref<16x16xf32, #tpu.memory_space<vmem>>, vector<16x16xf32>
    %c0_206 = arith.constant 0 : index
    %c0_207 = arith.constant 0 : index
    %339 = vector.load %arg19[%c0_206, %c0_207] : memref<16x512xf32, #tpu.memory_space<vmem>>, vector<16x512xf32>
    %cst_208 = arith.constant dense<0.000000e+00> : vector<16x512xf32>
    %340 = tpu.matmul %338, %339, %cst_208 {dimension_numbers = #tpu.dot_dimension_numbers<[1], [0], [0], [1], [0, 0, 1, 1], [], []>} : vector<16x16xf32>, vector<16x512xf32>, vector<16x512xf32> -> vector<16x512xf32>
    %c0_209 = arith.constant 0 : index
    %c0_210 = arith.constant 0 : index
    %341 = vector.load %arg8[%c0_209, %c0_210] : memref<16x1xf32, #tpu.memory_space<vmem>>, vector<16x1xf32>
    %342 = vector.broadcast %341 : vector<16x1xf32> to vector<16x512xf32>
    %343 = arith.addf %340, %342 : vector<16x512xf32>
    %cst_211 = arith.constant 0.000000e+00 : f32
    %344 = vector.broadcast %cst_211 : f32 to vector<16x512xf32>
    %345 = arith.subf %344, %343 : vector<16x512xf32>
    %346 = math.exp %345 : vector<16x512xf32>
    %cst_212 = arith.constant 1.000000e+00 : f32
    %347 = vector.broadcast %cst_212 : f32 to vector<16x512xf32>
    %348 = arith.addf %347, %346 : vector<16x512xf32>
    %349 = tpu.reciprocal %348 {approx = true} : vector<16x512xf32> -> vector<16x512xf32>
    %350 = arith.mulf %343, %349 : vector<16x512xf32>
    %c17_i32_213 = arith.constant 17 : i32
    %351 = tpu.dynamic_rotate %350 by %c17_i32_213 dim 1 : vector<16x512xf32>, i32 -> vector<16x512xf32>
    %cst_214 = arith.constant 0.000000e+00 : f32
    %352 = vector.shape_cast %148 : vector<1x512xi1> to vector<1x512xi1>
    %353 = vector.broadcast %352 : vector<1x512xi1> to vector<16x512xi1>
    %354 = vector.broadcast %cst_214 : f32 to vector<16x512xf32>
    %355 = arith.select %353, %351, %354 : vector<16x512xi1>, vector<16x512xf32>
    %c0_215 = arith.constant 0 : index
    %c0_216 = arith.constant 0 : index
    %356 = vector.load %arg20[%c0_215, %c0_216] : memref<144x512xf32, #tpu.memory_space<vmem>>, vector<16x512xf32>
    tpu.vector_store %arg20[%c0_215, %c0_216], %355 {strides = array<i32>} : memref<144x512xf32, #tpu.memory_space<vmem>>, vector<16x512xf32>,
    %c16_i32_217 = arith.constant 16 : i32
    %357 = tpu.dynamic_rotate %350 by %c16_i32_217 dim 1 : vector<16x512xf32>, i32 -> vector<16x512xf32>
    %cst_218 = arith.constant 0.000000e+00 : f32
    %358 = vector.shape_cast %167 : vector<1x512xi1> to vector<1x512xi1>
    %359 = vector.broadcast %358 : vector<1x512xi1> to vector<16x512xi1>
    %360 = vector.broadcast %cst_218 : f32 to vector<16x512xf32>
    %361 = arith.select %359, %357, %360 : vector<16x512xi1>, vector<16x512xf32>
    %c16_219 = arith.constant 16 : index
    %c0_220 = arith.constant 0 : index
    %362 = vector.load %arg20[%c16_219, %c0_220] : memref<144x512xf32, #tpu.memory_space<vmem>>, vector<16x512xf32>
    tpu.vector_store %arg20[%c16_219, %c0_220], %361 {strides = array<i32>} : memref<144x512xf32, #tpu.memory_space<vmem>>, vector<16x512xf32>,
    %c15_i32_221 = arith.constant 15 : i32
    %363 = tpu.dynamic_rotate %350 by %c15_i32_221 dim 1 : vector<16x512xf32>, i32 -> vector<16x512xf32>
    %cst_222 = arith.constant 0.000000e+00 : f32
    %364 = vector.shape_cast %186 : vector<1x512xi1> to vector<1x512xi1>
    %365 = vector.broadcast %364 : vector<1x512xi1> to vector<16x512xi1>
    %366 = vector.broadcast %cst_222 : f32 to vector<16x512xf32>
    %367 = arith.select %365, %363, %366 : vector<16x512xi1>, vector<16x512xf32>
    %c32_223 = arith.constant 32 : index
    %c0_224 = arith.constant 0 : index
    %368 = vector.load %arg20[%c32_223, %c0_224] : memref<144x512xf32, #tpu.memory_space<vmem>>, vector<16x512xf32>
    tpu.vector_store %arg20[%c32_223, %c0_224], %367 {strides = array<i32>} : memref<144x512xf32, #tpu.memory_space<vmem>>, vector<16x512xf32>,
    %c1_i32_225 = arith.constant 1 : i32
    %369 = tpu.dynamic_rotate %350 by %c1_i32_225 dim 1 : vector<16x512xf32>, i32 -> vector<16x512xf32>
    %cst_226 = arith.constant 0.000000e+00 : f32
    %370 = vector.shape_cast %205 : vector<1x512xi1> to vector<1x512xi1>
    %371 = vector.broadcast %370 : vector<1x512xi1> to vector<16x512xi1>
    %372 = vector.broadcast %cst_226 : f32 to vector<16x512xf32>
    %373 = arith.select %371, %369, %372 : vector<16x512xi1>, vector<16x512xf32>
    %c48_227 = arith.constant 48 : index
    %c0_228 = arith.constant 0 : index
    %374 = vector.load %arg20[%c48_227, %c0_228] : memref<144x512xf32, #tpu.memory_space<vmem>>, vector<16x512xf32>
    tpu.vector_store %arg20[%c48_227, %c0_228], %373 {strides = array<i32>} : memref<144x512xf32, #tpu.memory_space<vmem>>, vector<16x512xf32>,
    %cst_229 = arith.constant 0.000000e+00 : f32
    %375 = vector.shape_cast %224 : vector<1x512xi1> to vector<1x512xi1>
    %376 = vector.broadcast %375 : vector<1x512xi1> to vector<16x512xi1>
    %377 = vector.broadcast %cst_229 : f32 to vector<16x512xf32>
    %378 = arith.select %376, %350, %377 : vector<16x512xi1>, vector<16x512xf32>
    %c64_230 = arith.constant 64 : index
    %c0_231 = arith.constant 0 : index
    %379 = vector.load %arg20[%c64_230, %c0_231] : memref<144x512xf32, #tpu.memory_space<vmem>>, vector<16x512xf32>
    tpu.vector_store %arg20[%c64_230, %c0_231], %378 {strides = array<i32>} : memref<144x512xf32, #tpu.memory_space<vmem>>, vector<16x512xf32>,
    %c511_i32_232 = arith.constant 511 : i32
    %380 = tpu.dynamic_rotate %350 by %c511_i32_232 dim 1 : vector<16x512xf32>, i32 -> vector<16x512xf32>
    %cst_233 = arith.constant 0.000000e+00 : f32
    %381 = vector.shape_cast %243 : vector<1x512xi1> to vector<1x512xi1>
    %382 = vector.broadcast %381 : vector<1x512xi1> to vector<16x512xi1>
    %383 = vector.broadcast %cst_233 : f32 to vector<16x512xf32>
    %384 = arith.select %382, %380, %383 : vector<16x512xi1>, vector<16x512xf32>
    %c80_234 = arith.constant 80 : index
    %c0_235 = arith.constant 0 : index
    %385 = vector.load %arg20[%c80_234, %c0_235] : memref<144x512xf32, #tpu.memory_space<vmem>>, vector<16x512xf32>
    tpu.vector_store %arg20[%c80_234, %c0_235], %384 {strides = array<i32>} : memref<144x512xf32, #tpu.memory_space<vmem>>, vector<16x512xf32>,
    %c497_i32_236 = arith.constant 497 : i32
    %386 = tpu.dynamic_rotate %350 by %c497_i32_236 dim 1 : vector<16x512xf32>, i32 -> vector<16x512xf32>
    %cst_237 = arith.constant 0.000000e+00 : f32
    %387 = vector.shape_cast %262 : vector<1x512xi1> to vector<1x512xi1>
    %388 = vector.broadcast %387 : vector<1x512xi1> to vector<16x512xi1>
    %389 = vector.broadcast %cst_237 : f32 to vector<16x512xf32>
    %390 = arith.select %388, %386, %389 : vector<16x512xi1>, vector<16x512xf32>
    %c96_238 = arith.constant 96 : index
    %c0_239 = arith.constant 0 : index
    %391 = vector.load %arg20[%c96_238, %c0_239] : memref<144x512xf32, #tpu.memory_space<vmem>>, vector<16x512xf32>
    tpu.vector_store %arg20[%c96_238, %c0_239], %390 {strides = array<i32>} : memref<144x512xf32, #tpu.memory_space<vmem>>, vector<16x512xf32>,
    %c496_i32_240 = arith.constant 496 : i32
    %392 = tpu.dynamic_rotate %350 by %c496_i32_240 dim 1 : vector<16x512xf32>, i32 -> vector<16x512xf32>
    %cst_241 = arith.constant 0.000000e+00 : f32
    %393 = vector.shape_cast %281 : vector<1x512xi1> to vector<1x512xi1>
    %394 = vector.broadcast %393 : vector<1x512xi1> to vector<16x512xi1>
    %395 = vector.broadcast %cst_241 : f32 to vector<16x512xf32>
    %396 = arith.select %394, %392, %395 : vector<16x512xi1>, vector<16x512xf32>
    %c112_242 = arith.constant 112 : index
    %c0_243 = arith.constant 0 : index
    %397 = vector.load %arg20[%c112_242, %c0_243] : memref<144x512xf32, #tpu.memory_space<vmem>>, vector<16x512xf32>
    tpu.vector_store %arg20[%c112_242, %c0_243], %396 {strides = array<i32>} : memref<144x512xf32, #tpu.memory_space<vmem>>, vector<16x512xf32>,
    %c495_i32_244 = arith.constant 495 : i32
    %398 = tpu.dynamic_rotate %350 by %c495_i32_244 dim 1 : vector<16x512xf32>, i32 -> vector<16x512xf32>
    %cst_245 = arith.constant 0.000000e+00 : f32
    %399 = vector.shape_cast %300 : vector<1x512xi1> to vector<1x512xi1>
    %400 = vector.broadcast %399 : vector<1x512xi1> to vector<16x512xi1>
    %401 = vector.broadcast %cst_245 : f32 to vector<16x512xf32>
    %402 = arith.select %400, %398, %401 : vector<16x512xi1>, vector<16x512xf32>
    %c128_246 = arith.constant 128 : index
    %c0_247 = arith.constant 0 : index
    %403 = vector.load %arg20[%c128_246, %c0_247] : memref<144x512xf32, #tpu.memory_space<vmem>>, vector<16x512xf32>
    tpu.vector_store %arg20[%c128_246, %c0_247], %402 {strides = array<i32>} : memref<144x512xf32, #tpu.memory_space<vmem>>, vector<16x512xf32>,
    %c0_248 = arith.constant 0 : index
    %c0_249 = arith.constant 0 : index
    %404 = vector.load %arg9[%c0_248, %c0_249] : memref<8x144xf32, #tpu.memory_space<vmem>>, vector<8x144xf32>
    %c0_250 = arith.constant 0 : index
    %c0_251 = arith.constant 0 : index
    %405 = vector.load %arg20[%c0_250, %c0_251] : memref<144x512xf32, #tpu.memory_space<vmem>>, vector<144x512xf32>
    %cst_252 = arith.constant dense<0.000000e+00> : vector<8x512xf32>
    %406 = tpu.matmul %404, %405, %cst_252 {dimension_numbers = #tpu.dot_dimension_numbers<[1], [0], [0], [1], [0, 0, 1, 1], [], []>} : vector<8x144xf32>, vector<144x512xf32>, vector<8x512xf32> -> vector<8x512xf32>
    %407 = vector.extract_strided_slice %406 {offsets = [0, 0], sizes = [1, 512], strides = [1, 1]} : vector<8x512xf32> to vector<1x512xf32>
    %c0_253 = arith.constant 0 : index
    %c0_254 = arith.constant 0 : index
    %408 = vector.load %arg10[%c0_253, %c0_254] : memref<1x1xf32, #tpu.memory_space<vmem>>, vector<1x1xf32>
    %409 = vector.broadcast %408 : vector<1x1xf32> to vector<1x512xf32>
    %410 = arith.addf %407, %409 : vector<1x512xf32>
    %cst_255 = arith.constant 0.000000e+00 : f32
    %411 = vector.broadcast %cst_255 : f32 to vector<1x512xf32>
    %412 = arith.subf %411, %410 : vector<1x512xf32>
    %413 = math.exp %412 : vector<1x512xf32>
    %cst_256 = arith.constant 1.000000e+00 : f32
    %414 = vector.broadcast %cst_256 : f32 to vector<1x512xf32>
    %415 = arith.addf %414, %413 : vector<1x512xf32>
    %416 = tpu.reciprocal %415 {approx = true} : vector<1x512xf32> -> vector<1x512xf32>
    %417 = arith.mulf %410, %416 : vector<1x512xf32>
    %cst_257 = arith.constant 0.000000e+00 : f32
    %418 = vector.broadcast %cst_257 : f32 to vector<8x256xf32>
    %c0_258 = arith.constant 0 : index
    %c0_259 = arith.constant 0 : index
    %419 = vector.load %arg21[%c0_258, %c0_259] : memref<8x256xf32, #tpu.memory_space<vmem>>, vector<8x256xf32>
    tpu.vector_store %arg21[%c0_258, %c0_259], %418 {strides = array<i32>} : memref<8x256xf32, #tpu.memory_space<vmem>>, vector<8x256xf32>,
    %420 = vector.extract_strided_slice %417 {offsets = [0, 0], sizes = [1, 256], strides = [1, 1]} : vector<1x512xf32> to vector<1x256xf32>
    %c0_260 = arith.constant 0 : index
    %c0_261 = arith.constant 0 : index
    %421 = vector.load %arg21[%c0_260, %c0_261] : memref<8x256xf32, #tpu.memory_space<vmem>>, vector<1x256xf32>
    tpu.vector_store %arg21[%c0_260, %c0_261], %420 {strides = array<i32>} : memref<8x256xf32, #tpu.memory_space<vmem>>, vector<1x256xf32>,
    %422 = vector.extract_strided_slice %417 {offsets = [0, 256], sizes = [1, 256], strides = [1, 1]} : vector<1x512xf32> to vector<1x256xf32>
    %c1_262 = arith.constant 1 : index
    %c0_263 = arith.constant 0 : index
    %423 = vector.load %arg21[%c1_262, %c0_263] : memref<8x256xf32, #tpu.memory_space<vmem>>, vector<1x256xf32>
    tpu.vector_store %arg21[%c1_262, %c0_263], %422 {strides = array<i32>} : memref<8x256xf32, #tpu.memory_space<vmem>>, vector<1x256xf32>,
    %c0_264 = arith.constant 0 : index
    %c0_265 = arith.constant 0 : index
    %424 = vector.load %arg21[%c0_264, %c0_265] : memref<8x256xf32, #tpu.memory_space<vmem>>, vector<8x256xf32>
    %c0_266 = arith.constant 0 : index
    %c0_267 = arith.constant 0 : index
    %425 = vector.load %arg11[%c0_266, %c0_267] : memref<256x32xf32, #tpu.memory_space<vmem>>, vector<256x32xf32>
    %cst_268 = arith.constant dense<0.000000e+00> : vector<8x32xf32>
    %426 = tpu.matmul %424, %425, %cst_268 {dimension_numbers = #tpu.dot_dimension_numbers<[1], [0], [0], [1], [0, 0, 1, 1], [], []>} : vector<8x256xf32>, vector<256x32xf32>, vector<8x32xf32> -> vector<8x32xf32>
    %c0_269 = arith.constant 0 : index
    %c0_270 = arith.constant 0 : index
    %427 = vector.load %arg12[%c0_269, %c0_270] : memref<1x32xf32, #tpu.memory_space<vmem>>, vector<1x32xf32>
    %428 = vector.broadcast %427 : vector<1x32xf32> to vector<8x32xf32>
    %429 = arith.addf %426, %428 : vector<8x32xf32>
    %cst_271 = arith.constant 0.000000e+00 : f32
    %430 = vector.broadcast %cst_271 : f32 to vector<8x32xf32>
    %431 = arith.subf %430, %429 : vector<8x32xf32>
    %432 = math.exp %431 : vector<8x32xf32>
    %cst_272 = arith.constant 1.000000e+00 : f32
    %433 = vector.broadcast %cst_272 : f32 to vector<8x32xf32>
    %434 = arith.addf %433, %432 : vector<8x32xf32>
    %435 = tpu.reciprocal %434 {approx = true} : vector<8x32xf32> -> vector<8x32xf32>
    %436 = arith.mulf %429, %435 : vector<8x32xf32>
    %c0_273 = arith.constant 0 : index
    %c0_274 = arith.constant 0 : index
    %437 = vector.load %arg13[%c0_273, %c0_274] : memref<32x16xf32, #tpu.memory_space<vmem>>, vector<32x16xf32>
    %cst_275 = arith.constant dense<0.000000e+00> : vector<8x16xf32>
    %438 = tpu.matmul %436, %437, %cst_275 {dimension_numbers = #tpu.dot_dimension_numbers<[1], [0], [0], [1], [0, 0, 1, 1], [], []>} : vector<8x32xf32>, vector<32x16xf32>, vector<8x16xf32> -> vector<8x16xf32>
    %c0_276 = arith.constant 0 : index
    %c0_277 = arith.constant 0 : index
    %439 = vector.load %arg14[%c0_276, %c0_277] : memref<1x16xf32, #tpu.memory_space<vmem>>, vector<1x16xf32>
    %440 = vector.broadcast %439 : vector<1x16xf32> to vector<8x16xf32>
    %441 = arith.addf %438, %440 : vector<8x16xf32>
    %cst_278 = arith.constant 0.000000e+00 : f32
    %442 = vector.broadcast %cst_278 : f32 to vector<8x16xf32>
    %443 = arith.subf %442, %441 : vector<8x16xf32>
    %444 = math.exp %443 : vector<8x16xf32>
    %cst_279 = arith.constant 1.000000e+00 : f32
    %445 = vector.broadcast %cst_279 : f32 to vector<8x16xf32>
    %446 = arith.addf %445, %444 : vector<8x16xf32>
    %447 = tpu.reciprocal %446 {approx = true} : vector<8x16xf32> -> vector<8x16xf32>
    %448 = arith.mulf %441, %447 : vector<8x16xf32>
    %cst_280 = arith.constant dense<0xFF800000> : vector<8xf32>
    %449 = vector.multi_reduction <maximumf>, %448, %cst_280 [1] : vector<8x16xf32> to vector<8xf32>
    %450 = vector.shape_cast %449 : vector<8xf32> to vector<8x1xf32>
    %451 = vector.broadcast %450 : vector<8x1xf32> to vector<8x16xf32>
    %452 = arith.subf %448, %451 : vector<8x16xf32>
    %453 = math.exp %452 : vector<8x16xf32>
    %cst_281 = arith.constant dense<0.000000e+00> : vector<8xf32>
    %454 = vector.multi_reduction <add>, %453, %cst_281 [1] : vector<8x16xf32> to vector<8xf32>
    %455 = vector.shape_cast %454 : vector<8xf32> to vector<8x1xf32>
    %456 = vector.broadcast %455 : vector<8x1xf32> to vector<8x16xf32>
    %457 = arith.divf %453, %456 : vector<8x16xf32>
    %458 = vector.extract_strided_slice %457 {offsets = [0, 0], sizes = [2, 16], strides = [1, 1]} : vector<8x16xf32> to vector<2x16xf32>
    %c0_282 = arith.constant 0 : index
    %c0_283 = arith.constant 0 : index
    %459 = vector.load %arg15[%c0_282, %c0_283] : memref<2x16xf32, #tpu.memory_space<vmem>>, vector<2x16xf32>
    tpu.vector_store %arg15[%c0_282, %c0_283], %458 {strides = array<i32>} : memref<2x16xf32, #tpu.memory_space<vmem>>, vector<2x16xf32>,
    return
  }
}

</mosaic_0001>

<bundles_post_ra>
// kernel: proportion_matrix_net.1
= control target key start
LH: loop header
LB: loop body
LE: loop exit
PB: predicated region body
PF: predicated region fallthrough
CT: control target
= control target key end

     0   :  { %s5935_s0 = inlined_call_operand.hbm [shape: f32[32,16], index: 0, kind: input, shape index: {}]   ;;  %s5936_s1 = inlined_call_operand.hbm [shape: f32[16,48], index: 1, kind: input, shape index: {}]   ;;  %s5937_s2 = inlined_call_operand.hbm [shape: f32[1,48], index: 2, kind: input, shape index: {}]   ;;  %s5938_s3 = inlined_call_operand.hbm [shape: f32[16,16], index: 3, kind: input, shape index: {}]   ;;  %s5939_s4 = inlined_call_operand.hbm [shape: f32[1,16], index: 4, kind: input, shape index: {}]   ;;  %s5940_s5 = inlined_call_operand.hbm [shape: f32[16,16], index: 5, kind: input, shape index: {}]   ;;  %s5941_s6 = inlined_call_operand.hbm [shape: f32[1,16], index: 6, kind: input, shape index: {}]   ;;  %s5942_s7 = inlined_call_operand.hbm [shape: f32[16,16], index: 7, kind: input, shape index: {}]   ;;  %s5943_s8 = inlined_call_operand.hbm [shape: f32[16,1], index: 8, kind: input, shape index: {}]   ;;  %s5944_s9 = inlined_call_operand.vmem [shape: f32[8,144], index: 9, kind: input, shape index: {}]   ;;  %s5945_s10 = inlined_call_operand.<no memory space> [shape: f32[1,1], index: 10, kind: input, shape index: {}]   ;;  %s5946_s11 = inlined_call_operand.hbm [shape: f32[256,32], index: 11, kind: input, shape index: {}]   ;;  %s5947_s12 = inlined_call_operand.hbm [shape: f32[1,32], index: 12, kind: input, shape index: {}]   ;;  %s5948_s13 = inlined_call_operand.vmem [shape: f32[32,16], index: 13, kind: input, shape index: {}]   ;;  %s5949_s14 = inlined_call_operand.vmem [shape: f32[1,16], index: 14, kind: input, shape index: {}]   ;;  %s5950_s15 = inlined_call_operand.hbm [shape: f32[2,16], index: 15, kind: output, shape index: {}]  }
   0x1   :  { %v20_v0 = vstv %s5945_s10 }
   0x2   :  { %21 = vst [vmem:[#allocation8] sm:$0x1] %v20_v0 }
   0x3   :  { %22 = vsyncpa [#allocation10], 0 }
   0x4   :  { %23 = vsyncpa [#allocation13], 0 }
   0x5   :  { %24 = vsyncpa [#allocation16], 0 }
   0x6   :  { %25 = vsyncpa [#allocation19], 0 }
   0x7   :  { %26 = vsyncpa [#allocation22], 0 }
   0x8   :  { %27 = vsyncpa [#allocation25], 0 }
   0x9   :  { %28 = vsyncpa [#allocation11], 0  ;;  %s4400_s20 = smov [#allocation12]   ;;  %s4401_s22 = smov [#allocation15]  }
   0xa   :  { %s46_s21 = sshll.u32 %s4400_s20, 4  ;;  %s68_s23 = sshll.u32 %s4401_s22, 4  ;;  %s47_s21 = int_to_ptr.vmem [resolvable:$true] %s46_s21  ;;  %s4515_s23 = int_to_ptr.vmem [resolvable:$true] %s68_s23 }
   0xb   :  { %s4122_s26 = scalar_lea.hbm %s5936_s1, 256 }
   0xc   :  { %p4123_p0 = scmp.ne.s32.totalorder %s5936_s1, %s4122_s26  ;;  %p4126_p1 = scmp.lt.u32.totalorder %s4122_s26, %s5936_s1 }
   0xe   :  { %p4128_p2 = pnand %p4126_p1, %p4123_p0 }
  0x10   :  { %4131 = shalt.err (!%p4128_p2)
}
  0x11   :  { %s4132_s30 = scalar_lea.vmem %s47_s21, 256  ;;  %p4137_p4 = scmp.lt.s32.totalorder %s47_s21, %s47_s21 }
  0x12   :  { %p4133_p3 = scmp.ne.s32.totalorder %s47_s21, %s4132_s30  ;;  %p4138_p5 = scmp.lt.s32.totalorder %s4132_s30, %s4132_s30 }
  0x14   :  { %p4139_p6 = por %p4138_p5, %p4137_p4 }
  0x16   :  { %p4140_p7 = pnand %p4139_p6, %p4133_p3 }
  0x18   :  { %4143 = shalt.err (!%p4140_p7)
}
  0x19   :  { %s4402_s16 = smov 128   ;;  %s4403_s17 = smov 8  }
  0x1a   :  { %52 = dma.hbm_to_vmem [thread:$0]  %s5936_s1, 256, %s47_s21, [#allocation13], %s4402_s16, %s4402_s16, %s4403_s17  }
  0x1b   :  { %s4144_s24 = scalar_lea.hbm %s5938_s3, 256 }
  0x1c   :  { %p4145_p8 = scmp.ne.s32.totalorder %s5938_s3, %s4144_s24  ;;  %p4148_p9 = scmp.lt.u32.totalorder %s4144_s24, %s5938_s3 }
  0x1e   :  { %p4150_p10 = pnand %p4148_p9, %p4145_p8 }
  0x20   :  { %4153 = shalt.err (!%p4150_p10)
}
  0x21   :  { %s4154_s28 = scalar_lea.vmem %s4515_s23, 256  ;;  %p4159_p12 = scmp.lt.s32.totalorder %s4515_s23, %s4515_s23 }
  0x22   :  { %p4155_p11 = scmp.ne.s32.totalorder %s4515_s23, %s4154_s28  ;;  %p4160_p13 = scmp.lt.s32.totalorder %s4154_s28, %s4154_s28 }
  0x24   :  { %p4161_p0 = por %p4160_p13, %p4159_p12 }
  0x26   :  { %p4162_p1 = pnand %p4161_p0, %p4155_p11 }
  0x28   :  { %4165 = shalt.err (!%p4162_p1)
}
  0x29   :  { %74 = dma.hbm_to_vmem [thread:$0]  %s5938_s3, 256, %s4515_s23, [#allocation16], %s4402_s16, %s4402_s16, %s4403_s17  }
  0x2a   :  { %s4404_s29 = smov [#allocation18]   ;;  %s4405_s18 = smov [#allocation21]  }
  0x2b   :  { %s90_s30 = sshll.u32 %s4404_s29, 4  ;;  %s112_s19 = sshll.u32 %s4405_s18, 4  ;;  %s91_s30 = int_to_ptr.vmem [resolvable:$true] %s90_s30  ;;  %s4552_s19 = int_to_ptr.vmem [resolvable:$true] %s112_s19 }
  0x2c   :  { %s4166_s24 = scalar_lea.hbm %s5940_s5, 256 }
  0x2d   :  { %p4167_p2 = scmp.ne.s32.totalorder %s5940_s5, %s4166_s24  ;;  %p4170_p3 = scmp.lt.u32.totalorder %s4166_s24, %s5940_s5 }
  0x2f   :  { %p4172_p4 = pnand %p4170_p3, %p4167_p2 }
  0x31   :  { %4175 = shalt.err (!%p4172_p4)
}
  0x32   :  { %s4176_s3 = scalar_lea.vmem %s91_s30, 256  ;;  %p4181_p6 = scmp.lt.s32.totalorder %s91_s30, %s91_s30 }
  0x33   :  { %p4177_p5 = scmp.ne.s32.totalorder %s91_s30, %s4176_s3  ;;  %p4182_p7 = scmp.lt.s32.totalorder %s4176_s3, %s4176_s3 }
  0x35   :  { %p4183_p8 = por %p4182_p7, %p4181_p6 }
  0x37   :  { %p4184_p9 = pnand %p4183_p8, %p4177_p5 }
  0x39   :  { %4187 = shalt.err (!%p4184_p9)
}
  0x3a   :  { %96 = dma.hbm_to_vmem [thread:$0]  %s5940_s5, 256, %s91_s30, [#allocation19], %s4402_s16, %s4402_s16, %s4403_s17  }
  0x3b   :  { %s4188_s29 = scalar_lea.hbm %s5942_s7, 256 }
  0x3c   :  { %p4189_p10 = scmp.ne.s32.totalorder %s5942_s7, %s4188_s29  ;;  %p4192_p11 = scmp.lt.u32.totalorder %s4188_s29, %s5942_s7 }
  0x3e   :  { %p4194_p12 = pnand %p4192_p11, %p4189_p10 }
  0x40   :  { %4197 = shalt.err (!%p4194_p12)
}
  0x41   :  { %s4198_s25 = scalar_lea.vmem %s4552_s19, 256  ;;  %p4203_p0 = scmp.lt.s32.totalorder %s4552_s19, %s4552_s19 }
  0x42   :  { %p4199_p13 = scmp.ne.s32.totalorder %s4552_s19, %s4198_s25  ;;  %p4204_p1 = scmp.lt.s32.totalorder %s4198_s25, %s4198_s25 }
  0x44   :  { %p4205_p2 = por %p4204_p1, %p4203_p0 }
  0x46   :  { %p4206_p3 = pnand %p4205_p2, %p4199_p13 }
  0x48   :  { %4209 = shalt.err (!%p4206_p3)
}
  0x49   :  { %118 = dma.hbm_to_vmem [thread:$0]  %s5942_s7, 256, %s4552_s19, [#allocation22], %s4402_s16, %s4402_s16, %s4403_s17  }
  0x4a   :  { %s4406_s26 = smov [#allocation24]   ;;  %s4407_s27 = smov [#allocation9]  }
  0x4b   :  { %s140_s10 = sshll.u32 %s4406_s26, 4  ;;  %s34_s3 = sshll.u32 %s4407_s27, 4  ;;  %s141_s10 = int_to_ptr.vmem [resolvable:$true] %s140_s10  ;;  %s4589_s3 = int_to_ptr.vmem [resolvable:$true] %s34_s3 }
  0x4c   :  { %s4210_s1 = scalar_lea.hbm %s5946_s11, 4096 }
  0x4d   :  { %p4211_p4 = scmp.ne.s32.totalorder %s5946_s11, %s4210_s1  ;;  %p4214_p5 = scmp.lt.u32.totalorder %s4210_s1, %s5946_s11 }
  0x4f   :  { %p4216_p6 = pnand %p4214_p5, %p4211_p4 }
  0x51   :  { %4219 = shalt.err (!%p4216_p6)
}
  0x52   :  { %s4220_s7 = scalar_lea.vmem %s141_s10, 4096  ;;  %p4225_p8 = scmp.lt.s32.totalorder %s141_s10, %s141_s10 }
  0x53   :  { %p4221_p7 = scmp.ne.s32.totalorder %s141_s10, %s4220_s7  ;;  %p4226_p9 = scmp.lt.s32.totalorder %s4220_s7, %s4220_s7 }
  0x55   :  { %p4227_p10 = por %p4226_p9, %p4225_p8 }
  0x57   :  { %p4228_p11 = pnand %p4227_p10, %p4221_p7 }
  0x59   :  { %4231 = shalt.err (!%p4228_p11)
}
  0x5a   :  { %146 = dma.hbm_to_vmem [thread:$0]  %s5946_s11, 4096, %s141_s10, [#allocation25], %s4402_s16, %s4402_s16, %s4403_s17  }
  0x5b   :  { %s4232_s5 = scalar_lea.hbm %s5935_s0, 512 }
  0x5c   :  { %p4233_p12 = scmp.ne.s32.totalorder %s5935_s0, %s4232_s5  ;;  %p4236_p13 = scmp.lt.u32.totalorder %s4232_s5, %s5935_s0 }
  0x5e   :  { %p4238_p0 = pnand %p4236_p13, %p4233_p12 }
  0x60   :  { %4241 = shalt.err (!%p4238_p0)
}
  0x61   :  { %s4242_s28 = scalar_lea.vmem %s4589_s3, 512  ;;  %p4247_p2 = scmp.lt.s32.totalorder %s4589_s3, %s4589_s3 }
  0x62   :  { %p4243_p1 = scmp.ne.s32.totalorder %s4589_s3, %s4242_s28  ;;  %p4248_p3 = scmp.lt.s32.totalorder %s4242_s28, %s4242_s28 }
  0x64   :  { %p4249_p4 = por %p4248_p3, %p4247_p2 }
  0x66   :  { %p4250_p5 = pnand %p4249_p4, %p4243_p1 }
  0x68   :  { %4253 = shalt.err (!%p4250_p5)
}
  0x69   :  { %40 = dma.hbm_to_vmem [thread:$0]  %s5935_s0, 512, %s4589_s3, [#allocation10], %s4402_s16, %s4402_s16, %s4403_s17  }
  0x6a   :  { %s4408_s1 = smov [#allocation14]   ;;  %s4409_s29 = smov [#allocation17]  }
  0x6b   :  { %s59_s21 = sshll.u32 %s4408_s1, 4  ;;  %s81_s18 = sshll.u32 %s4409_s29, 4  ;;  %s60_s21 = int_to_ptr.vmem [resolvable:$true] %s59_s21  ;;  %s82_s18 = int_to_ptr.vmem [resolvable:$true] %s81_s18 }
  0x6c   :  { %s4254_s19 = scalar_lea.hbm %s5937_s2, 16 }
  0x6d   :  { %p4255_p6 = scmp.ne.s32.totalorder %s5937_s2, %s4254_s19  ;;  %p4258_p7 = scmp.lt.u32.totalorder %s4254_s19, %s5937_s2 }
  0x6f   :  { %p4260_p8 = pnand %p4258_p7, %p4255_p6 }
  0x71   :  { %4263 = shalt.err (!%p4260_p8)
}
  0x72   :  { %s4264_s0 = scalar_lea.vmem %s60_s21, 16  ;;  %s4268_s3 = scalar_lea.vmem %s60_s21, 32 }
  0x73   :  { %p4265_p9 = scmp.ne.s32.totalorder %s60_s21, %s4264_s0  ;;  %p4269_p10 = scmp.lt.s32.totalorder %s60_s21, %s60_s21 }
  0x74   :  { %p4270_p11 = scmp.lt.s32.totalorder %s4268_s3, %s4264_s0 }
  0x76   :  { %p4271_p12 = por %p4270_p11, %p4269_p10 }
  0x78   :  { %p4272_p13 = pnand %p4271_p12, %p4265_p9 }
  0x7a   :  { %4275 = shalt.err (!%p4272_p13)
}
  0x7b   :  { %62 = dma.hbm_to_vmem [thread:$0]  %s5937_s2, 16, %s60_s21, [#allocation13]  }
  0x7c   :  { %s4276_s28 = scalar_lea.hbm %s5939_s4, 16 }
  0x7d   :  { %p4277_p0 = scmp.ne.s32.totalorder %s5939_s4, %s4276_s28  ;;  %p4280_p1 = scmp.lt.u32.totalorder %s4276_s28, %s5939_s4 }
  0x7f   :  { %p4282_p2 = pnand %p4280_p1, %p4277_p0 }
  0x81   :  { %4285 = shalt.err (!%p4282_p2)
}
  0x82   :  { %s4286_s20 = scalar_lea.vmem %s82_s18, 16  ;;  %s4290_s7 = scalar_lea.vmem %s82_s18, 32 }
  0x83   :  { %p4287_p3 = scmp.ne.s32.totalorder %s82_s18, %s4286_s20  ;;  %p4291_p4 = scmp.lt.s32.totalorder %s82_s18, %s82_s18 }
  0x84   :  { %p4292_p5 = scmp.lt.s32.totalorder %s4290_s7, %s4286_s20 }
  0x86   :  { %p4293_p6 = por %p4292_p5, %p4291_p4 }
  0x88   :  { %p4294_p7 = pnand %p4293_p6, %p4287_p3 }
  0x8a   :  { %4297 = shalt.err (!%p4294_p7)
}
  0x8b   :  { %84 = dma.hbm_to_vmem [thread:$0]  %s5939_s4, 16, %s82_s18, [#allocation16]  }
  0x8c   :  { %s4410_s19 = smov [#allocation20]   ;;  %s4411_s24 = smov [#allocation23]  }
  0x8d   :  { %s103_s22 = sshll.u32 %s4410_s19, 4  ;;  %s124_s25 = sshll.u32 %s4411_s24, 4  ;;  %s104_s22 = int_to_ptr.vmem [resolvable:$true] %s103_s22  ;;  %s4650_s25 = int_to_ptr.vmem [resolvable:$true] %s124_s25 }
  0x8e   :  { %s4298_s3 = scalar_lea.hbm %s5941_s6, 16 }
  0x8f   :  { %p4299_p8 = scmp.ne.s32.totalorder %s5941_s6, %s4298_s3  ;;  %p4302_p9 = scmp.lt.u32.totalorder %s4298_s3, %s5941_s6 }
  0x91   :  { %p4304_p10 = pnand %p4302_p9, %p4299_p8 }
  0x93   :  { %4307 = shalt.err (!%p4304_p10)
}
  0x94   :  { %s4308_s4 = scalar_lea.vmem %s104_s22, 16  ;;  %s4312_s18 = scalar_lea.vmem %s104_s22, 32 }
  0x95   :  { %p4309_p11 = scmp.ne.s32.totalorder %s104_s22, %s4308_s4  ;;  %p4313_p12 = scmp.lt.s32.totalorder %s104_s22, %s104_s22 }
  0x96   :  { %p4314_p13 = scmp.lt.s32.totalorder %s4312_s18, %s4308_s4 }
  0x98   :  { %p4315_p0 = por %p4314_p13, %p4313_p12 }
  0x9a   :  { %p4316_p1 = pnand %p4315_p0, %p4309_p11 }
  0x9c   :  { %4319 = shalt.err (!%p4316_p1)
}
  0x9d   :  { %106 = dma.hbm_to_vmem [thread:$0]  %s5941_s6, 16, %s104_s22, [#allocation19]  }
  0x9e   :  { %s4320_s29 = scalar_lea.hbm %s5943_s8, 256 }
  0x9f   :  { %p4321_p2 = scmp.ne.s32.totalorder %s5943_s8, %s4320_s29  ;;  %p4324_p3 = scmp.lt.u32.totalorder %s4320_s29, %s5943_s8 }
  0xa1   :  { %p4326_p4 = pnand %p4324_p3, %p4321_p2 }
  0xa3   :  { %4329 = shalt.err (!%p4326_p4)
}
  0xa4   :  { %s4330_s19 = scalar_lea.vmem %s4650_s25, 256  ;;  %p4335_p6 = scmp.lt.s32.totalorder %s4650_s25, %s4650_s25 }
  0xa5   :  { %p4331_p5 = scmp.ne.s32.totalorder %s4650_s25, %s4330_s19  ;;  %p4336_p7 = scmp.lt.s32.totalorder %s4330_s19, %s4330_s19 }
  0xa7   :  { %p4337_p8 = por %p4336_p7, %p4335_p6 }
  0xa9   :  { %p4338_p9 = pnand %p4337_p8, %p4331_p5 }
  0xab   :  { %4341 = shalt.err (!%p4338_p9)
}
  0xac   :  { %130 = dma.hbm_to_vmem [thread:$0]  %s5943_s8, 256, %s4650_s25, [#allocation22], %s4402_s16, %s4402_s16, %s4403_s17  }
  0xad   :  { %s4412_s24 = smov [#allocation26]   ;;  %s4342_s30 = scalar_lea.hbm %s5947_s12, 16 }
  0xae   :  { %s153_s5 = sshll.u32 %s4412_s24, 4  ;;  %p4343_p10 = scmp.ne.s32.totalorder %s5947_s12, %s4342_s30  ;;  %s154_s5 = int_to_ptr.vmem [resolvable:$true] %s153_s5 }
  0xaf   :  { %p4346_p11 = scmp.lt.u32.totalorder %s4342_s30, %s5947_s12 }
  0xb1   :  { %p4348_p12 = pnand %p4346_p11, %p4343_p10 }
  0xb3   :  { %4351 = shalt.err (!%p4348_p12)
}
  0xb4   :  { %s4352_s18 = scalar_lea.vmem %s154_s5, 16  ;;  %s4356_s8 = scalar_lea.vmem %s154_s5, 32 }
  0xb5   :  { %p4353_p13 = scmp.ne.s32.totalorder %s154_s5, %s4352_s18  ;;  %p4357_p0 = scmp.lt.s32.totalorder %s154_s5, %s154_s5 }
  0xb6   :  { %p4358_p1 = scmp.lt.s32.totalorder %s4356_s8, %s4352_s18 }
  0xb8   :  { %p4359_p2 = por %p4358_p1, %p4357_p0 }
  0xba   :  { %p4360_p3 = pnand %p4359_p2, %p4353_p13 }
  0xbc   :  { %4363 = shalt.err (!%p4360_p3)
}
  0xbd   :  { %156 = dma.hbm_to_vmem [thread:$0]  %s5947_s12, 16, %s154_s5, [#allocation25]  }
  0xbe   :  { %4386 = dma.done.wait [#allocation10], 512  }
  0xbf   :  { %4387 = vsyncadd [#allocation10], 4294966784 }
  0xc0   :  { %4388 = dma.done.wait [#allocation13], 272  }
  0xc1   :  { %4389 = vsyncadd [#allocation13], 4294967024 }
  0xc2   :  { %4390 = dma.done.wait [#allocation16], 272  }
  0xc3   :  { %4391 = vsyncadd [#allocation16], 4294967024 }
  0xc4   :  { %4392 = dma.done.wait [#allocation19], 272  }
  0xc5   :  { %4393 = vsyncadd [#allocation19], 4294967024 }
  0xc6   :  { %4394 = dma.done.wait [#allocation22], 512  }
  0xc7   :  { %4395 = vsyncadd [#allocation22], 4294966784 }
  0xc8   :  { %4396 = dma.done.wait [#allocation25], 4112  }
  0xc9   :  { %4397 = vsyncadd [#allocation25], 4294963184  ;;  %vm5951_vm0 = vcmask 130048   ;;  %v198_v1 = vld [vmem:[#allocation12] sm:$0xff]  ;;  %v199_v2 = vld [vmem:[#allocation12 + $0x8] sm:$0xff]  ;;  %s4413_s12 = smov 112  }
  0xca   :  { %v4696_v3 = vld [vmem:[#allocation9] sm:$0xff]  ;;  %v3630_v4 = vpack.c.bf16 %v199_v2, %v198_v1  ;;  %v4700_v5 = vld [vmem:[#allocation9 + $0x8] sm:$0xff]  ;;  %v4704_v6 = vld [vmem:[#allocation9 + $0x10] sm:$0xff]  ;;  %s4414_s25 = smov 96   ;;  %s4416_s28 = smov 32  }
  0xcb   :  { %3565 = vmatprep.mubr.msk.f32.mxu1 %vm5951_vm0, %v4696_v3  ;;  %v4708_v7 = vld [vmem:[#allocation9 + $0x18] sm:$0xff]  ;;  %v3351_v8 = vld [vmem:[#allocation14] ss:$0 sm:$0xff]  ;;  %vm4716_vm1 = vmpackc.low %vm5951_vm0, %vm5951_vm0  ;;  %s4417_s11 = smov 16   ;;  %s4418_s10 = smov 48  }
  0xcc   :  { %3631 = vmatprep.subr.bf16.mxu1 %v3630_v4  ;;  %s4419_s1 = smov 64   ;;  %s4420_s29 = smov 80  }
  0xcd   :  { %3633 = vmatpush3.bf16.msra.mxu1 %v3630_v4  ;;  %s4422_s20 = smov 17   ;;  %s4423_s7 = smov 15  }
  0xce   :  { %s4424_s2 = smov 1   ;;  %s4425_s21 = smov 127  }
  0xcf   :  { %s4426_s19 = smov 113   ;;  %s4427_s6 = smov 111  }
  0xd0   :  { %3566 = vmatmul.mubr.msk.f32.vlgmr.msra.gmra.mrb[0].mxu1 %vm5951_vm0, %v4700_v5 }
  0xd1   :  { %3568 = vmatprep.mubr.msk.f32.mxu1 %vm5951_vm0, %v4704_v6 }
  0xd4   :  { %3569 = vmatmul.mubr.msk.f32.gmra.mrb[2].mxu1 %vm5951_vm0, %v4708_v7 }
 0x1a3   :  { %v3567_v9 = vpop.f32.mrb[0].mxu1 }
 0x1a4   :  { %v292_v10 = vadd.f32 %v3567_v9, %v3351_v8  ;;  %v286_v11 = vpop.f32.mrb[1].mxu1 }
 0x1a5   :  { %v287_v12 = vadd.f32 %v3351_v8, %v286_v11  ;;  %v709_v11 = vld [vmem:[#allocation15] sm:$0xff] }
 0x1a7   :  { %3575 = vmatprep.mubr.msk.f32.mxu1 %vm5951_vm0, %v287_v12  ;;  %v3848_v13 = vpack.i.bf16 %v292_v10, %v287_v12  ;;  %v3570_v14 = vpop.f32.mrb[2].mxu1  ;;  %v710_v12 = vld [vmem:[#allocation15 + $0x8] sm:$0xff] }
 0x1a8   :  { %v296_v15 = vpop.f32.mrb[3].mxu1  ;;  %v302_v39 = vadd.f32 %v3570_v14, %v3351_v8 }
 0x1a9   :  { %3849 = vrot.lane.b32.xlu0 %v3848_v13, %s4413_s12  ;;  %v297_v40 = vadd.f32 %v3351_v8, %v296_v15 }
 0x1ab   :  { %v3858_v41 = vpack.i.bf16 %v302_v39, %v297_v40 }
 0x21b   :  { %v3850_v16 = vpop.permute.xlu0 %3849 }
 0x21c   :  { %v3852_v17 = vunpack.i.h.bf16 %v3850_v16  ;;  %v3851_v18 = vunpack.i.l.bf16 %v3850_v16  ;;  %v3654_v16 = vpack.c.bf16 %v710_v12, %v709_v11 }
 0x21e   :  { %v3634_v20 = vpack.c.bf16 %v3852_v17, %v3851_v18 }
 0x220   :  { %3636 = vmatprep.subr.msk.bf16.mxu1 %vm4716_vm1, %v3634_v20 }
 0x221   :  { %3639 = vmatpush3.bf16.xpose.msk.msra.mxu1 %vm4716_vm1, %v3634_v20 }
 0x228   :  { %3576 = vmatmul.mubr.msk.f32.vlgmr.msra.gmra.mrb[4].mxu1 %vm5951_vm0, %v292_v10 }
 0x2fb   :  { %v3577_v21 = vpop.f32.mrb[4].mxu1 }
 0x2fc   :  { %v385_v22 = vpop.f32.mrb[5].mxu1  ;;  %v397_v23 = vsel %vm5951_vm0, %v3577_v21, -inf }
 0x2fd   :  { %398 = vmax.xlane.f32.xlu1 %v397_v23  ;;  %v394_v24 = vsel %vm5951_vm0, %v385_v22, -inf  ;;  %v815_v23 = vld [vmem:[#allocation18] sm:$0xff] }
 0x2fe   :  { %395 = vmax.xlane.f32.xlu0 %v394_v24  ;;  %v816_v24 = vld [vmem:[#allocation18 + $0x8] sm:$0xff] }
 0x30e   :  { %3854 = vrot.lane.b32.xlu1 %v3848_v13, %s4414_s25 }
 0x38a   :  { %v399_v25 = vpop.xlane.xlu1 %398 }
 0x38b   :  { %v401_v26 = vsub.f32 %v3577_v21, %v399_v25  ;;  %v396_v27 = vpop.xlane.xlu0 %395  ;;  %v3658_v25 = vpack.c.bf16 %v816_v24, %v815_v23 }
 0x38c   :  { %v400_v28 = vsub.f32 %v385_v22, %v396_v27 }
 0x38d   :  { %v404_v29 = vmul.f32 1.442695, %v401_v26 }
 0x38e   :  { %v402_v30 = vmul.f32 1.442695, %v400_v28  ;;  %v3855_v31 = vpop.permute.xlu1 %3854  ;;  %v3368_v28 = vld [vmem:[#allocation17] ss:$0 sm:$0xff] }
 0x38f   :  { %4030 = vpow2.f32 %v404_v29  ;;  %v3857_v32 = vunpack.i.h.bf16 %v3855_v31  ;;  %v3856_v33 = vunpack.i.l.bf16 %v3855_v31 }
 0x390   :  { %4032 = vpow2.f32 %v402_v30 }
 0x391   :  { %v3640_v34 = vpack.c.bf16 %v3857_v32, %v3856_v33 }
 0x393   :  { %3641 = vmatprep.subr.bf16.mxu1 %v3640_v34 }
 0x394   :  { %3643 = vmatpush3.bf16.msra.mxu1 %v3640_v34 }
 0x399   :  { %v4031_v35 = vpop.eup %4030 }
 0x39a   :  { %v409_v36 = vsel %vm5951_vm0, %v4031_v35, 0.0  ;;  %v4033_v37 = vpop.eup %4032 }
 0x39b   :  { %410 = vadd.xlane.f32.xlu1 %v409_v36  ;;  %v406_v38 = vsel %vm5951_vm0, %v4033_v37, 0.0 }
 0x39f   :  { %407 = vadd.xlane.f32.xlu1 %v406_v38 }
 0x3b0   :  { %3859 = vrot.lane.b32.xlu1 %v3858_v41, %s4413_s12 }
 0x428   :  { %v411_v42 = vpop.xlane.xlu1 %410 }
 0x429   :  { %4034 = vrcp.f32 %v411_v42 }
 0x42c   :  { %v408_v43 = vpop.xlane.xlu1 %407 }
 0x42d   :  { %4036 = vrcp.f32 %v408_v43 }
 0x430   :  { %v3860_v44 = vpop.permute.xlu1 %3859 }
 0x431   :  { %v3862_v45 = vunpack.i.h.bf16 %v3860_v44  ;;  %v3861_v46 = vunpack.i.l.bf16 %v3860_v44 }
 0x433   :  { %v3644_v47 = vpack.c.bf16 %v3862_v45, %v3861_v46  ;;  %v4035_v48 = vpop.eup %4034 }
 0x434   :  { %v415_v51 = vmul.f32 %v4035_v48, %v4031_v35  ;;  %v4756_v35 = vld [vmem:[#allocation20] ss:$0 sm:$0xff] }
 0x435   :  { %3646 = vmatprep.subr.msk.bf16.mxu1 %vm4716_vm1, %v3644_v47 }
 0x437   :  { %v4037_v49 = vpop.eup %4036 }
 0x438   :  { %v414_v50 = vmul.f32 %v4037_v49, %v4033_v37 }
 0x43a   :  { %3582 = vmatprep.mubr.msk.f32.mxu1 %vm5951_vm0, %v414_v50 }
 0x43b   :  { %3583 = vmatmul.mubr.msk.f32.vlgmr.msra.gmra.mrb[6].mxu1 %vm5951_vm0, %v415_v51 }
 0x43c   :  { %3649 = vmatpush3.bf16.xpose.msk.msra.mxu1 %vm4716_vm1, %v3644_v47  ;;  %3589 = vmatprep.mubr.msk.f32.mxu1 %vm5951_vm0, %v297_v40 }
 0x43d   :  { %3659 = vmatprep.subr.bf16.mxu1 %v3658_v25 }
 0x443   :  { %3590 = vmatmul.mubr.msk.f32.vlgmr.msra.gmra.mrb[8].mxu1 %vm5951_vm0, %v302_v39 }
 0x444   :  { %3661 = vmatpush3.bf16.msra.mxu1 %v3658_v25 }
 0x50e   :  { %v3584_v52 = vpop.f32.mrb[6].mxu1 }
 0x50f   :  { %504 = vst.msk [vmem:[#allocation2 + $0x8] sm:$0xff] %vm5951_vm0, %v3584_v52  ;;  %v494_v53 = vpop.f32.mrb[7].mxu1 }
 0x510   :  { %503 = vst.msk [vmem:[#allocation2] sm:$0xff] %vm5951_vm0, %v494_v53 }
 0x516   :  { %v3591_v54 = vpop.f32.mrb[8].mxu1  ;;  %v706_v22 = vld [vmem:[#allocation2 + $0x8] sm:$0xff] }
 0x517   :  { %v585_v55 = vpop.f32.mrb[9].mxu1  ;;  %v597_v56 = vsel %vm5951_vm0, %v3591_v54, -inf  ;;  %v705_v21 = vld [vmem:[#allocation2] sm:$0xff] }
 0x518   :  { %598 = vmax.xlane.f32.xlu0 %v597_v56  ;;  %v594_v57 = vsel %vm5951_vm0, %v585_v55, -inf  ;;  %v4415_v56 = vmov 1966171168  }
 0x519   :  { %595 = vmax.xlane.f32.xlu1 %v594_v57  ;;  %v969_v57 = vunpack.c.l.s4 %v4415_v56 }
 0x5a5   :  { %v599_v58 = vpop.xlane.xlu0 %598 }
 0x5a6   :  { %v601_v59 = vsub.f32 %v3591_v54, %v599_v58  ;;  %v596_v60 = vpop.xlane.xlu1 %595 }
 0x5a7   :  { %v600_v61 = vsub.f32 %v585_v55, %v596_v60  ;;  %v6002_v55 = vlaneseq }
 0x5a8   :  { %v604_v62 = vmul.f32 1.442695, %v601_v59 }
 0x5a9   :  { %v602_v63 = vmul.f32 1.442695, %v600_v61  ;;  %v970_v61 = vunpack.c.0.s8 %v969_v57  ;;  %vm4773_vm2 = vcmp.lt.s32.totalorder %v6002_v55, 16  ;;  %vm978_vm3 = vcmp.ge.s32.totalorder %v6002_v55, 16 }
 0x5aa   :  { %4038 = vpow2.f32 %v604_v62  ;;  %v4766_v62 = vshrl.u32 %v6002_v55, 7  ;;  %vm979_vm4 = vcmp.lt.s32.totalorder %v6002_v55, 32  ;;  %vm1001_vm5 = vcmp.ge.s32.totalorder %v6002_v55, 32 }
 0x5ab   :  { %4040 = vpow2.f32 %v602_v63  ;;  %vm1002_vm6 = vcmp.lt.s32.totalorder %v6002_v55, 48  ;;  %vm4811_vm7 = vmand %vm978_vm3, %vm979_vm4  ;;  %vm1024_vm8 = vcmp.ge.s32.totalorder %v6002_v55, 48  ;;  %vm1025_vm9 = vcmp.lt.s32.totalorder %v6002_v55, 64 }
 0x5ac   :  { %6015 = vst [vmem:[#allocation35_spill] sm:$0xff] %v4766_v62  ;;  %v4770_v63 = vsub.s32 %v970_v61, %v4766_v62  ;;  %vm4817_vm10 = vmand %vm1001_vm5, %vm1002_vm6  ;;  %vm1047_vm12 = vcmp.ge.s32.totalorder %v6002_v55, 64  ;;  %vm1048_vm13 = vcmp.lt.s32.totalorder %v6002_v55, 80  ;;  %vm1070_vm15 = vcmp.ge.s32.totalorder %v6002_v55, 80 }
 0x5ad   :  { %vm4823_vm11 = vmand %vm1024_vm8, %vm1025_vm9  ;;  %vm1071_vm1 = vcmp.lt.s32.totalorder %v6002_v55, 96  ;;  %vm1093_vm4 = vcmp.ge.s32.totalorder %v6002_v55, 96  ;;  %vm1094_vm5 = vcmp.lt.s32.totalorder %v6002_v55, 112  ;;  %vm1116_vm8 = vcmp.ge.s32.totalorder %v6002_v55, 112 }
 0x5ae   :  { %6016 = vst [vmem:[#allocation36_spill] sm:$0xff] %v4770_v63  ;;  %vm4833_vm14 = vmand %vm1047_vm12, %vm1048_vm13  ;;  %vm1117_vm9 = vcmp.lt.s32.totalorder %v6002_v55, 128 }
 0x5af   :  { %vm4841_vm3 = vmand %vm1070_vm15, %vm1071_vm1 }
 0x5b0   :  { %vm4849_vm6 = vmand %vm1093_vm4, %vm1094_vm5 }
 0x5b1   :  { %vm4865_vm12 = vmand %vm1116_vm8, %vm1117_vm9  ;;  %vm5026_vm8 = vcmp.lt.s32.totalorder %v6002_v55, 512 }
 0x5b4   :  { %v4039_v0 = vpop.eup %4038 }
 0x5b5   :  { %v609_v1 = vsel %vm5951_vm0, %v4039_v0, 0.0  ;;  %v4041_v2 = vpop.eup %4040 }
 0x5b6   :  { %610 = vadd.xlane.f32.xlu0 %v609_v1  ;;  %v606_v4 = vsel %vm5951_vm0, %v4041_v2, 0.0 }
 0x5ba   :  { %607 = vadd.xlane.f32.xlu0 %v606_v4 }
 0x5d0   :  { %3864 = vrot.lane.b32.xlu0 %v3858_v41, %s4414_s25 }
 0x643   :  { %v611_v8 = vpop.xlane.xlu0 %610 }
 0x644   :  { %4042 = vrcp.f32 %v611_v8 }
 0x647   :  { %v608_v9 = vpop.xlane.xlu0 %607 }
 0x648   :  { %4044 = vrcp.f32 %v608_v9 }
 0x64b   :  { %v3865_v10 = vpop.permute.xlu0 %3864 }
 0x64c   :  { %v3867_v13 = vunpack.i.h.bf16 %v3865_v10  ;;  %v3866_v14 = vunpack.i.l.bf16 %v3865_v10 }
 0x64e   :  { %v3650_v15 = vpack.c.bf16 %v3867_v13, %v3866_v14  ;;  %v4043_v17 = vpop.eup %4042 }
 0x64f   :  { %v615_v20 = vmul.f32 %v4043_v17, %v4039_v0 }
 0x650   :  { %3651 = vmatprep.subr.bf16.mxu0 %v3650_v15 }
 0x651   :  { %3653 = vmatpush3.bf16.msra.mxu0 %v3650_v15 }
 0x652   :  { %v4045_v18 = vpop.eup %4044  ;;  %3655 = vmatprep.subr.bf16.mxu0 %v3654_v16 }
 0x653   :  { %v614_v19 = vmul.f32 %v4045_v18, %v4041_v2 }
 0x655   :  { %3596 = vmatprep.mubr.msk.f32.mxu0 %vm5951_vm0, %v614_v19 }
 0x656   :  { %3597 = vmatmul.mubr.msk.f32.vlgmr.msra.gmra.mrb[0].mxu0 %vm5951_vm0, %v615_v20 }
 0x657   :  { %3657 = vmatpush3.bf16.msra.mxu0 %v3654_v16  ;;  %3603 = vmatprep.mubr.msk.f32.mxu0 %vm5951_vm0, %v705_v21 }
 0x65a   :  { %3604 = vmatmul.mubr.msk.f32.vlgmr.msra.gmra.mrb[2].mxu0 %vm5951_vm0, %v706_v22 }
 0x729   :  { %v3598_v26 = vpop.f32.mrb[0].mxu0 }
 0x72a   :  { %704 = vst.msk [vmem:[#allocation2 + $0x18] sm:$0xff] %vm5951_vm0, %v3598_v26  ;;  %v694_v27 = vpop.f32.mrb[1].mxu0 }
 0x72b   :  { %703 = vst.msk [vmem:[#allocation2 + $0x10] sm:$0xff] %vm5951_vm0, %v694_v27 }
 0x72d   :  { %v3605_v29 = vpop.f32.mrb[2].mxu0 }
 0x72e   :  { %v796_v30 = vpop.f32.mrb[3].mxu0  ;;  %v802_v32 = vadd.f32 %v3605_v29, %v3368_v28 }
 0x72f   :  { %v797_v31 = vadd.f32 %v3368_v28, %v796_v30 }
 0x731   :  { %3613 = vmatprep.mubr.msk.f32.mxu1 %vm5951_vm0, %v797_v31  ;;  %v708_v34 = vld [vmem:[#allocation2 + $0x18] sm:$0xff] }
 0x732   :  { %3614 = vmatmul.mubr.msk.f32.vlgmr.msra.gmra.mrb[10].mxu1 %vm5951_vm0, %v802_v32  ;;  %v707_v33 = vld [vmem:[#allocation2 + $0x10] sm:$0xff] }
 0x733   :  { %3606 = vmatprep.mubr.msk.f32.mxu0 %vm5951_vm0, %v707_v33 }
 0x734   :  { %3607 = vmatmul.mubr.msk.f32.gmra.mrb[4].mxu0 %vm5951_vm0, %v708_v34 }
 0x805   :  { %v3615_v36 = vpop.f32.mrb[10].mxu1 }
 0x806   :  { %v908_v37 = vadd.f32 %v3615_v36, %v4756_v35  ;;  %v902_v38 = vpop.f32.mrb[11].mxu1 }
 0x807   :  { %v903_v39 = vadd.f32 %v4756_v35, %v902_v38  ;;  %v3608_v40 = vpop.f32.mrb[4].mxu0 }
 0x808   :  { %v922_v41 = vsub.f32 0.0, %v908_v37  ;;  %v806_v42 = vpop.f32.mrb[5].mxu0  ;;  %v812_v46 = vadd.f32 %v3608_v40, %v3368_v28 }
 0x809   :  { %v921_v43 = vsub.f32 0.0, %v903_v39  ;;  %v807_v44 = vadd.f32 %v3368_v28, %v806_v42 }
 0x80a   :  { %v927_v45 = vmul.f32 1.442695, %v922_v41 }
 0x80b   :  { %v925_v47 = vmul.f32 1.442695, %v921_v43  ;;  %3616 = vmatprep.mubr.msk.f32.mxu1 %vm5951_vm0, %v807_v44  ;;  %v6003_v44 = vsub.s32 0, %v4766_v62 }
 0x80c   :  { %4046 = vpow2.f32 %v927_v45  ;;  %3617 = vmatmul.mubr.msk.f32.gmra.mrb[12].mxu1 %vm5951_vm0, %v812_v46 }
 0x80d   :  { %4048 = vpow2.f32 %v925_v47 }
 0x816   :  { %v4047_v48 = vpop.eup %4046 }
 0x817   :  { %v4049_v49 = vpop.eup %4048  ;;  %v934_v50 = vadd.f32 1.0, %v4047_v48 }
 0x818   :  { %v933_v51 = vadd.f32 1.0, %v4049_v49 }
 0x819   :  { %4050 = vrcp.f32 %v934_v50  ;;  %v1731_v50 = vsub.s32 2, %v4766_v62 }
 0x81a   :  { %4052 = vrcp.f32 %v933_v51 }
 0x823   :  { %v4051_v52 = vpop.eup %4050 }
 0x824   :  { %v4053_v53 = vpop.eup %4052  ;;  %v942_v54 = vmul.f32 %v4051_v52, %v908_v37 }
 0x825   :  { %v941_v58 = vmul.f32 %v4053_v53, %v903_v39 }
 0x826   :  { %v946_v59 = vadd.f32 %v942_v54, %v4700_v5 }
 0x827   :  { %v945_v60 = vadd.f32 %v941_v58, %v4696_v3 }
 0x828   :  { %950 = vst.msk [vmem:[#allocation3 + $0x8] sm:$0xff] %vm5951_vm0, %v946_v59 }
 0x829   :  { %949 = vst.msk [vmem:[#allocation3] sm:$0xff] %vm5951_vm0, %v945_v60 }
 0x82f   :  { %v3386_v1 = vld.sshfl [vmem:[#allocation3 + $0xa] sm:$0x1 pattern:$0x75316420]  ;;  %v1120_v5 = vld [vmem:[#allocation3 + $0x8] sm:$0x1] }
 0x830   :  { %v1157_v3 = vrot.slane %v3386_v1, %v4770_v63  ;;  %v3385_v2 = vld.sshfl [vmem:[#allocation3 + $0x9] sm:$0x1 pattern:$0x75316420]  ;;  %1121 = vst.msk [vmem:[#allocation4 + $0x1] sm:$0x1] %vm4773_vm2, %v1120_v5 }
 0x831   :  { %v953_v4 = vld [vmem:[#allocation3] sm:$0x1]  ;;  %v1137_v8 = vrot.slane %v3385_v2, %v4770_v63  ;;  %v3387_v9 = vld.sshfl [vmem:[#allocation3 + $0xb] sm:$0x1 pattern:$0x75316420] }
 0x832   :  { %958 = vst.msk [vmem:[#allocation4] sm:$0x1] %vm4773_vm2, %v953_v4  ;;  %1158 = vrot.lane.b32.xlu0 %v1157_v3, %s4416_s28  ;;  %v3380_v10 = vld.sshfl [vmem:[#allocation3 + $0x3] sm:$0x1 pattern:$0x75316420]  ;;  %v1177_v11 = vrot.slane %v3387_v9, %v4770_v63 }
 0x833   :  { %1138 = vrot.lane.b32.xlu1 %v1137_v8, %s4417_s11  ;;  %v1020_v12 = vrot.slane %v3380_v10, %v4770_v63  ;;  %v3388_v13 = vld.sshfl [vmem:[#allocation3 + $0xc] sm:$0x1 pattern:$0x75316420] }
 0x834   :  { %v3381_v14 = vld.sshfl [vmem:[#allocation3 + $0x4] sm:$0x1 pattern:$0x75316420]  ;;  %v1197_v15 = vrot.slane %v3388_v13, %v4770_v63 }
 0x835   :  { %v1043_v16 = vrot.slane %v3381_v14, %v4770_v63  ;;  %v3389_v17 = vld.sshfl [vmem:[#allocation3 + $0xd] sm:$0x1 pattern:$0x75316420] }
 0x836   :  { %1178 = vrot.lane.b32.xlu0 %v1177_v11, %s4418_s10  ;;  %v3382_v18 = vld.sshfl [vmem:[#allocation3 + $0x5] sm:$0x1 pattern:$0x75316420]  ;;  %v1217_v19 = vrot.slane %v3389_v17, %v4770_v63 }
 0x837   :  { %1021 = vrot.lane.b32.xlu1 %v1020_v12, %s4418_s10  ;;  %v1066_v20 = vrot.slane %v3382_v18, %v4770_v63  ;;  %v3390_v21 = vld.sshfl [vmem:[#allocation3 + $0xe] sm:$0x1 pattern:$0x75316420] }
 0x838   :  { %v3383_v22 = vld.sshfl [vmem:[#allocation3 + $0x6] sm:$0x1 pattern:$0x75316420]  ;;  %v1237_v23 = vrot.slane %v3390_v21, %v4770_v63 }
 0x839   :  { %v1089_v24 = vrot.slane %v3383_v22, %v4770_v63  ;;  %v3378_v25 = vld.sshfl [vmem:[#allocation3 + $0x1] sm:$0x1 pattern:$0x75316420] }
 0x83a   :  { %1198 = vrot.lane.b32.xlu0 %v1197_v15, %s4419_s1  ;;  %v3384_v26 = vld.sshfl [vmem:[#allocation3 + $0x7] sm:$0x1 pattern:$0x75316420]  ;;  %v974_v27 = vrot.slane %v3378_v25, %v4770_v63 }
 0x83b   :  { %1044 = vrot.lane.b32.xlu1 %v1043_v16, %s4419_s1  ;;  %v1112_v28 = vrot.slane %v3384_v26, %v4770_v63  ;;  %v3379_v29 = vld.sshfl [vmem:[#allocation3 + $0x2] sm:$0x1 pattern:$0x75316420] }
 0x83c   :  { %v997_v30 = vrot.slane %v3379_v29, %v4770_v63 }
 0x83e   :  { %1218 = vrot.lane.b32.xlu0 %v1217_v19, %s4420_s29 }
 0x83f   :  { %1067 = vrot.lane.b32.xlu1 %v1066_v20, %s4420_s29 }
 0x842   :  { %1238 = vrot.lane.b32.xlu0 %v1237_v23, %s4414_s25 }
 0x843   :  { %1090 = vrot.lane.b32.xlu1 %v1089_v24, %s4414_s25 }
 0x846   :  { %975 = vrot.lane.b32.xlu0 %v974_v27, %s4417_s11 }
 0x847   :  { %1113 = vrot.lane.b32.xlu1 %v1112_v28, %s4413_s12 }
 0x84a   :  { %998 = vrot.lane.b32.xlu0 %v997_v30, %s4416_s28 }
 0x8a4   :  { %v1159_v32 = vpop.permute.xlu0 %1158 }
 0x8a5   :  { %v1139_v34 = vpop.permute.xlu1 %1138 }
 0x8a6   :  { %1141 = vst.msk [vmem:[#allocation4 + $0x1] sm:$0x1] %vm4811_vm7, %v1139_v34 }
 0x8a7   :  { %1161 = vst.msk [vmem:[#allocation4 + $0x1] sm:$0x1] %vm4817_vm10, %v1159_v32 }
 0x8a8   :  { %v1179_v37 = vpop.permute.xlu0 %1178 }
 0x8a9   :  { %1181 = vst.msk [vmem:[#allocation4 + $0x1] sm:$0x1] %vm4823_vm11, %v1179_v37  ;;  %v1022_v38 = vpop.permute.xlu1 %1021 }
 0x8ac   :  { %v1199_v40 = vpop.permute.xlu0 %1198 }
 0x8ad   :  { %1201 = vst.msk [vmem:[#allocation4 + $0x1] sm:$0x1] %vm4833_vm14, %v1199_v40  ;;  %v1045_v42 = vpop.permute.xlu1 %1044 }
 0x8b0   :  { %v1219_v43 = vpop.permute.xlu0 %1218 }
 0x8b1   :  { %1221 = vst.msk [vmem:[#allocation4 + $0x1] sm:$0x1] %vm4841_vm3, %v1219_v43  ;;  %v1068_v46 = vpop.permute.xlu1 %1067 }
 0x8b4   :  { %v1239_v45 = vpop.permute.xlu0 %1238 }
 0x8b5   :  { %1241 = vst.msk [vmem:[#allocation4 + $0x1] sm:$0x1] %vm4849_vm6, %v1239_v45  ;;  %v1091_v48 = vpop.permute.xlu1 %1090 }
 0x8b8   :  { %v976_v47 = vpop.permute.xlu0 %975 }
 0x8b9   :  { %981 = vst.msk [vmem:[#allocation4] sm:$0x1] %vm4811_vm7, %v976_v47  ;;  %v1114_v51 = vpop.permute.xlu1 %1113  ;;  %v6001_v47 = vmov 0.0  }
 0x8ba   :  { %1712 = vst [vmem:[#allocation5] sm:$0xff] %v6001_v47  ;;  %1713 = vst [vmem:[#allocation5 + $0x8] sm:$0xff] %v6001_v47  ;;  %2262 = vmatprep.mubr.f32.mxu0 %v6001_v47  ;;  %2339 = vmatprep.mubr.f32.mxu1 %v6001_v47 }
 0x8bb   :  { %1714 = vst [vmem:[#allocation5 + $0x10] sm:$0xff] %v6001_v47  ;;  %1715 = vst [vmem:[#allocation5 + $0x18] sm:$0xff] %v6001_v47 }
 0x8bc   :  { %v999_v49 = vpop.permute.xlu0 %998  ;;  %1716 = vst [vmem:[#allocation5 + $0x20] sm:$0xff] %v6001_v47  ;;  %1717 = vst [vmem:[#allocation5 + $0x28] sm:$0xff] %v6001_v47 }
 0x8bd   :  { %1004 = vst.msk [vmem:[#allocation4] sm:$0x1] %vm4817_vm10, %v999_v49  ;;  %1718 = vst [vmem:[#allocation5 + $0x30] sm:$0xff] %v6001_v47 }
 0x8be   :  { %1027 = vst.msk [vmem:[#allocation4] sm:$0x1] %vm4823_vm11, %v1022_v38  ;;  %1719 = vst [vmem:[#allocation5 + $0x38] sm:$0xff] %v6001_v47 }
 0x8bf   :  { %1050 = vst.msk [vmem:[#allocation4] sm:$0x1] %vm4833_vm14, %v1045_v42  ;;  %v3391_v42 = vld.sshfl [vmem:[#allocation3 + $0xf] sm:$0x1 pattern:$0x75316420] }
 0x8c0   :  { %1073 = vst.msk [vmem:[#allocation4] sm:$0x1] %vm4841_vm3, %v1068_v46  ;;  %v1257_v43 = vrot.slane %v3391_v42, %v4770_v63  ;;  %3065 = vst [vmem:[#allocation7] sm:$0xff] %v6001_v47 }
 0x8c1   :  { %1096 = vst.msk [vmem:[#allocation4] sm:$0x1] %vm4849_vm6, %v1091_v48  ;;  %3066 = vst [vmem:[#allocation7 + $0x8] sm:$0xff] %v6001_v47 }
 0x8c2   :  { %1119 = vst.msk [vmem:[#allocation4] sm:$0x1] %vm4865_vm12, %v1114_v51 }
 0x8df   :  { %v3618_v52 = vpop.f32.mrb[12].mxu1 }
 0x8e0   :  { %v918_v53 = vadd.f32 %v3618_v52, %v4756_v35  ;;  %v912_v54 = vpop.f32.mrb[13].mxu1 }
 0x8e1   :  { %v913_v56 = vadd.f32 %v4756_v35, %v912_v54 }
 0x8e2   :  { %v924_v57 = vsub.f32 0.0, %v918_v53 }
 0x8e3   :  { %v923_v58 = vsub.f32 0.0, %v913_v56 }
 0x8e4   :  { %v931_v59 = vmul.f32 1.442695, %v924_v57 }
 0x8e5   :  { %v929_v60 = vmul.f32 1.442695, %v923_v58 }
 0x8e6   :  { %4054 = vpow2.f32 %v931_v59  ;;  %v4938_v59 = vand.u32 127, %v6002_v55 }
 0x8e7   :  { %4056 = vpow2.f32 %v929_v60 }
 0x8f0   :  { %v4055_v61 = vpop.eup %4054 }
 0x8f1   :  { %v4057_v1 = vpop.eup %4056  ;;  %v936_v5 = vadd.f32 1.0, %v4055_v61  ;;  %v4943_v61 = vadd.s32 128, %v4938_v59 }
 0x8f2   :  { %v935_v3 = vadd.f32 1.0, %v4057_v1 }
 0x8f3   :  { %4058 = vrcp.f32 %v936_v5 }
 0x8f4   :  { %4060 = vrcp.f32 %v935_v3  ;;  %v4946_v3 = vadd.s32 256, %v4938_v59 }
 0x8f6   :  { %v1554_v31 = vshra.s32 %v4946_v3, 4 }
 0x8fd   :  { %v4059_v2 = vpop.eup %4058 }
 0x8fe   :  { %v4061_v4 = vpop.eup %4060  ;;  %v944_v8 = vmul.f32 %v4059_v2, %v918_v53  ;;  %v4951_v2 = vadd.s32 384, %v4938_v59 }
 0x8ff   :  { %v943_v9 = vmul.f32 %v4061_v4, %v913_v56  ;;  %v1553_v4 = vshra.s32 %v4943_v61, 4 }
 0x900   :  { %v948_v10 = vadd.f32 %v944_v8, %v4708_v7  ;;  %v1552_v8 = vshra.s32 %v4938_v59, 4  ;;  %v1555_v33 = vshra.s32 %v4951_v2, 4 }
 0x901   :  { %v947_v35 = vadd.f32 %v943_v9, %v4704_v6  ;;  %v4969_v36 = vand.u32 15, %v1553_v4 }
 0x902   :  { %952 = vst.msk [vmem:[#allocation3 + $0x18] sm:$0xff] %vm5951_vm0, %v948_v10  ;;  %v4973_v39 = vand.u32 15, %v1552_v8  ;;  %v4979_v41 = vand.u32 15, %v1555_v33  ;;  %v6057_v8 = vmov 0 }
 0x903   :  { %951 = vst.msk [vmem:[#allocation3 + $0x10] sm:$0xff] %vm5951_vm0, %v947_v35 }
 0x904   :  { %vm1639_vm1 = vcmp.ge.s32.totalorder %v4979_v41, 0 }
 0x909   :  { %v3399_v11 = vld.sshfl [vmem:[#allocation3 + $0x19] sm:$0x1 pattern:$0x75316420]  ;;  %v1404_v12 = vld [vmem:[#allocation3 + $0x18] sm:$0x1] }
 0x90a   :  { %v1421_v13 = vrot.slane %v3399_v11, %v4770_v63  ;;  %v3393_v14 = vld.sshfl [vmem:[#allocation3 + $0x12] sm:$0x1 pattern:$0x75316420]  ;;  %1405 = vst.msk [vmem:[#allocation4 + $0x3] sm:$0x1] %vm4773_vm2, %v1404_v12 }
 0x90b   :  { %v1262_v15 = vld [vmem:[#allocation3 + $0x10] sm:$0x1]  ;;  %v1299_v16 = vrot.slane %v3393_v14, %v4770_v63  ;;  %v3400_v17 = vld.sshfl [vmem:[#allocation3 + $0x1a] sm:$0x1 pattern:$0x75316420] }
 0x90c   :  { %1263 = vst.msk [vmem:[#allocation4 + $0x2] sm:$0x1] %vm4773_vm2, %v1262_v15  ;;  %1422 = vrot.lane.b32.xlu0 %v1421_v13, %s4417_s11  ;;  %v3394_v6 = vld.sshfl [vmem:[#allocation3 + $0x13] sm:$0x1 pattern:$0x75316420]  ;;  %v1441_v7 = vrot.slane %v3400_v17, %v4770_v63 }
 0x90d   :  { %1300 = vrot.lane.b32.xlu1 %v1299_v16, %s4416_s28  ;;  %v1319_v18 = vrot.slane %v3394_v6, %v4770_v63  ;;  %v3401_v19 = vld.sshfl [vmem:[#allocation3 + $0x1b] sm:$0x1 pattern:$0x75316420]  ;;  %v4975_v11 = vand.u32 15, %v1554_v31  ;;  %vm1637_vm2 = vcmp.ge.s32.totalorder %v4969_v36, 0 }
 0x90e   :  { %v3395_v20 = vld.sshfl [vmem:[#allocation3 + $0x14] sm:$0x1 pattern:$0x75316420]  ;;  %v1461_v21 = vrot.slane %v3401_v19, %v4770_v63  ;;  %v1727_v12 = vsub.s32 1, %v4766_v62  ;;  %v1735_v13 = vsub.s32 3, %v4766_v62 }
 0x90f   :  { %v1339_v0 = vrot.slane %v3395_v20, %v4770_v63  ;;  %v3402_v22 = vld.sshfl [vmem:[#allocation3 + $0x1c] sm:$0x1 pattern:$0x75316420]  ;;  %vm1638_vm13 = vcmp.ge.s32.totalorder %v4975_v11, 0  ;;  %v6033_v14 = vmov 0 }
 0x910   :  { %1442 = vrot.lane.b32.xlu0 %v1441_v7, %s4416_s28  ;;  %v3396_v23 = vld.sshfl [vmem:[#allocation3 + $0x15] sm:$0x1 pattern:$0x75316420]  ;;  %v1481_v24 = vrot.slane %v3402_v22, %v4770_v63  ;;  %v6035_v15 = vmov 0  ;;  %v6037_v16 = vmov 0 }
 0x911   :  { %1320 = vrot.lane.b32.xlu1 %v1319_v18, %s4418_s10  ;;  %v1359_v25 = vrot.slane %v3396_v23, %v4770_v63  ;;  %v3403_v26 = vld.sshfl [vmem:[#allocation3 + $0x1d] sm:$0x1 pattern:$0x75316420]  ;;  %v6039_v6 = vmov 0 }
 0x912   :  { %v3397_v27 = vld.sshfl [vmem:[#allocation3 + $0x16] sm:$0x1 pattern:$0x75316420]  ;;  %v1501_v28 = vrot.slane %v3403_v26, %v4770_v63 }
 0x913   :  { %v1379_v29 = vrot.slane %v3397_v27, %v4770_v63  ;;  %v3404_v30 = vld.sshfl [vmem:[#allocation3 + $0x1e] sm:$0x1 pattern:$0x75316420] }
 0x914   :  { %1462 = vrot.lane.b32.xlu0 %v1461_v21, %s4418_s10  ;;  %v3398_v32 = vld.sshfl [vmem:[#allocation3 + $0x17] sm:$0x1 pattern:$0x75316420]  ;;  %v1521_v34 = vrot.slane %v3404_v30, %v4770_v63 }
 0x915   :  { %1340 = vrot.lane.b32.xlu1 %v1339_v0, %s4419_s1  ;;  %v1399_v37 = vrot.slane %v3398_v32, %v4770_v63  ;;  %v3392_v38 = vld.sshfl [vmem:[#allocation3 + $0x11] sm:$0x1 pattern:$0x75316420]  ;;  %v2180_v32 = vld [vmem:[#allocation23] sm:$0xff] }
 0x916   :  { %v1279_v40 = vrot.slane %v3392_v38, %v4770_v63  ;;  %v3405_v45 = vld.sshfl [vmem:[#allocation3 + $0x1f] sm:$0x1 pattern:$0x75316420]  ;;  %v1561_v38 = vand.u32 15, %v4943_v61 }
 0x917   :  { %v1541_v46 = vrot.slane %v3405_v45, %v4770_v63  ;;  %v1564_v45 = vadd.s32 4294967295, %v4973_v39 }
 0x918   :  { %1482 = vrot.lane.b32.xlu0 %v1481_v24, %s4419_s1  ;;  %v5063_v42 = vadd.s32 4294967295, %v1561_v38 }
 0x919   :  { %1360 = vrot.lane.b32.xlu1 %v1359_v25, %s4420_s29 }
 0x91c   :  { %1502 = vrot.lane.b32.xlu0 %v1501_v28, %s4420_s29 }
 0x91d   :  { %1380 = vrot.lane.b32.xlu1 %v1379_v29, %s4414_s25  ;;  %v2171_v29 = vld [vmem:[#allocation21 + $0x8] sm:$0xff] }
 0x920   :  { %1522 = vrot.lane.b32.xlu0 %v1521_v34, %s4414_s25  ;;  %v2181_v34 = vld [vmem:[#allocation23 + $0x8] sm:$0xff] }
 0x921   :  { %1400 = vrot.lane.b32.xlu1 %v1399_v37, %s4413_s12  ;;  %v4428_v37 = vmov 0  }
 0x922   :  { %3868 = vset.pattern.permute.xlu1 %v4428_v37  ;;  %3869 = vset.pattern.permute.xlu0 %v4428_v37 }
 0x924   :  { %1280 = vrot.lane.b32.xlu0 %v1279_v40, %s4417_s11  ;;  %v1565_v40 = vadd.s32 4294967295, %v4969_v36 }
 0x926   :  { %vm1569_vm9 = vcmp.ge.s32.totalorder %v1565_v40, 0 }
 0x928   :  { %1258 = vrot.lane.b32.xlu0 %v1257_v43, %s4413_s12  ;;  %v1560_v43 = vand.u32 15, %v4938_v59 }
 0x92c   :  { %1542 = vrot.lane.b32.xlu0 %v1541_v46, %s4413_s12  ;;  %v1562_v46 = vand.u32 15, %v4946_v3  ;;  %v6053_v3 = vmov 0 }
 0x97e   :  { %v1423_v48 = vpop.permute.xlu0 %1422 }
 0x97f   :  { %1425 = vst.msk [vmem:[#allocation4 + $0x3] sm:$0x1] %vm4811_vm7, %v1423_v48  ;;  %v1301_v49 = vpop.permute.xlu1 %1300  ;;  %v1563_v48 = vand.u32 15, %v4951_v2  ;;  %v6055_v2 = vmov 0 }
 0x982   :  { %v1443_v51 = vpop.permute.xlu0 %1442 }
 0x983   :  { %1445 = vst.msk [vmem:[#allocation4 + $0x3] sm:$0x1] %vm4817_vm10, %v1443_v51  ;;  %v1321_v52 = vpop.permute.xlu1 %1320  ;;  %v1567_v51 = vadd.s32 4294967295, %v4979_v41 }
 0x986   :  { %v1463_v53 = vpop.permute.xlu0 %1462 }
 0x987   :  { %1465 = vst.msk [vmem:[#allocation4 + $0x3] sm:$0x1] %vm4823_vm11, %v1463_v53  ;;  %v1341_v54 = vpop.permute.xlu1 %1340  ;;  %v5076_v53 = vadd.s32 4294967295, %v1560_v43 }
 0x989   :  { %vm5963_vm0 = vcmp.ge.s32.totalorder %v5076_v53, 0 }
 0x98a   :  { %v1483_v56 = vpop.permute.xlu0 %1482 }
 0x98b   :  { %1485 = vst.msk [vmem:[#allocation4 + $0x3] sm:$0x1] %vm4833_vm14, %v1483_v56  ;;  %v1361_v58 = vpop.permute.xlu1 %1360  ;;  %v5080_v56 = vadd.s32 4294967295, %v1563_v48 }
 0x98e   :  { %v1503_v57 = vpop.permute.xlu0 %1502 }
 0x98f   :  { %1505 = vst.msk [vmem:[#allocation4 + $0x3] sm:$0x1] %vm4841_vm3, %v1503_v57  ;;  %v1381_v1 = vpop.permute.xlu1 %1380  ;;  %v6045_v57 = vmov 0 }
 0x992   :  { %v1523_v60 = vpop.permute.xlu0 %1522 }
 0x993   :  { %1525 = vst.msk [vmem:[#allocation4 + $0x3] sm:$0x1] %vm4849_vm6, %v1523_v60  ;;  %v1401_v10 = vpop.permute.xlu1 %1400  ;;  %v6049_v60 = vmov 0 }
 0x996   :  { %v1281_v5 = vpop.permute.xlu0 %1280 }
 0x997   :  { %1283 = vst.msk [vmem:[#allocation4 + $0x2] sm:$0x1] %vm4811_vm7, %v1281_v5  ;;  %vm1641_vm7 = vcmp.lt.s32.totalorder %v4969_v36, 16  ;;  %v6051_v5 = vmov 0 }
 0x998   :  { %1303 = vst.msk [vmem:[#allocation4 + $0x2] sm:$0x1] %vm4817_vm10, %v1301_v49  ;;  %vm1636_vm10 = vcmp.ge.s32.totalorder %v4973_v39, 0  ;;  %vm4991_vm15 = vmand %vm1637_vm2, %vm1641_vm7  ;;  %v1566_v49 = vadd.s32 4294967295, %v4975_v11  ;;  %vm5956_vm7 = vcmp.ge.s32.totalorder %v5063_v42, 0 }
 0x999   :  { %1323 = vst.msk [vmem:[#allocation4 + $0x2] sm:$0x1] %vm4823_vm11, %v1321_v52  ;;  %vm1640_vm11 = vcmp.lt.s32.totalorder %v4973_v39, 16  ;;  %v6034_v14 = vsel %vm4991_vm15, 4294967295, %v6033_v14  ;;  %v6043_v52 = vmov 0 }
 0x99a   :  { %1343 = vst.msk [vmem:[#allocation4 + $0x2] sm:$0x1] %vm4833_vm14, %v1341_v54  ;;  %v1259_v9 = vpop.permute.xlu0 %1258  ;;  %vm1642_vm14 = vcmp.lt.s32.totalorder %v4975_v11, 16  ;;  %vm4997_vm4 = vmand %vm1636_vm10, %vm1640_vm11  ;;  %vm1568_vm10 = vcmp.ge.s32.totalorder %v1564_v45, 0  ;;  %vm1572_vm11 = vcmp.lt.s32.totalorder %v1564_v45, 16  ;;  %v5078_v54 = vadd.s32 4294967295, %v1562_v46 }
 0x99b   :  { %1363 = vst.msk [vmem:[#allocation4 + $0x2] sm:$0x1] %vm4841_vm3, %v1361_v58  ;;  %vm1643_vm3 = vcmp.lt.s32.totalorder %v4979_v41, 16  ;;  %v6036_v15 = vsel %vm4997_vm4, 4294967295, %v6035_v15  ;;  %vm5001_vm5 = vmand %vm1638_vm13, %vm1642_vm14  ;;  %vm1570_vm13 = vcmp.ge.s32.totalorder %v1566_v49, 0  ;;  %vm1574_vm14 = vcmp.lt.s32.totalorder %v1566_v49, 16 }
 0x99c   :  { %1261 = vst.msk [vmem:[#allocation4 + $0x1] sm:$0x1] %vm4865_vm12, %v1259_v9  ;;  %v6038_v16 = vsel %vm5001_vm5, 4294967295, %v6037_v16  ;;  %v6047_v58 = vmov 0 }
 0x99d   :  { %1383 = vst.msk [vmem:[#allocation4 + $0x2] sm:$0x1] %vm4849_vm6, %v1381_v1  ;;  %vm5005_vm6 = vmand %vm1639_vm1, %vm1643_vm3  ;;  %vm1571_vm3 = vcmp.ge.s32.totalorder %v1567_v51, 0 }
 0x99e   :  { %1403 = vst.msk [vmem:[#allocation4 + $0x2] sm:$0x1] %vm4865_vm12, %v1401_v10  ;;  %v1543_v35 = vpop.permute.xlu0 %1542  ;;  %v6040_v6 = vsel %vm5005_vm6, 4294967295, %v6039_v6 }
 0x99f   :  { %1545 = vst.msk [vmem:[#allocation4 + $0x3] sm:$0x1] %vm4865_vm12, %v1543_v35  ;;  %vm1573_vm12 = vcmp.lt.s32.totalorder %v1565_v40, 16 }
 0x9a0   :  { %vm5071_vm2 = vmand %vm1569_vm9, %vm1573_vm12  ;;  %vm1575_vm9 = vcmp.lt.s32.totalorder %v1567_v51, 16 }
 0x9a1   :  { %v6044_v52 = vsel %vm5071_vm2, 4294967295, %v6043_v52  ;;  %vm5086_vm1 = vmand %vm5071_vm2, %vm5956_vm7  ;;  %vm5959_vm7 = vcmp.lt.s32.totalorder %v4938_v59, 17 }
 0x9a2   :  { %v6046_v57 = vsel %vm5086_vm1, 4294967295, %v6045_v57  ;;  %vm5090_vm12 = vmand %vm1568_vm10, %vm1572_vm11  ;;  %vm5960_vm10 = vcmp.ge.s32.totalorder %v5080_v56, 0 }
 0x9a3   :  { %v6048_v58 = vsel %vm5090_vm12, 4294967295, %v6047_v58  ;;  %vm5110_vm11 = vmand %vm5090_vm12, %vm5963_vm0  ;;  %vm6066_vm0 = vcmp.lt.s32.totalorder %v4938_v59, 15 }
 0x9a4   :  { %v6054_v3 = vsel %vm5110_vm11, 4294967295, %v6053_v3 }
 0x9a6   :  { %v1546_v17 = vld [vmem:[#allocation4] sm:$0xf] }
 0x9a7   :  { %v1724_v7 = vrot.slane %v1546_v17, %v6003_v44  ;;  %v1728_v18 = vrot.slane %v1546_v17, %v1727_v12  ;;  %v1732_v19 = vrot.slane %v1546_v17, %v1731_v50  ;;  %v1736_v20 = vrot.slane %v1546_v17, %v1735_v13 }
 0x9a9   :  { %1743 = vrot.lane.b32.xlu0 %v1728_v18, %s4422_s20  ;;  %1741 = vrot.lane.b32.xlu1 %v1724_v7, %s4422_s20  ;;  %v1939_v21 = vsel %vm4991_vm15, %v1728_v18, 0.0  ;;  %v1938_v0 = vsel %vm4997_vm4, %v1724_v7, 0.0  ;;  %v1940_v22 = vsel %vm5001_vm5, %v1732_v19, 0.0  ;;  %v1941_v23 = vsel %vm5005_vm6, %v1736_v20, 0.0  ;;  %vm5095_vm6 = vmand %vm1570_vm13, %vm1574_vm14 }
 0x9aa   :  { %v1946_v24 = vcombine.low %v1938_v0, %v1939_v21  ;;  %v1947_v25 = vcombine.low %v1940_v22, %v1941_v23  ;;  %v6050_v60 = vsel %vm5095_vm6, 4294967295, %v6049_v60  ;;  %vm5962_vm5 = vcmp.ge.s32.totalorder %v5078_v54, 0  ;;  %vm5101_vm4 = vmand %vm1571_vm3, %vm1575_vm9 }
 0x9ab   :  { %v6052_v5 = vsel %vm5101_vm4, 4294967295, %v6051_v5  ;;  %vm5118_vm13 = vmand %vm5095_vm6, %vm5962_vm5  ;;  %vm5961_vm3 = vcmp.lt.s32.totalorder %v4938_v59, 16  ;;  %v5147_v21 = vadd.s32 1, %v1561_v38  ;;  %v5149_v0 = vadd.s32 1, %v1560_v43 }
 0x9ac   :  { %v1954_v26 = vrot.slane %v1946_v24, %v4770_v63  ;;  %v1961_v27 = vrot.slane %v1947_v25, %v4770_v63  ;;  %v6056_v2 = vsel %vm5118_vm13, 4294967295, %v6055_v2  ;;  %vm5128_vm14 = vmand %vm5101_vm4, %vm5960_vm10 }
 0x9ad   :  { %1747 = vrot.lane.b32.xlu0 %v1736_v20, %s4422_s20  ;;  %1745 = vrot.lane.b32.xlu1 %v1732_v19, %s4422_s20  ;;  %v6058_v8 = vsel %vm5128_vm14, 4294967295, %v6057_v8  ;;  %vm5964_vm9 = vcmp.lt.s32.totalorder %v5147_v21, 16 }
 0x9ae   :  { %v1962_v28 = vcombine.low %v1954_v26, %v1961_v27  ;;  %v5155_v26 = vadd.s32 1, %v1562_v46 }
 0x9b0   :  { %v1969_v30 = vrot.slane %v1962_v28, %v4770_v63 }
 0x9b1   :  { %1793 = vrot.lane.b32.xlu0 %v1728_v18, %s4417_s11  ;;  %1791 = vrot.lane.b32.xlu1 %v1724_v7, %s4417_s11 }
 0x9b2   :  { %1972 = vst.msk [vmem:[#allocation5 + $0x4] ss:$8 sm:$0xf] %vm5026_vm8, %v1969_v30  ;;  %v5159_v30 = vadd.s32 1, %v1563_v48 }
 0x9b5   :  { %1797 = vrot.lane.b32.xlu0 %v1736_v20, %s4417_s11  ;;  %1795 = vrot.lane.b32.xlu1 %v1732_v19, %s4417_s11 }
 0x9b9   :  { %1842 = vrot.lane.b32.xlu0 %v1728_v18, %s4423_s7  ;;  %1840 = vrot.lane.b32.xlu1 %v1724_v7, %s4423_s7 }
 0x9bd   :  { %1846 = vrot.lane.b32.xlu0 %v1736_v20, %s4423_s7  ;;  %1844 = vrot.lane.b32.xlu1 %v1732_v19, %s4423_s7 }
 0x9c1   :  { %1891 = vrot.lane.b32.xlu0 %v1728_v18, %s4424_s2  ;;  %1889 = vrot.lane.b32.xlu1 %v1724_v7, %s4424_s2 }
 0x9c5   :  { %1895 = vrot.lane.b32.xlu0 %v1736_v20, %s4424_s2  ;;  %1893 = vrot.lane.b32.xlu1 %v1732_v19, %s4424_s2 }
 0x9c9   :  { %1976 = vrot.lane.b32.xlu0 %v1728_v18, %s4425_s21  ;;  %1974 = vrot.lane.b32.xlu1 %v1724_v7, %s4425_s21 }
 0x9cd   :  { %1980 = vrot.lane.b32.xlu0 %v1736_v20, %s4425_s21  ;;  %1978 = vrot.lane.b32.xlu1 %v1732_v19, %s4425_s21 }
 0x9d1   :  { %2025 = vrot.lane.b32.xlu0 %v1728_v18, %s4426_s19  ;;  %2023 = vrot.lane.b32.xlu1 %v1724_v7, %s4426_s19 }
 0x9d5   :  { %2029 = vrot.lane.b32.xlu0 %v1736_v20, %s4426_s19  ;;  %2027 = vrot.lane.b32.xlu1 %v1732_v19, %s4426_s19 }
 0x9d9   :  { %2074 = vrot.lane.b32.xlu0 %v1728_v18, %s4413_s12  ;;  %2072 = vrot.lane.b32.xlu1 %v1724_v7, %s4413_s12 }
 0x9dd   :  { %2078 = vrot.lane.b32.xlu0 %v1736_v20, %s4413_s12  ;;  %2076 = vrot.lane.b32.xlu1 %v1732_v19, %s4413_s12 }
 0x9e1   :  { %2123 = vrot.lane.b32.xlu0 %v1728_v18, %s4427_s6  ;;  %2121 = vrot.lane.b32.xlu1 %v1724_v7, %s4427_s6 }
 0x9e5   :  { %2127 = vrot.lane.b32.xlu0 %v1736_v20, %s4427_s6  ;;  %2125 = vrot.lane.b32.xlu1 %v1732_v19, %s4427_s6 }
 0x9e9   :  { %2184 = vperm.xlu1 %3868, %v2180_v32   ;;  %2189 = vperm.xlu0 %3869, %v2181_v34  }
 0xa1b   :  { %v1744_v61 = vpop.permute.xlu0 %1743  ;;  %v1742_v1 = vpop.permute.xlu1 %1741 }
 0xa1c   :  { %v1752_v4 = vsel %vm5959_vm7, %v1742_v1, %v1744_v61 }
 0xa1d   :  { %v1755_v12 = vsel %vm5086_vm1, %v1752_v4, 0.0 }
 0xa1f   :  { %v1748_v9 = vpop.permute.xlu0 %1747  ;;  %v1746_v31 = vpop.permute.xlu1 %1745 }
 0xa20   :  { %v1753_v33 = vsel %vm5959_vm7, %v1748_v9, %v1742_v1  ;;  %v1750_v10 = vsel %vm5959_vm7, %v1746_v31, %v1748_v9  ;;  %v1751_v35 = vsel %vm5959_vm7, %v1744_v61, %v1746_v31  ;;  %vm5966_vm7 = vcmp.lt.s32.totalorder %v5149_v0, 16 }
 0xa21   :  { %v1754_v50 = vsel %vm5110_vm11, %v1753_v33, 0.0  ;;  %v1756_v13 = vsel %vm5118_vm13, %v1751_v35, 0.0  ;;  %v1757_v17 = vsel %vm5128_vm14, %v1750_v10, 0.0  ;;  %v6059_v61 = vmov 0  ;;  %vm5195_vm10 = vmand %vm5090_vm12, %vm5966_vm7 }
 0xa22   :  { %v1762_v7 = vcombine.low %v1754_v50, %v1755_v12  ;;  %v1763_v18 = vcombine.low %v1756_v13, %v1757_v17  ;;  %v6061_v31 = vmov 0  ;;  %v6064_v33 = vmov 0 }
 0xa23   :  { %v1794_v19 = vpop.permute.xlu0 %1793  ;;  %v1792_v20 = vpop.permute.xlu1 %1791  ;;  %v6062_v31 = vsel %vm5195_vm10, 4294967295, %v6061_v31  ;;  %v6068_v12 = vmov 0 }
 0xa24   :  { %v1770_v22 = vrot.slane %v1762_v7, %v4770_v63  ;;  %v1777_v23 = vrot.slane %v1763_v18, %v4770_v63  ;;  %v1802_v25 = vsel %vm5961_vm3, %v1792_v20, %v1794_v19 }
 0xa25   :  { %v1805_v40 = vsel %vm5071_vm2, %v1802_v25, 0.0 }
 0xa26   :  { %v1778_v24 = vcombine.low %v1770_v22, %v1777_v23 }
 0xa27   :  { %v1798_v27 = vpop.permute.xlu0 %1797  ;;  %v1796_v28 = vpop.permute.xlu1 %1795 }
 0xa28   :  { %v1785_v32 = vrot.slane %v1778_v24, %v4770_v63  ;;  %v1803_v34 = vsel %vm5961_vm3, %v1798_v27, %v1792_v20  ;;  %v1800_v37 = vsel %vm5961_vm3, %v1796_v28, %v1798_v27  ;;  %v1801_v38 = vsel %vm5961_vm3, %v1794_v19, %v1796_v28  ;;  %vm5183_vm3 = vmand %vm5071_vm2, %vm5964_vm9 }
 0xa29   :  { %v1804_v43 = vsel %vm5090_vm12, %v1803_v34, 0.0  ;;  %v1806_v45 = vsel %vm5095_vm6, %v1801_v38, 0.0  ;;  %v1807_v46 = vsel %vm5101_vm4, %v1800_v37, 0.0  ;;  %v6060_v61 = vsel %vm5183_vm3, 4294967295, %v6059_v61 }
 0xa2a   :  { %1789 = vst.msk [vmem:[#allocation5] ss:$8 sm:$0xf] %vm5026_vm8, %v1785_v32  ;;  %v1812_v48 = vcombine.low %v1804_v43, %v1805_v40  ;;  %v1813_v49 = vcombine.low %v1806_v45, %v1807_v46  ;;  %vm6063_vm9 = vcmp.lt.s32.totalorder %v5155_v26, 16  ;;  %vm6067_vm2 = vcmp.lt.s32.totalorder %v5159_v30, 16 }
 0xa2b   :  { %v1843_v51 = vpop.permute.xlu0 %1842  ;;  %v1841_v1 = vpop.permute.xlu1 %1840  ;;  %vm5203_vm5 = vmand %vm5095_vm6, %vm6063_vm9  ;;  %v6073_v32 = vmov 0  ;;  %v6077_v40 = vmov 0  ;;  %v6081_v43 = vmov 0  ;;  %vm6084_vm12 = vnez %v6040_v6 }
 0xa2c   :  { %v1820_v4 = vrot.slane %v1812_v48, %v4770_v63  ;;  %v1827_v9 = vrot.slane %v1813_v49, %v4770_v63  ;;  %v6065_v33 = vsel %vm5203_vm5, 4294967295, %v6064_v33  ;;  %v1851_v35 = vsel %vm6066_vm0, %v1841_v1, %v1843_v51  ;;  %vm5213_vm7 = vmand %vm5101_vm4, %vm6067_vm2 }
 0xa2d   :  { %v6069_v12 = vsel %vm5213_vm7, 4294967295, %v6068_v12  ;;  %vm6070_vm9 = vmmov %vm6066_vm0  ;;  %v1854_v20 = vsel %vm5183_vm3, %v1851_v35, 0.0  ;;  %vm6083_vm4 = vcmp.ge.s32.totalorder %v5080_v56, 0  ;;  %v6085_v48 = vmov 0 }
 0xa2e   :  { %v1828_v10 = vcombine.low %v1820_v4, %v1827_v9  ;;  %vm6071_vm6 = vmmov %vm6066_vm0  ;;  %v1672_v49 = vadd.s32 1, %v4973_v39  ;;  %v1675_v4 = vadd.s32 1, %v4979_v41 }
 0xa2f   :  { %v1847_v50 = vpop.permute.xlu0 %1846  ;;  %v1845_v13 = vpop.permute.xlu1 %1844 }
 0xa30   :  { %v1835_v17 = vrot.slane %v1828_v10, %v4770_v63  ;;  %v1852_v7 = vsel %vm6070_vm9, %v1847_v50, %v1841_v1  ;;  %v1849_v18 = vsel %vm6071_vm6, %v1845_v13, %v1847_v50  ;;  %v1850_v19 = vsel %vm6066_vm0, %v1843_v51, %v1845_v13 }
 0xa31   :  { %v1853_v22 = vsel %vm5195_vm10, %v1852_v7, 0.0  ;;  %v1855_v23 = vsel %vm5203_vm5, %v1850_v19, 0.0  ;;  %v1856_v24 = vsel %vm5213_vm7, %v1849_v18, 0.0  ;;  %vm6072_vm6 = vcmp.ge.s32.totalorder %v5063_v42, 0 }
 0xa32   :  { %1838 = vst.msk [vmem:[#allocation5 + $0x1] ss:$8 sm:$0xf] %vm5026_vm8, %v1835_v17  ;;  %v1861_v25 = vcombine.low %v1853_v22, %v1854_v20  ;;  %v1862_v27 = vcombine.low %v1855_v23, %v1856_v24  ;;  %vm5238_vm2 = vmand %vm4991_vm15, %vm6072_vm6  ;;  %vm5976_vm9 = vcmp.lt.s32.totalorder %v4938_v59, 1  ;;  %vm6075_vm0 = vcmp.ge.s32.totalorder %v5076_v53, 0 }
 0xa33   :  { %v1892_v28 = vpop.permute.xlu0 %1891  ;;  %v6074_v32 = vsel %vm5238_vm2, 4294967295, %v6073_v32  ;;  %v1890_v34 = vpop.permute.xlu1 %1889  ;;  %vm6076_vm5 = vnez %v6036_v15  ;;  %vm6079_vm6 = vcmp.ge.s32.totalorder %v5078_v54, 0  ;;  %vm6080_vm10 = vnez %v6038_v16 }
 0xa34   :  { %v1869_v37 = vrot.slane %v1861_v25, %v4770_v63  ;;  %v1876_v38 = vrot.slane %v1862_v27, %v4770_v63  ;;  %vm5249_vm7 = vmand %vm6076_vm5, %vm6075_vm0  ;;  %v1900_v46 = vsel %vm5976_vm9, %v1890_v34, %v1892_v28  ;;  %v1673_v24 = vadd.s32 1, %v4969_v36 }
 0xa35   :  { %v6078_v40 = vsel %vm5249_vm7, 4294967295, %v6077_v40  ;;  %vm5257_vm3 = vmand %vm6080_vm10, %vm6079_vm6  ;;  %v1903_v13 = vsel %vm5238_vm2, %v1900_v46, 0.0  ;;  %v1674_v25 = vadd.s32 1, %v4975_v11  ;;  %v6100_v11 = vmov 0 }
 0xa36   :  { %v6082_v43 = vsel %vm5257_vm3, 4294967295, %v6081_v43  ;;  %v1877_v45 = vcombine.low %v1869_v37, %v1876_v38  ;;  %vm5267_vm0 = vmand %vm6084_vm12, %vm6083_vm4  ;;  %vm6087_vm4 = vcmp.lt.s32.totalorder %v5149_v0, 16  ;;  %v6096_v37 = vmov 0 }
 0xa37   :  { %v6086_v48 = vsel %vm5267_vm0, 4294967295, %v6085_v48  ;;  %v1896_v51 = vpop.permute.xlu0 %1895  ;;  %v1894_v1 = vpop.permute.xlu1 %1893  ;;  %vm5294_vm6 = vmand %vm6076_vm5, %vm6087_vm4  ;;  %vm6093_vm4 = vcmp.lt.s32.totalorder %v5147_v21, 16  ;;  %vm6098_vm5 = vcmp.lt.s32.totalorder %v4938_v59, 127  ;;  %vm1681_vm14 = vcmp.lt.s32.totalorder %v1673_v24, 16 }
 0xa38   :  { %v1884_v9 = vrot.slane %v1877_v45, %v4770_v63  ;;  %v1901_v10 = vsel %vm5976_vm9, %v1896_v51, %v1890_v34  ;;  %v1898_v35 = vsel %vm5976_vm9, %v1894_v1, %v1896_v51  ;;  %v1899_v50 = vsel %vm5976_vm9, %v1892_v28, %v1894_v1  ;;  %vm6102_vm1 = vmmov %vm6098_vm5 }
 0xa39   :  { %v1902_v39 = vsel %vm5249_vm7, %v1901_v10, 0.0  ;;  %v1904_v41 = vsel %vm5257_vm3, %v1899_v50, 0.0  ;;  %v1905_v17 = vsel %vm5267_vm0, %v1898_v35, 0.0  ;;  %vm1676_vm9 = vcmp.ge.s32.totalorder %v1672_v49, 0  ;;  %vm5315_vm3 = vmand %vm4991_vm15, %vm6093_vm4 }
 0xa3a   :  { %1887 = vst.msk [vmem:[#allocation5 + $0x2] ss:$8 sm:$0xf] %vm5026_vm8, %v1884_v9  ;;  %v1910_v7 = vcombine.low %v1902_v39, %v1903_v13  ;;  %v1911_v18 = vcombine.low %v1904_v41, %v1905_v17  ;;  %vm1680_vm7 = vcmp.lt.s32.totalorder %v1672_v49, 16  ;;  %vm6090_vm0 = vcmp.lt.s32.totalorder %v5159_v30, 16 }
 0xa3b   :  { %v1977_v20 = vpop.permute.xlu0 %1976  ;;  %v1975_v22 = vpop.permute.xlu1 %1974  ;;  %vm5303_vm2 = vmand %vm6084_vm12, %vm6090_vm0  ;;  %vm6099_vm12 = vcmp.lt.s32.totalorder %v5155_v26, 16  ;;  %vm1682_vm11 = vcmp.lt.s32.totalorder %v1674_v25, 16  ;;  %vm6104_vm4 = vcmp.ge.s32.totalorder %v5076_v53, 0  ;;  %v6105_v10 = vmov 0 }
 0xa3c   :  { %v1918_v27 = vrot.slane %v1910_v7, %v4770_v63  ;;  %v1925_v28 = vrot.slane %v1911_v18, %v4770_v63  ;;  %vm5319_vm0 = vmand %vm1676_vm9, %vm1680_vm7  ;;  %v1985_v36 = vsel %vm6098_vm5, %v1975_v22, %v1977_v20  ;;  %vm1677_vm7 = vcmp.ge.s32.totalorder %v1673_v24, 0 }
 0xa3d   :  { %v6097_v37 = vsel %vm5319_vm0, 4294967295, %v6096_v37  ;;  %vm5329_vm13 = vmand %vm6080_vm10, %vm6099_vm12  ;;  %v1987_v35 = vsel %vm5294_vm6, %v1985_v36, 0.0  ;;  %v6109_v53 = vmov 0  ;;  %vm5994_vm9 = vcmp.lt.s32.totalorder %v4938_v59, 113 }
 0xa3e   :  { %v1926_v38 = vcombine.low %v1918_v27, %v1925_v28  ;;  %v6101_v11 = vsel %vm5329_vm13, 4294967295, %v6100_v11  ;;  %vm6103_vm12 = vmmov %vm6102_vm1  ;;  %v6117_v24 = vmov 0 }
 0xa3f   :  { %v1981_v45 = vpop.permute.xlu0 %1980  ;;  %v1979_v46 = vpop.permute.xlu1 %1978  ;;  %vm5344_vm15 = vmand %vm5319_vm0, %vm6104_vm4 }
 0xa40   :  { %v1933_v49 = vrot.slane %v1926_v38, %v4770_v63  ;;  %v1986_v51 = vsel %vm6098_vm5, %v1981_v45, %v1975_v22  ;;  %v1983_v1 = vsel %vm6102_vm1, %v1979_v46, %v1981_v45  ;;  %v1984_v9 = vsel %vm6103_vm12, %v1977_v20, %v1979_v46  ;;  %vm5366_vm4 = vmand %vm1677_vm7, %vm1681_vm14 }
 0xa41   :  { %v6106_v10 = vsel %vm5344_vm15, 4294967295, %v6105_v10  ;;  %v1990_v50 = vsel %vm5303_vm2, %v1986_v51, 0.0  ;;  %v1988_v13 = vsel %vm5315_vm3, %v1984_v9, 0.0  ;;  %v1989_v39 = vsel %vm5329_vm13, %v1983_v1, 0.0 }
 0xa42   :  { %vm6107_vm1 = vcmp.lt.s32.totalorder %v1675_v4, 16  ;;  %vm6108_vm5 = vcmp.ge.s32.totalorder %v1675_v4, 0  ;;  %1936 = vst.msk [vmem:[#allocation5 + $0x3] ss:$8 sm:$0xf] %vm5026_vm8, %v1933_v49  ;;  %v1995_v41 = vcombine.low %v1987_v35, %v1988_v13  ;;  %v1996_v17 = vcombine.low %v1989_v39, %v1990_v50 }
 0xa43   :  { %vm5358_vm12 = vmand %vm6108_vm5, %vm6107_vm1  ;;  %v2026_v18 = vpop.permute.xlu0 %2025  ;;  %v2024_v20 = vpop.permute.xlu1 %2023  ;;  %vm6113_vm1 = vcmp.ge.s32.totalorder %v1674_v25, 0  ;;  %v6114_v4 = vmov 0  ;;  %vm6116_vm13 = vcmp.ge.s32.totalorder %v5080_v56, 0  ;;  %vm6119_vm7 = vcmp.ge.s32.totalorder %v5063_v42, 0 }
 0xa44   :  { %v6110_v53 = vsel %vm5358_vm12, 4294967295, %v6109_v53  ;;  %vm5373_vm5 = vmand %vm6113_vm1, %vm1682_vm11  ;;  %v2003_v22 = vrot.slane %v1995_v41, %v4770_v63  ;;  %v2010_v27 = vrot.slane %v1996_v17, %v4770_v63  ;;  %v2034_v38 = vsel %vm5994_vm9, %v2024_v20, %v2026_v18 }
 0xa45   :  { %v6115_v4 = vsel %vm5373_vm5, 4294967295, %v6114_v4  ;;  %vm5383_vm14 = vmand %vm5358_vm12, %vm6116_vm13  ;;  %vm6122_vm1 = vcmp.ge.s32.totalorder %v5078_v54, 0  ;;  %v6123_v56 = vmov 0  ;;  %v2036_v54 = vsel %vm5344_vm15, %v2034_v38, 0.0 }
 0xa46   :  { %v6118_v24 = vsel %vm5383_vm14, 4294967295, %v6117_v24  ;;  %vm5391_vm11 = vmand %vm5366_vm4, %vm6119_vm7  ;;  %v2011_v28 = vcombine.low %v2003_v22, %v2010_v27  ;;  %vm5993_vm7 = vcmp.lt.s32.totalorder %v4938_v59, 112  ;;  %vm6134_vm15 = vcmp.lt.s32.totalorder %v5155_v26, 16 }
 0xa47   :  { %vm5401_vm13 = vmand %vm5373_vm5, %vm6122_vm1  ;;  %v2030_v36 = vpop.permute.xlu0 %2029  ;;  %v2028_v42 = vpop.permute.xlu1 %2027  ;;  %vm6125_vm1 = vcmp.lt.s32.totalorder %v5149_v0, 16  ;;  %v6132_v0 = vmov 0 }
 0xa48   :  { %v6124_v56 = vsel %vm5401_vm13, 4294967295, %v6123_v56  ;;  %v2018_v45 = vrot.slane %v2011_v28, %v4770_v63  ;;  %v2035_v46 = vsel %vm5994_vm9, %v2030_v36, %v2024_v20  ;;  %v2032_v49 = vsel %vm5994_vm9, %v2028_v42, %v2030_v36 }
 0xa49   :  { %v2033_v51 = vsel %vm5994_vm9, %v2026_v18, %v2028_v42  ;;  %v2039_v1 = vsel %vm5383_vm14, %v2035_v46, 0.0  ;;  %v2038_v35 = vsel %vm5401_vm13, %v2032_v49, 0.0  ;;  %vm6000_vm9 = vcmp.lt.s32.totalorder %v4938_v59, 111 }
 0xa4a   :  { %v2037_v9 = vsel %vm5391_vm11, %v2033_v51, 0.0  ;;  %2021 = vst.msk [vmem:[#allocation5 + $0x5] ss:$8 sm:$0xf] %vm5026_vm8, %v2018_v45  ;;  %v2045_v13 = vcombine.low %v2038_v35, %v2039_v1  ;;  %vm6128_vm13 = vcmp.lt.s32.totalorder %v5159_v30, 16  ;;  %v6135_v30 = vmov 0 }
 0xa4b   :  { %v2044_v50 = vcombine.low %v2036_v54, %v2037_v9  ;;  %v2075_v39 = vpop.permute.xlu0 %2074  ;;  %v2073_v41 = vpop.permute.xlu1 %2072  ;;  %vm5459_vm14 = vmand %vm5358_vm12, %vm6128_vm13 }
 0xa4c   :  { %v2059_v18 = vrot.slane %v2045_v13, %v4770_v63  ;;  %v2083_v22 = vsel %vm5993_vm7, %v2073_v41, %v2075_v39  ;;  %vm5477_vm13 = vmand %vm5373_vm5, %vm6134_vm15  ;;  %vm6137_vm15 = vcmask 130048  }
 0xa4d   :  { %v2052_v17 = vrot.slane %v2044_v50, %v4770_v63  ;;  %v2085_v46 = vsel %vm5319_vm0, %v2083_v22, 0.0  ;;  %v6126_v50 = vmov 0  ;;  %v6136_v30 = vsel %vm5477_vm13, 4294967295, %v6135_v30 }
 0xa4f   :  { %v2060_v20 = vcombine.low %v2052_v17, %v2059_v18  ;;  %v2079_v27 = vpop.permute.xlu0 %2078  ;;  %v2077_v28 = vpop.permute.xlu1 %2076  ;;  %v6129_v17 = vmov 0 }
 0xa50   :  { %v2084_v36 = vsel %vm5993_vm7, %v2079_v27, %v2073_v41  ;;  %v2081_v42 = vsel %vm5993_vm7, %v2077_v28, %v2079_v27  ;;  %v2082_v45 = vsel %vm5993_vm7, %v2075_v39, %v2077_v28  ;;  %vm5448_vm7 = vmand %vm5319_vm0, %vm6125_vm1  ;;  %v6130_v17 = vsel %vm5459_vm14, 4294967295, %v6129_v17 }
 0xa51   :  { %v2067_v38 = vrot.slane %v2060_v20, %v4770_v63  ;;  %v2088_v49 = vsel %vm5358_vm12, %v2084_v36, 0.0  ;;  %v2086_v51 = vsel %vm5366_vm4, %v2082_v45, 0.0  ;;  %v2087_v54 = vsel %vm5373_vm5, %v2081_v42, 0.0 }
 0xa52   :  { %v2093_v1 = vcombine.low %v2085_v46, %v2086_v51  ;;  %v2094_v9 = vcombine.low %v2087_v54, %v2088_v49  ;;  %v6127_v50 = vsel %vm5448_vm7, 4294967295, %v6126_v50  ;;  %vm6131_vm1 = vcmp.lt.s32.totalorder %v5147_v21, 16 }
 0xa53   :  { %2070 = vst.msk [vmem:[#allocation5 + $0x6] ss:$8 sm:$0xf] %vm5026_vm8, %v2067_v38  ;;  %v2124_v35 = vpop.permute.xlu0 %2123  ;;  %v2122_v13 = vpop.permute.xlu1 %2121  ;;  %vm5467_vm0 = vmand %vm5366_vm4, %vm6131_vm1  ;;  %vm6153_vm12 = vnez %v6056_v2 }
 0xa54   :  { %v2101_v39 = vrot.slane %v2093_v1, %v4770_v63  ;;  %v2108_v41 = vrot.slane %v2094_v9, %v4770_v63  ;;  %v6133_v0 = vsel %vm5467_vm0, 4294967295, %v6132_v0  ;;  %v2132_v20 = vsel %vm6000_vm9, %v2122_v13, %v2124_v35 }
 0xa55   :  { %v2134_v26 = vsel %vm5448_vm7, %v2132_v20, 0.0 }
 0xa56   :  { %v2109_v18 = vcombine.low %v2101_v39, %v2108_v41 }
 0xa57   :  { %v2128_v22 = vpop.permute.xlu0 %2127  ;;  %v2126_v21 = vpop.permute.xlu1 %2125 }
 0xa58   :  { %v2116_v27 = vrot.slane %v2109_v18, %v4770_v63  ;;  %v2133_v28 = vsel %vm6000_vm9, %v2128_v22, %v2122_v13  ;;  %v2130_v38 = vsel %vm6000_vm9, %v2126_v21, %v2128_v22  ;;  %v2131_v36 = vsel %vm6000_vm9, %v2124_v35, %v2126_v21 }
 0xa59   :  { %v2137_v42 = vsel %vm5459_vm14, %v2133_v28, 0.0  ;;  %v2135_v45 = vsel %vm5467_vm0, %v2131_v36, 0.0  ;;  %v2136_v46 = vsel %vm5477_vm13, %v2130_v38, 0.0  ;;  %vm6146_vm13 = vnez %v6054_v3 }
 0xa5a   :  { %2119 = vst.msk [vmem:[#allocation5 + $0x7] ss:$8 sm:$0xf] %vm5026_vm8, %v2116_v27  ;;  %v2142_v49 = vcombine.low %v2134_v26, %v2135_v45  ;;  %v2143_v51 = vcombine.low %v2136_v46, %v2137_v42  ;;  %v2170_v42 = vld [vmem:[#allocation21] sm:$0xff]  ;;  %vm6152_vm14 = vnez %v6058_v8 }
 0xa5c   :  { %v2150_v54 = vrot.slane %v2142_v49, %v4770_v63  ;;  %v2157_v1 = vrot.slane %v2143_v51, %v4770_v63 }
 0xa5e   :  { %v2158_v9 = vcombine.low %v2150_v54, %v2157_v1 }
 0xa60   :  { %v2165_v35 = vrot.slane %v2158_v9, %v4770_v63 }
 0xa61   :  { %v2173_v13 = vld [vmem:[#allocation5 + $0x8] sm:$0xff]  ;;  %v2175_v39 = vld [vmem:[#allocation5 + $0x18] sm:$0xff]  ;;  %v2172_v41 = vld [vmem:[#allocation5] sm:$0xff] }
 0xa62   :  { %2168 = vst.msk [vmem:[#allocation5 + $0x20] ss:$8 sm:$0xf] %vm5026_vm8, %v2165_v35  ;;  %v2174_v38 = vld [vmem:[#allocation5 + $0x10] sm:$0xff]  ;;  %vm6138_vm8 = vmmov %vm6137_vm15 }
 0xa63   :  { %vm6139_vm1 = vmmov %vm6138_vm8 }
 0xa64   :  { %vm6140_vm9 = vmmov %vm6139_vm1 }
 0xa68   :  { %v2185_v45 = vpop.permute.xlu1 %2184 }
 0xa69   :  { %v2177_v18 = vld [vmem:[#allocation5 + $0x28] sm:$0xff]  ;;  %v2179_v20 = vld [vmem:[#allocation5 + $0x38] sm:$0xff]  ;;  %v2176_v22 = vld [vmem:[#allocation5 + $0x20] sm:$0xff] }
 0xa6a   :  { %v3662_v21 = vpack.c.bf16 %v2177_v18, %v2173_v13  ;;  %v3666_v27 = vpack.c.bf16 %v2179_v20, %v2175_v39  ;;  %v3664_v28 = vpack.c.bf16 %v2176_v22, %v2172_v41  ;;  %v2178_v36 = vld [vmem:[#allocation5 + $0x30] sm:$0xff]  ;;  %v2190_v39 = vpop.permute.xlu0 %2189 }
 0xa6b   :  { %v3668_v26 = vpack.c.bf16 %v2178_v36, %v2174_v38 }
 0xa6c   :  { %3663 = vmatprep.subr.bf16.mxu0 %v3662_v21  ;;  %3667 = vmatprep.subr.bf16.mxu1 %v3666_v27 }
 0xa6d   :  { %3665 = vmatpush1.bf16.msra.mxu0 %v3664_v28  ;;  %3669 = vmatpush1.bf16.msra.mxu1 %v3668_v26 }
 0xa70   :  { %3406 = vmatmul.mubr.msk.f32.vlgmr.msra.gmra.mrb[6].mxu0 %vm6137_vm15, %v2170_v42  ;;  %3408 = vmatmul.mubr.msk.f32.vlgmr.msra.gmra.mrb[14].mxu1 %vm6138_vm8, %v2170_v42  ;;  %vm6142_vm15 = vmmov %vm6139_vm1  ;;  %vm6143_vm8 = vcmp.lt.s32.totalorder %v4938_v59, 17 }
 0xa71   :  { %2268 = vmatprep.mubr.f32.mxu0 %v6001_v47  ;;  %2345 = vmatprep.mubr.f32.mxu1 %v6001_v47 }
 0xa74   :  { %3407 = vmatmul.mubr.msk.f32.gmra.mrb[8].mxu0 %vm6139_vm1, %v2171_v29  ;;  %3409 = vmatmul.mubr.msk.f32.gmra.mrb[16].mxu1 %vm6140_vm9, %v2171_v29  ;;  %vm6141_vm9 = vmmov %vm6139_vm1 }
 0xa75   :  { %vm6144_vm1 = vmmov %vm6143_vm8 }
 0xa76   :  { %vm6149_vm7 = vmmov %vm6144_vm1 }
 0xa77   :  { %vm6150_vm0 = vmmov %vm6144_vm1 }
 0xa78   :  { %vm6151_vm5 = vmmov %vm6150_vm0 }
 0xb43   :  { %v2264_v46 = vpop.f32.mrb[6].mxu0  ;;  %v2341_v49 = vpop.f32.mrb[14].mxu1 }
 0xb44   :  { %v5509_v51 = vadd.f32 %v2264_v46, %v2185_v45  ;;  %v5511_v54 = vadd.f32 %v2341_v49, %v2185_v45  ;;  %v2266_v1 = vpop.f32.mrb[7].mxu0  ;;  %v2343_v9 = vpop.f32.mrb[15].mxu1 }
 0xb45   :  { %v5513_v35 = vadd.f32 %v2266_v1, %v2185_v45  ;;  %v5515_v13 = vadd.f32 %v2343_v9, %v2185_v45 }
 0xb46   :  { %v2352_v41 = vsub.f32 0.0, %v5509_v51  ;;  %v2354_v18 = vsub.f32 0.0, %v5511_v54 }
 0xb47   :  { %v2353_v20 = vsub.f32 0.0, %v5513_v35  ;;  %v2355_v22 = vsub.f32 0.0, %v5515_v13  ;;  %v2270_v21 = vpop.f32.mrb[8].mxu0  ;;  %v2347_v27 = vpop.f32.mrb[16].mxu1 }
 0xb48   :  { %v2360_v28 = vmul.f32 1.442695, %v2352_v41  ;;  %v2364_v38 = vmul.f32 1.442695, %v2354_v18  ;;  %v2271_v36 = vadd.f32 %v2270_v21, %v2190_v39  ;;  %v2348_v26 = vadd.f32 %v2347_v27, %v2190_v39  ;;  %v2272_v42 = vpop.f32.mrb[9].mxu0  ;;  %v2349_v29 = vpop.f32.mrb[17].mxu1 }
 0xb49   :  { %v2362_v46 = vmul.f32 1.442695, %v2353_v20  ;;  %v2366_v45 = vmul.f32 1.442695, %v2355_v22  ;;  %v2273_v49 = vadd.f32 %v2272_v42, %v2190_v39  ;;  %v2350_v1 = vadd.f32 %v2349_v29, %v2190_v39 }
 0xb4a   :  { %4062 = vpow2.f32 %v2360_v28  ;;  %v2356_v9 = vsub.f32 0.0, %v2271_v36  ;;  %v2358_v47 = vsub.f32 0.0, %v2348_v26 }
 0xb4b   :  { %4064 = vpow2.f32 %v2364_v38  ;;  %v2357_v55 = vsub.f32 0.0, %v2273_v49  ;;  %v2359_v44 = vsub.f32 0.0, %v2350_v1 }
 0xb4c   :  { %4066 = vpow2.f32 %v2362_v46  ;;  %v2368_v63 = vmul.f32 1.442695, %v2356_v9  ;;  %v2372_v62 = vmul.f32 1.442695, %v2358_v47 }
 0xb4d   :  { %4068 = vpow2.f32 %v2366_v45  ;;  %v2370_v41 = vmul.f32 1.442695, %v2357_v55  ;;  %v2374_v18 = vmul.f32 1.442695, %v2359_v44 }
 0xb4e   :  { %4070 = vpow2.f32 %v2368_v63 }
 0xb4f   :  { %4072 = vpow2.f32 %v2372_v62 }
 0xb50   :  { %4074 = vpow2.f32 %v2370_v41 }
 0xb51   :  { %4076 = vpow2.f32 %v2374_v18 }
 0xb54   :  { %v4063_v20 = vpop.eup %4062 }
 0xb55   :  { %v4065_v22 = vpop.eup %4064  ;;  %v2376_v21 = vadd.f32 1.0, %v4063_v20 }
 0xb56   :  { %v4067_v39 = vpop.eup %4066  ;;  %v2378_v27 = vadd.f32 1.0, %v4065_v22 }
 0xb57   :  { %v4069_v28 = vpop.eup %4068  ;;  %4078 = vrcp.f32 %v2376_v21  ;;  %v2377_v38 = vadd.f32 1.0, %v4067_v39 }
 0xb58   :  { %v4071_v42 = vpop.eup %4070  ;;  %4080 = vrcp.f32 %v2378_v27  ;;  %v2379_v29 = vadd.f32 1.0, %v4069_v28 }
 0xb59   :  { %v4073_v46 = vpop.eup %4072  ;;  %4082 = vrcp.f32 %v2377_v38  ;;  %v2380_v47 = vadd.f32 1.0, %v4071_v42 }
 0xb5a   :  { %v4075_v55 = vpop.eup %4074  ;;  %4084 = vrcp.f32 %v2379_v29  ;;  %v2382_v63 = vadd.f32 1.0, %v4073_v46 }
 0xb5b   :  { %v4077_v62 = vpop.eup %4076  ;;  %4086 = vrcp.f32 %v2380_v47  ;;  %v2381_v44 = vadd.f32 1.0, %v4075_v55 }
 0xb5c   :  { %4088 = vrcp.f32 %v2382_v63  ;;  %v2383_v45 = vadd.f32 1.0, %v4077_v62  ;;  %v2809_v62 = vld [vmem:[%s5944_s9 + $0x8] sm:$0xff] }
 0xb5d   :  { %4090 = vrcp.f32 %v2381_v44  ;;  %3410 = vmatprep.mubr.msk.f32.mxu0 %vm6141_vm9, %v2809_v62  ;;  %3411 = vmatprep.mubr.msk.f32.mxu1 %vm6142_vm15, %v2809_v62  ;;  %v3027_v44 = vld [vmem:[#allocation8] sm:$0x1]  ;;  %vm6145_vm9 = vnez %v6046_v57 }
 0xb5e   :  { %4092 = vrcp.f32 %v2383_v45  ;;  %vm3671_vm15 = vmpackc.low %vm6145_vm9, %vm6145_vm9 }
 0xb5f   :  { %vm6148_vm9 = vmmov %vm6144_vm1 }
 0xb61   :  { %v4079_v9 = vpop.eup %4078 }
 0xb62   :  { %v4081_v41 = vpop.eup %4080  ;;  %v5522_v39 = vmul.f32 %v4079_v9, %v5509_v51 }
 0xb63   :  { %v4083_v18 = vpop.eup %4082  ;;  %v5527_v38 = vmul.f32 %v4081_v41, %v5511_v54 }
 0xb64   :  { %v4085_v20 = vpop.eup %4084  ;;  %v5530_v42 = vmul.f32 %v4083_v18, %v5513_v35 }
 0xb65   :  { %v4087_v22 = vpop.eup %4086  ;;  %v5533_v29 = vmul.f32 %v4085_v20, %v5515_v13 }
 0xb66   :  { %v4089_v21 = vpop.eup %4088  ;;  %v5524_v27 = vmul.f32 %v4087_v22, %v2271_v36 }
 0xb67   :  { %v4091_v28 = vpop.eup %4090  ;;  %v5535_v46 = vmul.f32 %v4089_v21, %v2348_v26 }
 0xb68   :  { %v4093_v47 = vpop.eup %4092  ;;  %v5537_v55 = vmul.f32 %v4091_v28, %v2273_v49  ;;  %v3870_v51 = vpack.i.bf16 %v5524_v27, %v5522_v39  ;;  %v6199_v34 = vpack.c.bf16 %v5524_v27, %v5522_v39 }
 0xb69   :  { %v5541_v36 = vmul.f32 %v4093_v47, %v2350_v1  ;;  %v3875_v54 = vpack.i.bf16 %v5535_v46, %v5527_v38 }
 0xb6a   :  { %3871 = vrot.lane.b32.xlu1 %v3870_v51, %s4422_s20  ;;  %v3950_v35 = vpack.i.bf16 %v5537_v55, %v5530_v42 }
 0xb6b   :  { %3876 = vrot.lane.b32.xlu0 %v3875_v54, %s4422_s20  ;;  %v3955_v13 = vpack.i.bf16 %v5541_v36, %v5533_v29 }
 0xb6e   :  { %3951 = vrot.lane.b32.xlu1 %v3950_v35, %s4422_s20 }
 0xb6f   :  { %3881 = vrot.lane.b32.xlu0 %v3870_v51, %s4417_s11 }
 0xb72   :  { %3956 = vrot.lane.b32.xlu1 %v3955_v13, %s4422_s20 }
 0xb73   :  { %3886 = vrot.lane.b32.xlu0 %v3875_v54, %s4417_s11 }
 0xb76   :  { %3961 = vrot.lane.b32.xlu1 %v3950_v35, %s4417_s11 }
 0xb77   :  { %3891 = vrot.lane.b32.xlu0 %v3870_v51, %s4423_s7 }
 0xb7a   :  { %3966 = vrot.lane.b32.xlu1 %v3955_v13, %s4417_s11 }
 0xb7b   :  { %3896 = vrot.lane.b32.xlu0 %v3875_v54, %s4423_s7 }
 0xb7e   :  { %3971 = vrot.lane.b32.xlu1 %v3950_v35, %s4423_s7 }
 0xb7f   :  { %3901 = vrot.lane.b32.xlu0 %v3870_v51, %s4424_s2 }
 0xb82   :  { %3976 = vrot.lane.b32.xlu1 %v3955_v13, %s4423_s7 }
 0xb83   :  { %3906 = vrot.lane.b32.xlu0 %v3875_v54, %s4424_s2 }
 0xb86   :  { %3981 = vrot.lane.b32.xlu1 %v3950_v35, %s4424_s2 }
 0xb87   :  { %3911 = vrot.lane.b32.xlu0 %v3870_v51, %s4425_s21 }
 0xb8a   :  { %3986 = vrot.lane.b32.xlu1 %v3955_v13, %s4424_s2 }
 0xb8b   :  { %3916 = vrot.lane.b32.xlu0 %v3875_v54, %s4425_s21 }
 0xb8e   :  { %3991 = vrot.lane.b32.xlu1 %v3950_v35, %s4425_s21 }
 0xb8f   :  { %3921 = vrot.lane.b32.xlu0 %v3870_v51, %s4426_s19 }
 0xb92   :  { %3996 = vrot.lane.b32.xlu1 %v3955_v13, %s4425_s21 }
 0xb93   :  { %3926 = vrot.lane.b32.xlu0 %v3875_v54, %s4426_s19 }
 0xb96   :  { %4001 = vrot.lane.b32.xlu1 %v3950_v35, %s4426_s19 }
 0xb97   :  { %3931 = vrot.lane.b32.xlu0 %v3870_v51, %s4413_s12 }
 0xb9a   :  { %4006 = vrot.lane.b32.xlu1 %v3955_v13, %s4426_s19 }
 0xb9b   :  { %3936 = vrot.lane.b32.xlu0 %v3875_v54, %s4413_s12 }
 0xb9e   :  { %4011 = vrot.lane.b32.xlu1 %v3950_v35, %s4413_s12 }
 0xb9f   :  { %3941 = vrot.lane.b32.xlu0 %v3870_v51, %s4427_s6 }
 0xba2   :  { %4016 = vrot.lane.b32.xlu1 %v3955_v13, %s4413_s12 }
 0xba3   :  { %3946 = vrot.lane.b32.xlu0 %v3875_v54, %s4427_s6 }
 0xba6   :  { %4021 = vrot.lane.b32.xlu1 %v3950_v35, %s4427_s6 }
 0xba7   :  { %3030 = vperm.xlu0 %3869, %v3027_v44  }
 0xbaa   :  { %4026 = vrot.lane.b32.xlu1 %v3955_v13, %s4427_s6 }
 0xbdc   :  { %v3872_v45 = vpop.permute.xlu1 %3871 }
 0xbdd   :  { %v3877_v9 = vpop.permute.xlu0 %3876  ;;  %v3874_v18 = vunpack.i.h.bf16 %v3872_v45  ;;  %v3873_v20 = vunpack.i.l.bf16 %v3872_v45 }
 0xbde   :  { %v3879_v54 = vunpack.i.h.bf16 %v3877_v9  ;;  %v3878_v35 = vunpack.i.l.bf16 %v3877_v9 }
 0xbe0   :  { %v3952_v41 = vpop.permute.xlu1 %3951 }
 0xbe1   :  { %v3882_v22 = vpop.permute.xlu0 %3881  ;;  %v3954_v21 = vunpack.i.h.bf16 %v3952_v41  ;;  %v3953_v28 = vunpack.i.l.bf16 %v3952_v41 }
 0xbe3   :  { %v2420_v47 = vsel %vm6143_vm8, %v3873_v20, %v3953_v28  ;;  %v2421_v51 = vsel %vm6144_vm1, %v3874_v18, %v3954_v21  ;;  %vm6147_vm8 = vmmov %vm6144_vm1  ;;  %v2418_v1 = vsel %vm6144_vm1, %v3953_v28, %v3878_v35 }
 0xbe4   :  { %v3670_v13 = vpack.c.bf16 %v2421_v51, %v2420_v47  ;;  %v3957_v62 = vpop.permute.xlu1 %3956  ;;  %v2419_v41 = vsel %vm6147_vm8, %v3954_v21, %v3879_v54  ;;  %vm3725_vm8 = vmpackc.low %vm6152_vm14, %vm6152_vm14  ;;  %v3884_v21 = vunpack.i.h.bf16 %v3882_v22  ;;  %vm6157_vm14 = vnez %v6044_v52 }
 0xbe5   :  { %v3887_v44 = vpop.permute.xlu0 %3886  ;;  %v3959_v63 = vunpack.i.h.bf16 %v3957_v62  ;;  %v3958_v45 = vunpack.i.l.bf16 %v3957_v62  ;;  %v3883_v62 = vunpack.i.l.bf16 %v3882_v22 }
 0xbe6   :  { %3672 = vmatprep.subr.msk.bf16.mxu0 %vm3671_vm15, %v3670_v13  ;;  %vm3728_vm15 = vmpackc.low %vm6153_vm12, %vm6153_vm12 }
 0xbe7   :  { %v2417_v57 = vsel %vm6148_vm9, %v3879_v54, %v3959_v63  ;;  %v2416_v9 = vsel %vm6149_vm7, %v3878_v35, %v3958_v45  ;;  %v2422_v47 = vsel %vm6150_vm0, %v3958_v45, %v3873_v20  ;;  %v2423_v51 = vsel %vm6151_vm5, %v3959_v63, %v3874_v18  ;;  %vm6154_vm0 = vmpackc.low %vm6146_vm13, %vm6146_vm13 }
 0xbe8   :  { %v3673_v28 = vpack.c.bf16 %v2423_v51, %v2422_v47  ;;  %v3724_v54 = vpack.c.bf16 %v2417_v57, %v2416_v9  ;;  %v3962_v13 = vpop.permute.xlu1 %3961  ;;  %v3727_v35 = vpack.c.bf16 %v2419_v41, %v2418_v1  ;;  %vm6155_vm5 = vcmp.lt.s32.totalorder %v4938_v59, 16  ;;  %vm3677_vm7 = vmpackc.low %vm6157_vm14, %vm6157_vm14 }
 0xbe9   :  { %v3892_v49 = vpop.permute.xlu0 %3891  ;;  %v3964_v26 = vunpack.i.h.bf16 %v3962_v13  ;;  %v3963_v20 = vunpack.i.l.bf16 %v3962_v13  ;;  %vm6156_vm12 = vmmov %vm6155_vm5  ;;  %v3889_v1 = vunpack.i.h.bf16 %v3887_v44  ;;  %v3888_v63 = vunpack.i.l.bf16 %v3887_v44 }
 0xbea   :  { %3675 = vmatpush1.bf16.msk.msra.mxu0 %vm6154_vm0, %v3673_v28  ;;  %3726 = vmatprep.subr.msk.bf16.mxu1 %vm3725_vm8, %v3724_v54  ;;  %vm6158_vm13 = vmmov %vm6155_vm5  ;;  %vm6160_vm9 = vnez %v6048_v58  ;;  %vm6165_vm14 = vnez %v6052_v5  ;;  %v3894_v51 = vunpack.i.h.bf16 %v3892_v49 }
 0xbeb   :  { %v2469_v2 = vsel %vm6155_vm5, %v3884_v21, %v3964_v26  ;;  %v2468_v8 = vsel %vm6156_vm12, %v3883_v62, %v3963_v20  ;;  %3729 = vmatpush1.bf16.msk.msra.mxu1 %vm3728_vm15, %v3727_v35  ;;  %v2467_v57 = vsel %vm6158_vm13, %v3964_v26, %v3889_v1  ;;  %vm6159_vm1 = vmmov %vm6155_vm5  ;;  %vm6166_vm13 = vnez %v6050_v60 }
 0xbec   :  { %v3676_v18 = vpack.c.bf16 %v2469_v2, %v2468_v8  ;;  %v3967_v22 = vpop.permute.xlu1 %3966  ;;  %v2466_v9 = vsel %vm6159_vm1, %v3963_v20, %v3888_v63  ;;  %vm3680_vm8 = vmpackc.low %vm6160_vm9, %vm6160_vm9  ;;  %v3893_v35 = vunpack.i.l.bf16 %v3892_v49  ;;  %vm6170_vm9 = vnez %v6062_v31 }
 0xbed   :  { %v3897_v45 = vpop.permute.xlu0 %3896  ;;  %v3969_v3 = vunpack.i.h.bf16 %v3967_v22  ;;  %v3968_v41 = vunpack.i.l.bf16 %v3967_v22  ;;  %vm6161_vm15 = vmmov %vm6159_vm1 }
 0xbee   :  { %3678 = vmatprep.subr.msk.bf16.mxu0 %vm3677_vm7, %v3676_v18  ;;  %vm6162_vm0 = vmmov %vm6159_vm1  ;;  %v3899_v49 = vunpack.i.h.bf16 %v3897_v45 }
 0xbef   :  { %v2465_v52 = vsel %vm6161_vm15, %v3889_v1, %v3969_v3  ;;  %v2471_v44 = vsel %vm6162_vm0, %v3969_v3, %v3884_v21  ;;  %vm6163_vm5 = vmmov %vm6162_vm0  ;;  %v3733_v21 = vpack.c.bf16 %v2467_v57, %v2466_v9  ;;  %vm6167_vm15 = vcmp.lt.s32.totalorder %v4938_v59, 15 }
 0xbf0   :  { %v2464_v47 = vsel %vm6163_vm5, %v3888_v63, %v3968_v41  ;;  %vm6164_vm12 = vmmov %vm6162_vm0  ;;  %v3972_v13 = vpop.permute.xlu1 %3971  ;;  %vm6169_vm5 = vnez %v6060_v61 }
 0xbf1   :  { %v2470_v26 = vsel %vm6164_vm12, %v3968_v41, %v3883_v62  ;;  %vm3731_vm7 = vmpackc.low %vm6165_vm14, %vm6165_vm14  ;;  %v3730_v54 = vpack.c.bf16 %v2465_v52, %v2464_v47  ;;  %v3902_v20 = vpop.permute.xlu0 %3901  ;;  %v3974_v2 = vunpack.i.h.bf16 %v3972_v13  ;;  %v3973_v8 = vunpack.i.l.bf16 %v3972_v13 }
 0xbf2   :  { %v3679_v28 = vpack.c.bf16 %v2471_v44, %v2470_v26  ;;  %vm3734_vm1 = vmpackc.low %vm6166_vm13, %vm6166_vm13  ;;  %v3898_v62 = vunpack.i.l.bf16 %v3897_v45  ;;  %v3904_v52 = vunpack.i.h.bf16 %v3902_v20 }
 0xbf3   :  { %3732 = vmatprep.subr.msk.bf16.mxu1 %vm3731_vm7, %v3730_v54  ;;  %v2517_v5 = vsel %vm6167_vm15, %v3894_v51, %v3974_v2  ;;  %vm6168_vm0 = vmmov %vm6167_vm15 }
 0xbf4   :  { %3681 = vmatpush1.bf16.msk.msra.mxu0 %vm3680_vm8, %v3679_v28  ;;  %v2516_v60 = vsel %vm6168_vm0, %v3893_v35, %v3973_v8  ;;  %3735 = vmatpush1.bf16.msk.msra.mxu1 %vm3734_vm1, %v3733_v21  ;;  %vm3683_vm12 = vmpackc.low %vm6169_vm5, %vm6169_vm5  ;;  %v3977_v63 = vpop.permute.xlu1 %3976  ;;  %vm6176_vm5 = vnez %v6069_v12  ;;  %vm6177_vm8 = vnez %v6065_v33  ;;  %v3903_v28 = vunpack.i.l.bf16 %v3902_v20 }
 0xbf5   :  { %v3682_v1 = vpack.c.bf16 %v2517_v5, %v2516_v60  ;;  %v3907_v18 = vpop.permute.xlu0 %3906  ;;  %v3979_v58 = vunpack.i.h.bf16 %v3977_v63  ;;  %v3978_v22 = vunpack.i.l.bf16 %v3977_v63  ;;  %vm6171_vm14 = vmmov %vm6168_vm0 }
 0xbf6   :  { %v2515_v3 = vsel %vm6171_vm14, %v3974_v2, %v3899_v49  ;;  %vm6172_vm7 = vmmov %vm6168_vm0  ;;  %v3908_v20 = vunpack.i.l.bf16 %v3907_v18 }
 0xbf7   :  { %v2514_v41 = vsel %vm6172_vm7, %v3973_v8, %v3898_v62  ;;  %3684 = vmatprep.subr.msk.bf16.mxu0 %vm3683_vm12, %v3682_v1  ;;  %vm6173_vm13 = vmmov %vm6168_vm0  ;;  %v2518_v9 = vsel %vm6168_vm0, %v3978_v22, %v3893_v35  ;;  %v3909_v35 = vunpack.i.h.bf16 %v3907_v18 }
 0xbf8   :  { %v2513_v61 = vsel %vm6173_vm13, %v3899_v49, %v3979_v58  ;;  %vm6174_vm1 = vmmov %vm6168_vm0  ;;  %v3982_v26 = vpop.permute.xlu1 %3981  ;;  %vm6179_vm13 = vcmp.lt.s32.totalorder %v4938_v59, 1 }
 0xbf9   :  { %v2519_v45 = vsel %vm6174_vm1, %v3979_v58, %v3894_v51  ;;  %vm6175_vm15 = vmmov %vm6168_vm0  ;;  %v3739_v51 = vpack.c.bf16 %v2515_v3, %v2514_v41  ;;  %v5688_v54 = vpop.permute.xlu0 %3911  ;;  %v3984_v13 = vunpack.i.h.bf16 %v3982_v26  ;;  %v3983_v21 = vunpack.i.l.bf16 %v3982_v26 }
 0xbfa   :  { %v2512_v57 = vsel %vm6175_vm15, %v3898_v62, %v3978_v22  ;;  %vm3737_vm14 = vmpackc.low %vm6176_vm5, %vm6176_vm5  ;;  %v3685_v44 = vpack.c.bf16 %v2519_v45, %v2518_v9  ;;  %vm6181_vm1 = vnez %v6074_v32 }
 0xbfb   :  { %vm3740_vm12 = vmpackc.low %vm6177_vm8, %vm6177_vm8  ;;  %v3736_v47 = vpack.c.bf16 %v2513_v61, %v2512_v57  ;;  %v2565_v33 = vsel %vm6179_vm13, %v3904_v52, %v3984_v13 }
 0xbfc   :  { %vm6178_vm7 = vmpackc.low %vm6170_vm9, %vm6170_vm9  ;;  %v3987_v8 = vpop.permute.xlu1 %3986  ;;  %vm6182_vm9 = vnez %v6078_v40  ;;  %v6195_v40 = vpack.c.bf16 %v5537_v55, %v5530_v42 }
 0xbfd   :  { %3687 = vmatpush1.bf16.msk.msra.mxu0 %vm6178_vm7, %v3685_v44  ;;  %3738 = vmatprep.subr.msk.bf16.mxu1 %vm3737_vm14, %v3736_v47  ;;  %vm6180_vm8 = vmmov %vm6179_vm13  ;;  %v3917_v5 = vpop.permute.xlu0 %3916  ;;  %v3989_v31 = vunpack.i.h.bf16 %v3987_v8  ;;  %v3988_v60 = vunpack.i.l.bf16 %v3987_v8 }
 0xbfe   :  { %v2564_v12 = vsel %vm6180_vm8, %v3903_v28, %v3983_v21  ;;  %3741 = vmatpush1.bf16.msk.msra.mxu1 %vm3740_vm12, %v3739_v51  ;;  %vm3689_vm15 = vmpackc.low %vm6181_vm1, %vm6181_vm1  ;;  %vm6189_vm1 = vnez %v6086_v48  ;;  %v3919_v41 = vunpack.i.h.bf16 %v3917_v5  ;;  %v3918_v61 = vunpack.i.l.bf16 %v3917_v5 }
 0xbff   :  { %v3688_v2 = vpack.c.bf16 %v2565_v33, %v2564_v12  ;;  %vm3692_vm0 = vmpackc.low %vm6182_vm9, %vm6182_vm9  ;;  %vm6196_vm9 = vnez %v6036_v15  ;;  %v6204_v12 = vpack.c.bf16 %v5535_v46, %v5527_v38 }
 0xc00   :  { %vm6183_vm5 = vmmov %vm6180_vm8  ;;  %v3992_v3 = vpop.permute.xlu1 %3991 }
 0xc01   :  { %v2563_v49 = vsel %vm6183_vm5, %v3984_v13, %v3909_v35  ;;  %vm6184_vm14 = vmmov %vm6183_vm5  ;;  %3690 = vmatprep.subr.msk.bf16.mxu0 %vm3689_vm15, %v3688_v2  ;;  %vm6190_vm15 = vnez %v6034_v14  ;;  %v5726_v45 = vpop.permute.xlu0 %3921  ;;  %v3994_v57 = vunpack.i.h.bf16 %v3992_v3  ;;  %v3993_v9 = vunpack.i.l.bf16 %v3992_v3 }
 0xc02   :  { %v2562_v62 = vsel %vm6184_vm14, %v3983_v21, %v3908_v20  ;;  %vm6185_vm12 = vmmov %vm6183_vm5  ;;  %v3914_v14 = vunpack.i.h.bf16 %v5688_v54  ;;  %v6198_v13 = vpack.c.bf16 %v5541_v36, %v5533_v29  ;;  %v3923_v39 = vunpack.i.l.bf16 %v5726_v45 }
 0xc03   :  { %v2561_v32 = vsel %vm6185_vm12, %v3909_v35, %v3989_v31  ;;  %vm6186_vm7 = vmmov %vm6183_vm5  ;;  %vm6191_vm12 = vnez %v6082_v43  ;;  %v3745_v48 = vpack.c.bf16 %v2563_v49, %v2562_v62  ;;  %v3924_v43 = vunpack.i.h.bf16 %v5726_v45 }
 0xc04   :  { %v2567_v1 = vsel %vm6186_vm7, %v3989_v31, %v3904_v52  ;;  %vm6187_vm13 = vmmov %vm6183_vm5  ;;  %v3913_v52 = vunpack.i.l.bf16 %v5688_v54 }
 0xc05   :  { %v2560_v63 = vsel %vm6187_vm13, %v3908_v20, %v3988_v60  ;;  %vm6188_vm8 = vmmov %vm6183_vm5  ;;  %vm6192_vm13 = vnez %v6040_v6  ;;  %v3927_v55 = vpop.permute.xlu0 %3926 }
 0xc06   :  { %v2566_v18 = vsel %vm6188_vm8, %v3988_v60, %v3903_v28  ;;  %vm3743_vm5 = vmpackc.low %vm6189_vm1, %vm6189_vm1  ;;  %v3742_v22 = vpack.c.bf16 %v2561_v32, %v2560_v63  ;;  %vm6193_vm1 = vcmp.lt.s32.totalorder %v4938_v59, 127  ;;  %v3997_v28 = vpop.permute.xlu1 %3996  ;;  %v3929_v20 = vunpack.i.h.bf16 %v3927_v55 }
 0xc07   :  { %v3691_v58 = vpack.c.bf16 %v2567_v1, %v2566_v18  ;;  %vm3695_vm14 = vmpackc.low %vm6190_vm15, %vm6190_vm15  ;;  %v2635_v44 = vsel %vm6193_vm1, %v3994_v57, %v3919_v41  ;;  %v2637_v42 = vsel %vm6193_vm1, %v3914_v14, %v3994_v57  ;;  %v3999_v51 = vunpack.i.h.bf16 %v3997_v28 }
 0xc08   :  { %vm3746_vm7 = vmpackc.low %vm6191_vm12, %vm6191_vm12  ;;  %3744 = vmatprep.subr.msk.bf16.mxu1 %vm3743_vm5, %v3742_v22  ;;  %v3998_v54 = vunpack.i.l.bf16 %v3997_v28  ;;  %v3928_v2 = vunpack.i.l.bf16 %v3927_v55 }
 0xc09   :  { %3693 = vmatpush1.bf16.msk.msra.mxu0 %vm3692_vm0, %v3691_v58  ;;  %vm3749_vm8 = vmpackc.low %vm6192_vm13, %vm6192_vm13  ;;  %3747 = vmatpush1.bf16.msk.msra.mxu1 %vm3746_vm7, %v3745_v48  ;;  %v3932_v8 = vpop.permute.xlu0 %3931 }
 0xc0a   :  { %vm6194_vm15 = vmmov %vm6193_vm1  ;;  %3696 = vmatprep.subr.msk.bf16.mxu0 %vm3695_vm14, %v6195_v40  ;;  %3750 = vmatprep.subr.msk.bf16.mxu1 %vm3749_vm8, %v6198_v13  ;;  %v4002_v35 = vpop.permute.xlu1 %4001  ;;  %v3933_v22 = vunpack.i.l.bf16 %v3932_v8 }
 0xc0b   :  { %v2634_v47 = vsel %vm6194_vm15, %v3993_v9, %v3918_v61  ;;  %vm3698_vm0 = vmpackc.low %vm6196_vm9, %vm6196_vm9  ;;  %vm6205_vm9 = vnez %v6101_v11  ;;  %v4004_v23 = vunpack.i.h.bf16 %v4002_v35  ;;  %v4003_v5 = vunpack.i.l.bf16 %v4002_v35 }
 0xc0c   :  { %v3700_v26 = vpack.c.bf16 %v2635_v44, %v2634_v47  ;;  %vm3701_vm5 = vmpackc.low %vm5315_vm3, %vm5315_vm3  ;;  %v3934_v11 = vunpack.i.h.bf16 %v3932_v8 }
 0xc0d   :  { %vm6197_vm14 = vmmov %vm6193_vm1  ;;  %3699 = vmatpush1.bf16.msk.msra.mxu0 %vm3698_vm0, %v6199_v34  ;;  %v3937_v32 = vpop.permute.xlu0 %3936 }
 0xc0e   :  { %v2636_v15 = vsel %vm6197_vm14, %v3913_v52, %v3993_v9  ;;  %vm3752_vm3 = vmpackc.low %vm6080_vm10, %vm6080_vm10  ;;  %3702 = vmatprep.subr.msk.bf16.mxu0 %vm3701_vm5, %v3700_v26  ;;  %v4007_v62 = vpop.permute.xlu1 %4006  ;;  %v3939_v45 = vunpack.i.h.bf16 %v3937_v32  ;;  %v3938_v57 = vunpack.i.l.bf16 %v3937_v32  ;;  %v3131_v32 = vld [vmem:[#allocation24 + $0x98] sm:$0xff] }
 0xc0f   :  { %vm3704_vm12 = vmpackc.low %vm5294_vm6, %vm5294_vm6  ;;  %v3703_v27 = vpack.c.bf16 %v2637_v42, %v2636_v15  ;;  %3753 = vmatpush1.bf16.msk.msra.mxu1 %vm3752_vm3, %v6204_v12  ;;  %vm6210_vm6 = vnez %v6106_v10  ;;  %v4009_v1 = vunpack.i.h.bf16 %v4007_v62  ;;  %v4008_v63 = vunpack.i.l.bf16 %v4007_v62 }
 0xc10   :  { %vm6200_vm7 = vmmov %vm6193_vm1 }
 0xc11   :  { %v2633_v29 = vsel %vm6200_vm7, %v3919_v41, %v3999_v51  ;;  %vm6201_vm13 = vmmov %vm6193_vm1  ;;  %3705 = vmatpush1.bf16.msk.msra.mxu0 %vm3704_vm12, %v3703_v27  ;;  %v3942_v9 = vpop.permute.xlu0 %3941 }
 0xc12   :  { %v2639_v6 = vsel %vm6201_vm13, %v3999_v51, %v3914_v14  ;;  %vm6202_vm8 = vmmov %vm6193_vm1  ;;  %v3943_v13 = vunpack.i.l.bf16 %v3942_v9 }
 0xc13   :  { %v2632_v16 = vsel %vm6202_vm8, %v3918_v61, %v3998_v54  ;;  %vm6203_vm10 = vmmov %vm6193_vm1  ;;  %v4012_v61 = vpop.permute.xlu1 %4011 }
 0xc14   :  { %v2638_v36 = vsel %vm6203_vm10, %v3998_v54, %v3913_v52  ;;  %vm3755_vm15 = vmpackc.low %vm5303_vm2, %vm5303_vm2  ;;  %v3757_v33 = vpack.c.bf16 %v2633_v29, %v2632_v16  ;;  %vm6206_vm2 = vcmp.lt.s32.totalorder %v4938_v59, 113  ;;  %vm6215_vm10 = vnez %v6118_v24 }
 0xc15   :  { %v3754_v21 = vpack.c.bf16 %v2639_v6, %v2638_v36  ;;  %vm3758_vm0 = vmpackc.low %vm6205_vm9, %vm6205_vm9  ;;  %v2683_v38 = vsel %vm6206_vm2, %v4004_v23, %v3929_v20  ;;  %vm6216_vm9 = vnez %v6124_v56  ;;  %v4014_v48 = vunpack.i.h.bf16 %v4012_v61  ;;  %v3947_v55 = vpop.permute.xlu0 %3946 }
 0xc16   :  { %vm6207_vm5 = vmmov %vm6206_vm2  ;;  %v4013_v14 = vunpack.i.l.bf16 %v4012_v61  ;;  %v3949_v6 = vunpack.i.h.bf16 %v3947_v55  ;;  %v3948_v16 = vunpack.i.l.bf16 %v3947_v55  ;;  %v3135_v61 = vld [vmem:[#allocation24 + $0xb8] sm:$0xff] }
 0xc17   :  { %3756 = vmatprep.subr.msk.bf16.mxu1 %vm3755_vm15, %v3754_v21  ;;  %v2685_v46 = vsel %vm6207_vm5, %v3924_v43, %v4004_v23  ;;  %vm6208_vm1 = vmmov %vm6206_vm2  ;;  %vm6217_vm2 = vcmp.lt.s32.totalorder %v4938_v59, 112  ;;  %v4017_v28 = vpop.permute.xlu1 %4016  ;;  %v3123_v55 = vld [vmem:[#allocation24 + $0x58] sm:$0xff] }
 0xc18   :  { %v2682_v31 = vsel %vm6208_vm1, %v4003_v5, %v3928_v2  ;;  %vm6209_vm14 = vmmov %vm6208_vm1  ;;  %3759 = vmatpush1.bf16.msk.msra.mxu1 %vm3758_vm0, %v3757_v33  ;;  %v2731_v24 = vsel %vm6217_vm2, %v4014_v48, %v3939_v45  ;;  %v4019_v42 = vunpack.i.h.bf16 %v4017_v28  ;;  %v4018_v15 = vunpack.i.l.bf16 %v4017_v28 }
 0xc19   :  { %v2684_v60 = vsel %vm6209_vm14, %v3923_v39, %v4003_v5  ;;  %vm3707_vm3 = vmpackc.low %vm5391_vm11, %vm5391_vm11  ;;  %v3706_v19 = vpack.c.bf16 %v2683_v38, %v2682_v31  ;;  %v2808_v5 = vld [vmem:[%s5944_s9] sm:$0xff]  ;;  %v3129_v31 = vld [vmem:[#allocation24 + $0x88] sm:$0xff] }
 0xc1a   :  { %vm3710_vm12 = vmpackc.low %vm6210_vm6, %vm6210_vm6  ;;  %v3709_v49 = vpack.c.bf16 %v2685_v46, %v2684_v60  ;;  %vm6221_vm6 = vnez %v6097_v37  ;;  %v3944_v37 = vunpack.i.h.bf16 %v3942_v9  ;;  %v3119_v9 = vld [vmem:[#allocation24 + $0x38] sm:$0xff] }
 0xc1b   :  { %3708 = vmatprep.subr.msk.bf16.mxu0 %vm3707_vm3, %v3706_v19  ;;  %vm6211_vm7 = vmmov %vm6208_vm1  ;;  %v4022_v29 = vpop.permute.xlu1 %4021  ;;  %v3112_v19 = vld [vmem:[#allocation24] sm:$0xff] }
 0xc1c   :  { %v2681_v25 = vsel %vm6211_vm7, %v3929_v20, %v4009_v1  ;;  %vm6212_vm11 = vmmov %vm6208_vm1  ;;  %3711 = vmatpush1.bf16.msk.msra.mxu0 %vm3710_vm12, %v3709_v49  ;;  %v4024_v36 = vunpack.i.h.bf16 %v4022_v29  ;;  %v3113_v49 = vld [vmem:[#allocation24 + $0x8] sm:$0xff] }
 0xc1d   :  { %v2687_v10 = vsel %vm6212_vm11, %v4009_v1, %v3924_v43  ;;  %vm6213_vm13 = vmmov %vm6208_vm1  ;;  %v3780_v62 = vpack.c.bf16 %v3113_v49, %v3112_v19 }
 0xc1e   :  { %v2680_v18 = vsel %vm6213_vm13, %v3928_v2, %v4008_v63  ;;  %vm6214_vm8 = vmmov %vm6208_vm1 }
 0xc1f   :  { %v2686_v58 = vsel %vm6214_vm8, %v4008_v63, %v3923_v39  ;;  %vm3761_vm15 = vmpackc.low %vm6215_vm10, %vm6215_vm10  ;;  %v3763_v41 = vpack.c.bf16 %v2681_v25, %v2680_v18  ;;  %vm6226_vm8 = vnez %v6110_v53  ;;  %v4023_v39 = vunpack.i.l.bf16 %v4022_v29  ;;  %v4027_v35 = vpop.permute.xlu1 %4026  ;;  %v3115_v63 = vld [vmem:[#allocation24 + $0x18] sm:$0xff]  ;;  %v3133_v18 = vld [vmem:[#allocation24 + $0xa8] sm:$0xff] }
 0xc20   :  { %vm3764_vm0 = vmpackc.low %vm6216_vm9, %vm6216_vm9  ;;  %v3760_v3 = vpack.c.bf16 %v2687_v10, %v2686_v58  ;;  %v4029_v20 = vunpack.i.h.bf16 %v4027_v35  ;;  %v4028_v2 = vunpack.i.l.bf16 %v4027_v35  ;;  %v3132_v10 = vld [vmem:[#allocation24 + $0xa0] sm:$0xff] }
 0xc21   :  { %vm6218_vm5 = vmmov %vm6217_vm2  ;;  %v3786_v58 = vpack.c.bf16 %v3133_v18, %v3132_v10 }
 0xc22   :  { %3762 = vmatprep.subr.msk.bf16.mxu1 %vm3761_vm15, %v3760_v3  ;;  %v2733_v52 = vsel %vm6218_vm5, %v3934_v11, %v4014_v48  ;;  %vm6219_vm1 = vmmov %vm6217_vm2  ;;  %vm6227_vm15 = vnez %v6115_v4  ;;  %v3136_v48 = vld [vmem:[#allocation24 + $0xc0] sm:$0xff] }
 0xc23   :  { %v2730_v44 = vsel %vm6219_vm1, %v4013_v14, %v3938_v57  ;;  %vm6220_vm14 = vmmov %vm6219_vm1  ;;  %3765 = vmatpush1.bf16.msk.msra.mxu1 %vm3764_vm0, %v3763_v41  ;;  %vm6228_vm0 = vcmp.lt.s32.totalorder %v4938_v59, 111  ;;  %v3128_v59 = vld [vmem:[#allocation24 + $0x80] sm:$0xff]  ;;  %v3134_v41 = vld [vmem:[#allocation24 + $0xb0] sm:$0xff] }
 0xc24   :  { %v2732_v47 = vsel %vm6220_vm14, %v3933_v22, %v4013_v14  ;;  %vm3713_vm3 = vmpackc.low %vm5366_vm4, %vm5366_vm4  ;;  %v3712_v40 = vpack.c.bf16 %v2731_v24, %v2730_v44  ;;  %v2779_v27 = vsel %vm6228_vm0, %v4024_v36, %v3949_v6  ;;  %vm6232_vm14 = vnez %v6133_v0  ;;  %v3137_v24 = vld [vmem:[#allocation24 + $0xc8] sm:$0xff] }
 0xc25   :  { %v3715_v26 = vpack.c.bf16 %v2733_v52, %v2732_v47  ;;  %vm3716_vm12 = vmpackc.low %vm6221_vm6, %vm6221_vm6  ;;  %vm6233_vm6 = vnez %v6127_v50  ;;  %v3778_v60 = vpack.c.bf16 %v3129_v31, %v3128_v59  ;;  %v3120_v52 = vld [vmem:[#allocation24 + $0x40] sm:$0xff]  ;;  %v3121_v44 = vld [vmem:[#allocation24 + $0x48] sm:$0xff]  ;;  %v3794_v47 = vpack.c.bf16 %v3137_v24, %v3136_v48 }
 0xc26   :  { %3714 = vmatprep.subr.msk.bf16.mxu0 %vm3713_vm3, %v3712_v40  ;;  %vm6222_vm7 = vmmov %vm6219_vm1  ;;  %v3138_v40 = vld [vmem:[#allocation24 + $0xd0] sm:$0xff]  ;;  %v3796_v28 = vpack.c.bf16 %v3121_v44, %v3120_v52  ;;  %v6243_v48 = vlaneseq }
 0xc27   :  { %v2729_v56 = vsel %vm6222_vm7, %v3939_v45, %v4019_v42  ;;  %vm6223_vm11 = vmmov %vm6219_vm1  ;;  %3717 = vmatpush1.bf16.msk.msra.mxu0 %vm3716_vm12, %v3715_v26  ;;  %v3790_v45 = vpack.c.bf16 %v3135_v61, %v3134_v41  ;;  %v3139_v26 = vld [vmem:[#allocation24 + $0xd8] sm:$0xff] }
 0xc28   :  { %v2735_v51 = vsel %vm6223_vm11, %v4019_v42, %v3934_v11  ;;  %vm6224_vm13 = vmmov %vm6219_vm1  ;;  %v3116_v11 = vld [vmem:[#allocation24 + $0x20] sm:$0xff]  ;;  %v3798_v42 = vpack.c.bf16 %v3139_v26, %v3138_v40  ;;  %v3227_v26 = vld [vmem:[%s5948_s13] sm:$0xff] }
 0xc29   :  { %v2728_v7 = vsel %vm6224_vm13, %v3938_v57, %v4018_v15  ;;  %vm6225_vm4 = vmmov %vm6219_vm1  ;;  %v3118_v57 = vld [vmem:[#allocation24 + $0x30] sm:$0xff] }
 0xc2a   :  { %v2734_v54 = vsel %vm6225_vm4, %v4018_v15, %v3933_v22  ;;  %vm3767_vm10 = vmpackc.low %vm6226_vm8, %vm6226_vm8  ;;  %v3769_v34 = vpack.c.bf16 %v2729_v56, %v2728_v7  ;;  %vm6238_vm8 = vnez %v6130_v17  ;;  %v3130_v17 = vld [vmem:[#allocation24 + $0x90] sm:$0xff]  ;;  %v3117_v22 = vld [vmem:[#allocation24 + $0x28] sm:$0xff]  ;;  %v3792_v14 = vpack.c.bf16 %v3119_v9, %v3118_v57 }
 0xc2b   :  { %v3766_v43 = vpack.c.bf16 %v2735_v51, %v2734_v54  ;;  %vm3770_vm9 = vmpackc.low %vm6227_vm15, %vm6227_vm15  ;;  %vm6239_vm15 = vnez %v6136_v30  ;;  %v3782_v1 = vpack.c.bf16 %v3131_v32, %v3130_v17  ;;  %v3114_v30 = vld [vmem:[#allocation24 + $0x10] sm:$0xff]  ;;  %v3788_v3 = vpack.c.bf16 %v3117_v22, %v3116_v11  ;;  %v3140_v56 = vld [vmem:[#allocation24 + $0xe0] sm:$0xff] }
 0xc2c   :  { %vm6229_vm2 = vmmov %vm6228_vm0  ;;  %v3784_v25 = vpack.c.bf16 %v3115_v63, %v3114_v30  ;;  %v3122_v15 = vld [vmem:[#allocation24 + $0x50] sm:$0xff]  ;;  %v3141_v51 = vld [vmem:[#allocation24 + $0xe8] sm:$0xff] }
 0xc2d   :  { %3768 = vmatprep.subr.msk.bf16.mxu1 %vm3767_vm10, %v3766_v43  ;;  %v2781_v53 = vsel %vm6229_vm2, %v3944_v37, %v4024_v36  ;;  %vm6230_vm5 = vmmov %vm6228_vm0  ;;  %v3800_v7 = vpack.c.bf16 %v3123_v55, %v3122_v15  ;;  %v3802_v54 = vpack.c.bf16 %v3141_v51, %v3140_v56  ;;  %v3142_v43 = vld [vmem:[#allocation24 + $0xf0] sm:$0xff]  ;;  %v3127_v36 = vld [vmem:[#allocation24 + $0x78] sm:$0xff]  ;;  %v4429_v15 = vmov 0.0|0.0  }
 0xc2e   :  { %v2778_v21 = vsel %vm6230_vm5, %v4023_v39, %v3948_v16  ;;  %vm6231_vm1 = vmmov %vm6228_vm0  ;;  %3771 = vmatpush1.bf16.msk.msra.mxu1 %vm3770_vm9, %v3769_v34  ;;  %v3143_v34 = vld [vmem:[#allocation24 + $0xf8] sm:$0xff]  ;;  %v3230_v56 = vld [vmem:[%s5948_s13 + $0x18] sm:$0xff]  ;;  %vm4430_vm2 = vmmov 0   ;;  %v6244_v51 = vmov 0.0   ;;  %vm3238_vm5 = vcmask 261120  }
 0xc2f   :  { %v2780_v33 = vsel %vm6231_vm1, %v3943_v13, %v4023_v39  ;;  %vm3719_vm3 = vmpackc.low %vm6232_vm14, %vm6232_vm14  ;;  %v3718_v4 = vpack.c.bf16 %v2779_v27, %v2778_v21  ;;  %v3031_v27 = vpop.permute.xlu0 %3030  ;;  %vm6245_vm1 = vcmask 130048  }
 0xc30   :  { %vm3722_vm12 = vmpackc.low %vm6233_vm6, %vm6233_vm6  ;;  %v3721_v12 = vpack.c.bf16 %v2781_v53, %v2780_v33  ;;  %v6240_v53 = vld [vmem:[#allocation35_spill] sm:$0xff] }
 0xc31   :  { %3720 = vmatprep.subr.msk.bf16.mxu0 %vm3719_vm3, %v3718_v4  ;;  %vm6234_vm7 = vmmov %vm6228_vm0  ;;  %v6241_v21 = vsub.s32 0, %v6240_v53  ;;  %v3413_v53 = vld [vmem:[%s5949_s14] ss:$0 sm:$0xff]  ;;  %s4431_s14 = smov [#allocation27]   ;;  %vm3329_vm3 = vcmask 123904  }
 0xc32   :  { %v2777_v8 = vsel %vm6234_vm7, %v3949_v6, %v4029_v20  ;;  %vm6235_vm11 = vmmov %vm6228_vm0  ;;  %3723 = vmatpush1.bf16.msk.msra.mxu0 %vm3722_vm12, %v3721_v12  ;;  %v3806_v6 = vpack.c.bf16 %v3143_v34, %v3142_v43  ;;  %s3337_s16 = sshll.u32 %s4431_s14, 4  ;;  %s3338_s16 = int_to_ptr.vmem [resolvable:$true] %s3337_s16 }
 0xc33   :  { %v2783_v23 = vsel %vm6235_vm11, %v4029_v20, %v3944_v37  ;;  %vm6236_vm13 = vmmov %vm6228_vm0  ;;  %3779 = vmatprep.subr.bf16.mxu0 %v3778_v60  ;;  %v3124_v37 = vld [vmem:[#allocation24 + $0x60] sm:$0xff]  ;;  %v3036_v33 = vrot.slane %v3031_v27, %v6241_v21  ;;  %s4364_s17 = scalar_lea.vmem %s3338_s16, 32  ;;  %p4369_p5 = scmp.lt.s32.totalorder %s3338_s16, %s3338_s16 }
 0xc34   :  { %v2776_v0 = vsel %vm6236_vm13, %v3948_v16, %v4028_v2  ;;  %vm6237_vm4 = vmmov %vm6228_vm0  ;;  %v3126_v16 = vld [vmem:[#allocation24 + $0x70] sm:$0xff]  ;;  %vm3085_vm0 = vcmp.lt.s32.totalorder %v6243_v48, 256  ;;  %p4365_p4 = scmp.ne.s32.totalorder %s3338_s16, %s4364_s17  ;;  %p4370_p6 = scmp.lt.s32.totalorder %s4364_s17, %s4364_s17 }
 0xc35   :  { %v2782_v50 = vsel %vm6237_vm4, %v4028_v2, %v3943_v13  ;;  %vm3773_vm10 = vmpackc.low %vm6238_vm8, %vm6238_vm8  ;;  %v3775_v46 = vpack.c.bf16 %v2777_v8, %v2776_v0  ;;  %2950 = vmatmul.mubr.f32.vlgmr.msra.gmra.mrb[10].mxu0 %v2808_v5  ;;  %v3125_v13 = vld [vmem:[#allocation24 + $0x68] sm:$0xff]  ;;  %v3808_v39 = vpack.c.bf16 %v3127_v36, %v3126_v16 }
 0xc36   :  { %vm3776_vm9 = vmpackc.low %vm6239_vm15, %vm6239_vm15  ;;  %v3772_v38 = vpack.c.bf16 %v2783_v23, %v2782_v50  ;;  %3781 = vmatpush3.bf16.msra.mxu0 %v3780_v62  ;;  %v3804_v29 = vpack.c.bf16 %v3125_v13, %v3124_v37  ;;  %v3412_v37 = vld [vmem:[#allocation26] ss:$0 sm:$0xff]  ;;  %p4371_p7 = por %p4370_p6, %p4369_p5 }
 0xc37   :  { %3783 = vmatprep.subr.bf16.mxu0 %v3782_v1  ;;  %vm6246_vm14 = vmmov %vm6245_vm1 }
 0xc38   :  { %3774 = vmatprep.subr.msk.bf16.mxu1 %vm3773_vm10, %v3772_v38  ;;  %p4372_p8 = pnand %p4371_p7, %p4365_p4 }
 0xc39   :  { %3777 = vmatpush1.bf16.msk.msra.mxu1 %vm3776_vm9, %v3775_v46 }
 0xc3a   :  { %3785 = vmatpush3.bf16.msra.mxu0 %v3784_v25  ;;  %3810 = vmatprep.subr.bf16.mxu1 %v4429_v15 }
 0xc3b   :  { %3787 = vmatprep.subr.bf16.mxu0 %v3786_v58 }
 0xc3c   :  { %3021 = vmatmul.mubr.f32.vlgmr.msra.gmra.mrb[18].mxu1 %v2808_v5 }
 0xc3d   :  { %3627 = vmatprep.mubr.msk.f32.mxu1 %vm4430_vm2, %v6244_v51 }
 0xc3e   :  { %3789 = vmatpush3.bf16.msra.mxu0 %v3788_v3 }
 0xc3f   :  { %3791 = vmatprep.subr.bf16.mxu0 %v3790_v45  ;;  %v6242_v45 = vld [vmem:[#allocation36_spill] sm:$0xff] }
 0xc42   :  { %3793 = vmatpush3.bf16.msra.mxu0 %v3792_v14 }
 0xc43   :  { %3795 = vmatprep.subr.bf16.mxu0 %v3794_v47 }
 0xc46   :  { %3797 = vmatpush3.bf16.msra.mxu0 %v3796_v28  ;;  %v3228_v28 = vld [vmem:[%s5948_s13 + $0x8] sm:$0xff] }
 0xc47   :  { %3799 = vmatprep.subr.bf16.mxu0 %v3798_v42  ;;  %v3229_v42 = vld [vmem:[%s5948_s13 + $0x10] sm:$0xff]  ;;  %v3811_v55 = vpack.c.bf16 %v3228_v28, %v3227_v26 }
 0xc49   :  { %3812 = vmatpush3.bf16.msra.mxu1 %v3811_v55 }
 0xc4a   :  { %3801 = vmatpush3.bf16.msra.mxu0 %v3800_v7  ;;  %v3814_v7 = vpack.c.bf16 %v3230_v56, %v3229_v42  ;;  %3813 = vmatprep.subr.bf16.mxu1 %v4429_v15 }
 0xc4b   :  { %3803 = vmatprep.subr.bf16.mxu0 %v3802_v54 }
 0xc4d   :  { %3815 = vmatpush3.bf16.msra.mxu1 %v3814_v7 }
 0xc4e   :  { %3805 = vmatpush3.bf16.msra.mxu0 %v3804_v29 }
 0xc4f   :  { %3807 = vmatprep.subr.bf16.mxu0 %v3806_v6 }
 0xc52   :  { %3809 = vmatpush3.bf16.msra.mxu0 %v3808_v39 }
 0xd08   :  { %v2951_v4 = vpop.f32.mrb[10].mxu0 }
 0xd09   :  { %v3037_v12 = vadd.f32 %v3036_v33, %v2951_v4  ;;  %v2953_v35 = vpop.f32.mrb[11].mxu0 }
 0xd0a   :  { %v3038_v20 = vadd.f32 %v3036_v33, %v2953_v35 }
 0xd0b   :  { %v3041_v2 = vsub.f32 0.0, %v3037_v12 }
 0xd0c   :  { %v3042_v8 = vsub.f32 0.0, %v3038_v20 }
 0xd0d   :  { %v3045_v0 = vmul.f32 1.442695, %v3041_v2 }
 0xd0e   :  { %v3047_v38 = vmul.f32 1.442695, %v3042_v8 }
 0xd0f   :  { %v3022_v23 = vpop.f32.mrb[18].mxu1  ;;  %4094 = vpow2.f32 %v3045_v0 }
 0xd10   :  { %v3039_v50 = vadd.f32 %v3036_v33, %v3022_v23  ;;  %v3024_v5 = vpop.f32.mrb[19].mxu1  ;;  %4096 = vpow2.f32 %v3047_v38 }
 0xd11   :  { %v3040_v46 = vadd.f32 %v3036_v33, %v3024_v5 }
 0xd12   :  { %v3043_v59 = vsub.f32 0.0, %v3039_v50 }
 0xd13   :  { %v3044_v31 = vsub.f32 0.0, %v3040_v46 }
 0xd14   :  { %v3049_v60 = vmul.f32 1.442695, %v3043_v59 }
 0xd15   :  { %v3051_v19 = vmul.f32 1.442695, %v3044_v31 }
 0xd16   :  { %4098 = vpow2.f32 %v3049_v60 }
 0xd17   :  { %4100 = vpow2.f32 %v3051_v19 }
 0xd19   :  { %v4095_v49 = vpop.eup %4094 }
 0xd1a   :  { %v4097_v62 = vpop.eup %4096  ;;  %v3053_v17 = vadd.f32 1.0, %v4095_v49 }
 0xd1b   :  { %v3054_v32 = vadd.f32 1.0, %v4097_v62 }
 0xd1c   :  { %4102 = vrcp.f32 %v3053_v17 }
 0xd1d   :  { %4104 = vrcp.f32 %v3054_v32 }
 0xd20   :  { %v4099_v1 = vpop.eup %4098 }
 0xd21   :  { %v4101_v30 = vpop.eup %4100  ;;  %v3055_v63 = vadd.f32 1.0, %v4099_v1 }
 0xd22   :  { %v3056_v25 = vadd.f32 1.0, %v4101_v30 }
 0xd23   :  { %4106 = vrcp.f32 %v3055_v63 }
 0xd24   :  { %4108 = vrcp.f32 %v3056_v25 }
 0xd26   :  { %v4103_v10 = vpop.eup %4102 }
 0xd27   :  { %v4105_v18 = vpop.eup %4104  ;;  %v3061_v58 = vmul.f32 %v4103_v10, %v3037_v12 }
 0xd28   :  { %v3062_v11 = vmul.f32 %v4105_v18, %v3038_v20 }
 0xd2a   :  { %v3069_v3 = vcombine.low %v3061_v58, %v3062_v11 }
 0xd2c   :  { %v3076_v57 = vrot.slane %v3069_v3, %v6242_v45 }
 0xd2d   :  { %v4107_v22 = vpop.eup %4106 }
 0xd2e   :  { %v4109_v41 = vpop.eup %4108  ;;  %v3063_v61 = vmul.f32 %v4107_v22, %v3039_v50  ;;  %v3083_v14 = vrot.slane %v3076_v57, %v6242_v45 }
 0xd2f   :  { %v3064_v9 = vmul.f32 %v4109_v41, %v3040_v46 }
 0xd30   :  { %3087 = vst.msk [vmem:[#allocation7] ss:$8 sm:$0x3] %vm3085_vm0, %v3083_v14 }
 0xd31   :  { %v3091_v24 = vcombine.low %v3063_v61, %v3064_v9 }
 0xd33   :  { %v3098_v52 = vrot.slane %v3091_v24, %v6242_v45 }
 0xd35   :  { %v3105_v44 = vrot.slane %v3098_v52, %v6242_v45 }
 0xd37   :  { %3108 = vst.msk [vmem:[#allocation7 + $0x1] ss:$8 sm:$0x3] %vm3085_vm0, %v3105_v44 }
 0xd3e   :  { %v3111_v47 = vld [vmem:[#allocation7 + $0x8] sm:$0xff]  ;;  %v3110_v40 = vld [vmem:[#allocation7] sm:$0xff] }
 0xd3f   :  { %3215 = vmatprep.mubr.f32.mxu0 %v3111_v47 }
 0xd40   :  { %3216 = vmatmul.mubr.f32.vlgmr.msra.gmra.mrb[12].mxu0 %v3110_v40 }
 0xe13   :  { %v3553_v54 = vpop.f32.mrb[12].mxu0 }
 0xe14   :  { %v3554_v13 = vpop.f32.mrb[13].mxu0 }
 0xe15   :  { %v3555_v43 = vadd.f32 %v3554_v13, %v3553_v54 }
 0xe17   :  { %v3218_v34 = vadd.f32 %v3555_v43, %v3412_v37 }
 0xe19   :  { %v3221_v29 = vsub.f32 0.0, %v3218_v34 }
 0xe1b   :  { %v3222_v6 = vmul.f32 1.442695, %v3221_v29 }
 0xe1d   :  { %4110 = vpow2.f32 %v3222_v6 }
 0xe27   :  { %v4111_v16 = vpop.eup %4110 }
 0xe28   :  { %v3224_v36 = vadd.f32 1.0, %v4111_v16 }
 0xe2a   :  { %4112 = vrcp.f32 %v3224_v36 }
 0xe34   :  { %v4113_v39 = vpop.eup %4112 }
 0xe35   :  { %v3226_v27 = vmul.f32 %v4113_v39, %v3218_v34 }
 0xe37   :  { %3628 = vmatmul.mubr.msk.f32.vlgmr.msra.gmra.mrb[20].mxu1 %vm3238_vm5, %v3226_v27 }
 0xf0a   :  { %v3308_v21 = vpop.f32.mrb[20].mxu1 }
 0xf0b   :  { %v3309_v33 = vadd.f32 %v3413_v53, %v3308_v21  ;;  %v3629_v4 = vpop.f32.mrb[21].mxu1 }
 0xf0d   :  { %v3312_v12 = vsub.f32 0.0, %v3309_v33 }
 0xf0f   :  { %v3313_v35 = vmul.f32 1.442695, %v3312_v12 }
 0xf11   :  { %4114 = vpow2.f32 %v3313_v35 }
 0xf1b   :  { %v4115_v20 = vpop.eup %4114 }
 0xf1c   :  { %v3315_v2 = vadd.f32 1.0, %v4115_v20 }
 0xf1e   :  { %4116 = vrcp.f32 %v3315_v2 }
 0xf28   :  { %v4117_v8 = vpop.eup %4116 }
 0xf29   :  { %v3317_v23 = vmul.f32 %v4117_v8, %v3309_v33 }
 0xf2b   :  { %v3318_v0 = vsel %vm6245_vm1, %v3317_v23, -inf }
 0xf2c   :  { %3319 = vmax.xlane.f32.xlu1 %v3318_v0 }
 0xfb9   :  { %v3320_v50 = vpop.xlane.xlu1 %3319 }
 0xfba   :  { %v3321_v5 = vsub.f32 %v3317_v23, %v3320_v50 }
 0xfbc   :  { %v3322_v38 = vmul.f32 1.442695, %v3321_v5 }
 0xfbe   :  { %4118 = vpow2.f32 %v3322_v38 }
 0xfc8   :  { %v4119_v46 = vpop.eup %4118 }
 0xfc9   :  { %v3324_v59 = vsel %vm6246_vm14, %v4119_v46, 0.0 }
 0xfca   :  { %3325 = vadd.xlane.f32.xlu0 %v3324_v59 }
0x1057   :  { %v3326_v31 = vpop.xlane.xlu0 %3325 }
0x1058   :  { %4120 = vrcp.f32 %v3326_v31 }
0x1062   :  { %v4121_v60 = vpop.eup %4120 }
0x1063   :  { %v3328_v19 = vmul.f32 %v4121_v60, %v4119_v46 }
0x1065   :  { %3330 = vst.msk [vmem:[#allocation27] sm:$0x3] %vm3329_vm3, %v3328_v19 }
0x1066   :  { %4375 = shalt.err (!%p4372_p8)
}
0x1067   :  { %s4376_s28 = scalar_lea.hbm %s5950_s15, 32 }
0x1068   :  { %p4377_p9 = scmp.ne.s32.totalorder %s5950_s15, %s4376_s28  ;;  %p4380_p10 = scmp.lt.u32.totalorder %s4376_s28, %s5950_s15 }
0x106a   :  { %p4382_p11 = pnand %p4380_p10, %p4377_p9 }
0x106c   :  { %4385 = shalt.err (!%p4382_p11)
}
0x106d   :  { %3340 = dma.vmem_to_hbm [thread:$0]  %s3338_s16, 32, %s5950_s15, [#allocation11]  }
0x106e   :  { %4398 = dma.done.wait [#allocation11], 32  }
0x106f   :  { %4399 = vsyncadd [#allocation11], 4294967264 }
0x1070   :  { %3344 = vsyncpa [#allocation10], 1 }
0x1071   :  { %3345 = vsyncpa [#allocation13], 1 }
0x1072   :  { %3346 = vsyncpa [#allocation16], 1 }
0x1073   :  { %3347 = vsyncpa [#allocation19], 1 }
0x1074   :  { %3348 = vsyncpa [#allocation22], 1 }
0x1075   :  { %3349 = vsyncpa [#allocation25], 1 }
0x1076   :  { %3350 = vsyncpa [#allocation11], 1 }

</bundles_post_ra>
